<compile_context>
chip_gen: v6e
topology: v6e:2x2x1
jax: 0.10.0
libtpu: 0.0.40
codegen_flags: <defaults>
</compile_context>

<pallas_src>
import functools
from typing import NamedTuple

import jax
import jax.numpy as jnp
from jax.experimental import pallas as pl
from jax.experimental.pallas import tpu as pltpu


def _round_up(v, m):
    return -(-v // m) * m


def _preferred_tn():
    """MXU-native output stripe width: 256 on v6e/v7x (2x256^2), else 128."""
    try:
        kind = jax.devices()[0].device_kind.lower()
    except Exception:
        return 128
    if ("v6" in kind) or ("v7" in kind) or ("7x" in kind):
        return 256
    return 128


def _vmem_limit_bytes(hp, wp, c_in, k_rows, m_tile, tn):
    """Rough per-step VMEM footprint (with (sublane, lane) layout padding and
    double-buffered pipeline buffers), 1.5x headroom, clamped to a v7x-safe
    64 MiB ceiling (v5e/v6e have 128 MiB physical and could go higher)."""
    bf16, f32 = 2, 4
    x_blk = hp * _round_up(wp, 16) * _round_up(c_in, 128) * bf16   # image slab
    w_blk = _round_up(k_rows, 16) * tn * bf16                      # weight stripe
    h_blk = _round_up(m_tile, 16) * tn * bf16                      # h / y tiles
    acc = _round_up(m_tile, 8) * tn * f32                          # f32 accumulator
    stats = 2 * 8 * tn * f32
    est = 2 * (x_blk + w_blk + 2 * h_blk) + acc + stats
    return min(max(32 << 20, int(est * 1.5)), 64 << 20)


class ConvBNParams(NamedTuple):
    wcol: jax.Array   # (KH*KW*C_in, C_pad) bf16, row order (i*KW + j)*C_in + c
    gamma: jax.Array  # (1, C_pad) f32, pad channels -> 1.0
    beta: jax.Array   # (1, C_pad) f32, pad channels -> 0.0
    c_out: int
    c_in: int
    kh: int
    kw: int
    tn: int


def prepare_params(weight, gamma, beta, *, tn=None):
    """One-time (parameter-load-time) reorder / pad / bf16-cast of the Conv+BN
    parameters, so no per-call weight transposes or HBM round-trips happen."""
    c_out, c_in, kh, kw = weight.shape
    if tn is None:
        tn = min(_preferred_tn(), _round_up(c_out, 128))
    assert tn % 128 == 0, "tn must be a multiple of 128 (lane width)"
    c_pad = _round_up(c_out, tn)
    pad_c = c_pad - c_out
    # (i, j, c) -> row (i*kw + j)*c_in + c ; columns = output channel.
    wcol = jnp.transpose(weight, (2, 3, 1, 0)).reshape(kh * kw * c_in, c_out)
    wcol = jnp.pad(wcol, ((0, 0), (0, pad_c))).astype(jnp.bfloat16)
    gamma_p = jnp.pad(gamma.reshape(1, c_out).astype(jnp.float32),
                      ((0, 0), (0, pad_c)), constant_values=1.0)
    beta_p = jnp.pad(beta.reshape(1, c_out).astype(jnp.float32),
                     ((0, 0), (0, pad_c)))
    return ConvBNParams(wcol, gamma_p, beta_p, c_out, c_in, kh, kw, tn)


def _conv_stats_kernel(x_ref, w_ref, h_ref, stats_ref, *,
                       kh, kw, stride, ho, wo, c_in):
    # x_ref    : (Hp, Wp, C_in)   bf16 -- one spatially padded NHWC image
    # w_ref    : (KH*KW*C_in, TN) bf16 -- lane-dense output-channel stripe
    # h_ref    : (Ho*Wo, TN)      bf16 -- conv output tile for this image
    # stats_ref: (2, TN)          f32  -- [sum; sumsq], resident across batch axis
    @pl.when(pl.program_id(1) == 0)
    def _init():
        stats_ref[...] = jnp.zeros_like(stats_ref)

    tn = w_ref.shape[1]
    acc = jnp.zeros((ho * wo, tn), jnp.float32)
    # Implicit GEMM: accumulate over the KH*KW kernel offsets; the input slab
    # is read from HBM exactly once, patches are formed from VMEM.
    for i in range(kh):
        for j in range(kw):
            rows = pl.ds(i, ho) if stride == 1 else pl.ds(i, ho, stride=stride)
            cols = pl.ds(j, wo) if stride == 1 else pl.ds(j, wo, stride=stride)
            patch = x_ref[rows, cols, :]                       # (Ho, Wo, C_in)
            patch2d = patch.reshape(ho * wo, c_in)
            w_ij = w_ref[pl.ds((i * kw + j) * c_in, c_in), :]  # (C_in, TN)
            acc = acc + jnp.dot(patch2d, w_ij,
                                preferred_element_type=jnp.float32)

    h_ref[...] = acc.astype(h_ref.dtype)
    # One-pass sum / sum-of-squares in f32 (variance is clamped at 0 in pass 2).
    stats_ref[0:1, :] += jnp.sum(acc, axis=0, keepdims=True)
    stats_ref[1:2, :] += jnp.sum(acc * acc, axis=0, keepdims=True)


def _bn_relu_kernel(h_ref, stats_ref, gamma_ref, beta_ref, o_ref, *,
                    m_total, eps):
    # h_ref : (Ho*Wo, TN) bf16   stats_ref: (2, TN) f32
    # gamma_ref / beta_ref: (1, TN) f32      o_ref: (Ho*Wo, TN) out_dtype
    inv_m = jnp.float32(1.0 / m_total)
    mean = stats_ref[0:1, :] * inv_m
    var = jnp.maximum(stats_ref[1:2, :] * inv_m - mean * mean, 0.0)
    inv_std = jax.lax.rsqrt(var + eps)
    scale = gamma_ref[...] * inv_std              # fused BN fold
    shift = beta_ref[...] - mean * scale
    h = h_ref[...].astype(jnp.float32)
    o_ref[...] = jnp.maximum(h * scale + shift, 0.0).astype(o_ref.dtype)


def basic_conv2d(x, params: ConvBNParams, *, stride=1, padding=0, eps=1e-5,
                 out_dtype=jnp.bfloat16, input_format="NCHW",
                 output_format="NHWC"):
    """Forward pass of BasicConv2d: relu(BatchNorm2d(Conv2d(x, bias=False))).

    Returns NHWC bf16 by default (channels on the lane axis) so no trailing
    transpose / f32 writeback is paid; pass output_format="NCHW" /
    out_dtype=jnp.float32 for exact PyTorch layout/dtype parity.
    """
    if input_format == "NCHW":
        x_nhwc = jnp.transpose(x, (0, 2, 3, 1))
    elif input_format == "NHWC":
        x_nhwc = x
    else:
        raise ValueError(f"unknown input_format {input_format!r}")

    n, h_in, w_in, c_in = x_nhwc.shape
    assert c_in == params.c_in, "input channel mismatch with prepared params"
    kh, kw, tn = params.kh, params.kw, params.tn
    c_pad = params.wcol.shape[1]
    c_tiles = c_pad // tn
    k_rows = kh * kw * c_in

    ho = (h_in + 2 * padding - kh) // stride + 1
    wo = (w_in + 2 * padding - kw) // stride + 1
    hp, wp = h_in + 2 * padding, w_in + 2 * padding
    m_tile = ho * wo            # per-image M tile (output rows per grid step)
    m_total = n * m_tile        # BN statistics population size

    x_pad = jnp.pad(
        x_nhwc, ((0, 0), (padding, padding), (padding, padding), (0, 0))
    ).astype(jnp.bfloat16)

    vmem_limit = _vmem_limit_bytes(hp, wp, c_in, k_rows, m_tile, tn)

    # ---- pass 1: conv (implicit GEMM) + per-channel sum / sumsq -------------
    kernel1 = functools.partial(_conv_stats_kernel, kh=kh, kw=kw, stride=stride,
                                ho=ho, wo=wo, c_in=c_in)
    h_flat, stats = pl.pallas_call(
        kernel1,
        out_shape=(jax.ShapeDtypeStruct((n, m_tile, c_pad), jnp.bfloat16),
                   jax.ShapeDtypeStruct((2, c_pad), jnp.float32)),
        grid_spec=pltpu.PrefetchScalarGridSpec(
            num_scalar_prefetch=0,
            # Stats accumulate across the batch axis -> it must be innermost
            # and "arbitrary"; channel stripes are independent ("parallel").
            grid=(c_tiles, n),
            in_specs=[
                pl.BlockSpec((None, hp, wp, c_in), lambda j, b: (b, 0, 0, 0)),
                pl.BlockSpec((k_rows, tn), lambda j, b: (0, j)),
            ],
            out_specs=(
                pl.BlockSpec((None, m_tile, tn), lambda j, b: (b, 0, j)),
                pl.BlockSpec((2, tn), lambda j, b: (0, j)),  # resident accumulator
            ),
        ),
        compiler_params=pltpu.CompilerParams(
            dimension_semantics=("parallel", "arbitrary"),
            vmem_limit_bytes=vmem_limit,
        ),
    )(x_pad, params.wcol)

    # ---- pass 2: fused BN scale/shift + ReLU (lightweight elementwise) ------
    kernel2 = functools.partial(_bn_relu_kernel, m_total=float(m_total), eps=eps)
    y_flat = pl.pallas_call(
        kernel2,
        out_shape=jax.ShapeDtypeStruct((n, m_tile, c_pad), out_dtype),
        grid_spec=pltpu.PrefetchScalarGridSpec(
            num_scalar_prefetch=0,
            grid=(n, c_tiles),
            in_specs=[
                pl.BlockSpec((None, m_tile, tn), lambda b, j: (b, 0, j)),
                pl.BlockSpec((2, tn), lambda b, j: (0, j)),
                pl.BlockSpec((1, tn), lambda b, j: (0, j)),
                pl.BlockSpec((1, tn), lambda b, j: (0, j)),
            ],
            out_specs=pl.BlockSpec((None, m_tile, tn), lambda b, j: (b, 0, j)),
        ),
        compiler_params=pltpu.CompilerParams(
            dimension_semantics=("parallel", "parallel"),
            vmem_limit_bytes=vmem_limit,
        ),
    )(h_flat, stats, params.gamma, params.beta)

    # Pad channels carry zero weights (gamma pad = 1.0, var clamp) -> exactly 0;
    # sliced off here.  For real layers C_out is a multiple of 128 and the
    # pad/slice vanishes.
    y = y_flat.reshape(n, ho, wo, c_pad)[..., :params.c_out]
    if output_format == "NCHW":
        y = jnp.transpose(y, (0, 3, 1, 2))
    return y


if __name__ == "__main__":
    N, C_IN, H, W = 2, 4, 16, 16
    C_OUT, KH, KW = 8, 3, 3
    STRIDE, PADDING = 1, 1

    key = jax.random.PRNGKey(0)
    kx, kw_, kg, kb = jax.random.split(key, 4)

    x = jax.random.normal(kx, (N, C_IN, H, W), dtype=jnp.float32)
    bound = 1.0 / (C_IN * KH * KW) ** 0.5
    weight = jax.random.uniform(kw_, (C_OUT, C_IN, KH, KW), dtype=jnp.float32,
                                minval=-bound, maxval=bound)
    gamma = 1.0 + 0.1 * jax.random.normal(kg, (C_OUT,), dtype=jnp.float32)
    beta = 0.1 * jax.random.normal(kb, (C_OUT,), dtype=jnp.float32)

    params = prepare_params(weight, gamma, beta)          # done once, load-time
    out = basic_conv2d(x, params, stride=STRIDE, padding=PADDING)  # NHWC bf16
    jax.block_until_ready(out)

    # ---- plain-JAX f32 reference (Conv2d -> BatchNorm2d train -> ReLU) -----
    h_ref = jax.lax.conv_general_dilated(
        x, weight, window_strides=(STRIDE, STRIDE),
        padding=((PADDING, PADDING), (PADDING, PADDING)),
        dimension_numbers=("NCHW", "OIHW", "NCHW"))
    mean_ref = h_ref.mean(axis=(0, 2, 3), keepdims=True)
    var_ref = ((h_ref - mean_ref) ** 2).mean(axis=(0, 2, 3), keepdims=True)
    y_ref = (h_ref - mean_ref) / jnp.sqrt(var_ref + 1e-5)
    y_ref = y_ref * gamma.reshape(1, C_OUT, 1, 1) + beta.reshape(1, C_OUT, 1, 1)
    y_ref = jnp.maximum(y_ref, 0.0)
    y_ref_nhwc = jnp.transpose(y_ref, (0, 2, 3, 1))

    # bf16 matmul inputs + bf16 h/output storage -> relaxed tolerance vs f32 ref.
    assert out.shape == y_ref_nhwc.shape, "shape mismatch vs reference"
    assert jnp.allclose(out.astype(jnp.float32), y_ref_nhwc,
                        atol=3e-2, rtol=3e-2), "mismatch vs reference"

    print("KERNEL_OK")
</pallas_src>

<mosaic_0001>
module attributes {stable_mosaic.version = 11 : i64} {
  func.func @_conv_stats_kernel(%arg0: i32, %arg1: i32, %arg2: memref<1x18x18x4xbf16, #tpu.memory_space<vmem>>, %arg3: memref<36x128xbf16, #tpu.memory_space<vmem>>, %arg4: memref<1x256x128xbf16, #tpu.memory_space<vmem>>, %arg5: memref<2x128xf32, #tpu.memory_space<vmem>>) attributes {dimension_semantics = [#tpu.dimension_semantics<parallel>, #tpu.dimension_semantics<arbitrary>], iteration_bounds = array<i64: 1, 2>, scalar_prefetch = 0 : i64, scratch_operands = 0 : i64, tpu.core_type = #tpu.core_type<tc>, window_params = [{transform_indices = @transform_0, window_bounds = array<i64: 1, 18, 18, 4>}, {transform_indices = @transform_1, window_bounds = array<i64: 36, 128>}, {transform_indices = @transform_2, window_bounds = array<i64: 1, 256, 128>}, {transform_indices = @transform_3, window_bounds = array<i64: 2, 128>}]} {
    %c0_i32 = arith.constant 0 : i32
    %0 = arith.cmpi eq, %arg1, %c0_i32 : i32
    %1 = arith.extui %0 : i1 to i32
    %c0_i32_0 = arith.constant 0 : i32
    %2 = arith.cmpi ne, %1, %c0_i32_0 : i32
    scf.if %2 {
      %cst_66 = arith.constant 0.000000e+00 : f32
      %73 = vector.broadcast %cst_66 : f32 to vector<2x128xf32>
      %c0_67 = arith.constant 0 : index
      %c0_68 = arith.constant 0 : index
      %74 = vector.load %arg5[%c0_67, %c0_68] : memref<2x128xf32, #tpu.memory_space<vmem>>, vector<2x128xf32>
      tpu.vector_store %arg5[%c0_67, %c0_68], %73 {strides = array<i32>} : memref<2x128xf32, #tpu.memory_space<vmem>>, vector<2x128xf32>,
    } else {
    }
    %cst = arith.constant 0.000000e+00 : f32
    %3 = vector.broadcast %cst : f32 to vector<256x128xf32>
    %c0 = arith.constant 0 : index
    %c0_1 = arith.constant 0 : index
    %c0_2 = arith.constant 0 : index
    %c0_3 = arith.constant 0 : index
    %4 = vector.load %arg2[%c0, %c0_1, %c0_2, %c0_3] : memref<1x18x18x4xbf16, #tpu.memory_space<vmem>>, vector<1x16x16x4xbf16>
    %5 = vector.shape_cast %4 : vector<1x16x16x4xbf16> to vector<16x16x4xbf16>
    %6 = vector.shape_cast %5 : vector<16x16x4xbf16> to vector<256x4xbf16>
    %c0_4 = arith.constant 0 : index
    %c0_5 = arith.constant 0 : index
    %7 = vector.load %arg3[%c0_4, %c0_5] : memref<36x128xbf16, #tpu.memory_space<vmem>>, vector<4x128xbf16>
    %cst_6 = arith.constant dense<0.000000e+00> : vector<256x128xf32>
    %8 = tpu.matmul %6, %7, %cst_6 {dimension_numbers = #tpu.dot_dimension_numbers<[1], [0], [0], [1], [0, 0, 1, 1], [], []>} : vector<256x4xbf16>, vector<4x128xbf16>, vector<256x128xf32> -> vector<256x128xf32>
    %9 = arith.addf %3, %8 : vector<256x128xf32>
    %c0_7 = arith.constant 0 : index
    %c0_8 = arith.constant 0 : index
    %c1 = arith.constant 1 : index
    %c0_9 = arith.constant 0 : index
    %10 = vector.load %arg2[%c0_7, %c0_8, %c1, %c0_9] : memref<1x18x18x4xbf16, #tpu.memory_space<vmem>>, vector<1x16x16x4xbf16>
    %11 = vector.shape_cast %10 : vector<1x16x16x4xbf16> to vector<16x16x4xbf16>
    %12 = vector.shape_cast %11 : vector<16x16x4xbf16> to vector<256x4xbf16>
    %c4 = arith.constant 4 : index
    %c0_10 = arith.constant 0 : index
    %13 = vector.load %arg3[%c4, %c0_10] : memref<36x128xbf16, #tpu.memory_space<vmem>>, vector<4x128xbf16>
    %cst_11 = arith.constant dense<0.000000e+00> : vector<256x128xf32>
    %14 = tpu.matmul %12, %13, %cst_11 {dimension_numbers = #tpu.dot_dimension_numbers<[1], [0], [0], [1], [0, 0, 1, 1], [], []>} : vector<256x4xbf16>, vector<4x128xbf16>, vector<256x128xf32> -> vector<256x128xf32>
    %15 = arith.addf %9, %14 : vector<256x128xf32>
    %c0_12 = arith.constant 0 : index
    %c0_13 = arith.constant 0 : index
    %c2 = arith.constant 2 : index
    %c0_14 = arith.constant 0 : index
    %16 = vector.load %arg2[%c0_12, %c0_13, %c2, %c0_14] : memref<1x18x18x4xbf16, #tpu.memory_space<vmem>>, vector<1x16x16x4xbf16>
    %17 = vector.shape_cast %16 : vector<1x16x16x4xbf16> to vector<16x16x4xbf16>
    %18 = vector.shape_cast %17 : vector<16x16x4xbf16> to vector<256x4xbf16>
    %c8 = arith.constant 8 : index
    %c0_15 = arith.constant 0 : index
    %19 = vector.load %arg3[%c8, %c0_15] : memref<36x128xbf16, #tpu.memory_space<vmem>>, vector<4x128xbf16>
    %cst_16 = arith.constant dense<0.000000e+00> : vector<256x128xf32>
    %20 = tpu.matmul %18, %19, %cst_16 {dimension_numbers = #tpu.dot_dimension_numbers<[1], [0], [0], [1], [0, 0, 1, 1], [], []>} : vector<256x4xbf16>, vector<4x128xbf16>, vector<256x128xf32> -> vector<256x128xf32>
    %21 = arith.addf %15, %20 : vector<256x128xf32>
    %c0_17 = arith.constant 0 : index
    %c1_18 = arith.constant 1 : index
    %c0_19 = arith.constant 0 : index
    %c0_20 = arith.constant 0 : index
    %22 = vector.load %arg2[%c0_17, %c1_18, %c0_19, %c0_20] : memref<1x18x18x4xbf16, #tpu.memory_space<vmem>>, vector<1x16x16x4xbf16>
    %23 = vector.shape_cast %22 : vector<1x16x16x4xbf16> to vector<16x16x4xbf16>
    %24 = vector.shape_cast %23 : vector<16x16x4xbf16> to vector<256x4xbf16>
    %c12 = arith.constant 12 : index
    %c0_21 = arith.constant 0 : index
    %25 = vector.load %arg3[%c12, %c0_21] : memref<36x128xbf16, #tpu.memory_space<vmem>>, vector<4x128xbf16>
    %cst_22 = arith.constant dense<0.000000e+00> : vector<256x128xf32>
    %26 = tpu.matmul %24, %25, %cst_22 {dimension_numbers = #tpu.dot_dimension_numbers<[1], [0], [0], [1], [0, 0, 1, 1], [], []>} : vector<256x4xbf16>, vector<4x128xbf16>, vector<256x128xf32> -> vector<256x128xf32>
    %27 = arith.addf %21, %26 : vector<256x128xf32>
    %c0_23 = arith.constant 0 : index
    %c1_24 = arith.constant 1 : index
    %c1_25 = arith.constant 1 : index
    %c0_26 = arith.constant 0 : index
    %28 = vector.load %arg2[%c0_23, %c1_24, %c1_25, %c0_26] : memref<1x18x18x4xbf16, #tpu.memory_space<vmem>>, vector<1x16x16x4xbf16>
    %29 = vector.shape_cast %28 : vector<1x16x16x4xbf16> to vector<16x16x4xbf16>
    %30 = vector.shape_cast %29 : vector<16x16x4xbf16> to vector<256x4xbf16>
    %c16 = arith.constant 16 : index
    %c0_27 = arith.constant 0 : index
    %31 = vector.load %arg3[%c16, %c0_27] : memref<36x128xbf16, #tpu.memory_space<vmem>>, vector<4x128xbf16>
    %cst_28 = arith.constant dense<0.000000e+00> : vector<256x128xf32>
    %32 = tpu.matmul %30, %31, %cst_28 {dimension_numbers = #tpu.dot_dimension_numbers<[1], [0], [0], [1], [0, 0, 1, 1], [], []>} : vector<256x4xbf16>, vector<4x128xbf16>, vector<256x128xf32> -> vector<256x128xf32>
    %33 = arith.addf %27, %32 : vector<256x128xf32>
    %c0_29 = arith.constant 0 : index
    %c1_30 = arith.constant 1 : index
    %c2_31 = arith.constant 2 : index
    %c0_32 = arith.constant 0 : index
    %34 = vector.load %arg2[%c0_29, %c1_30, %c2_31, %c0_32] : memref<1x18x18x4xbf16, #tpu.memory_space<vmem>>, vector<1x16x16x4xbf16>
    %35 = vector.shape_cast %34 : vector<1x16x16x4xbf16> to vector<16x16x4xbf16>
    %36 = vector.shape_cast %35 : vector<16x16x4xbf16> to vector<256x4xbf16>
    %c20 = arith.constant 20 : index
    %c0_33 = arith.constant 0 : index
    %37 = vector.load %arg3[%c20, %c0_33] : memref<36x128xbf16, #tpu.memory_space<vmem>>, vector<4x128xbf16>
    %cst_34 = arith.constant dense<0.000000e+00> : vector<256x128xf32>
    %38 = tpu.matmul %36, %37, %cst_34 {dimension_numbers = #tpu.dot_dimension_numbers<[1], [0], [0], [1], [0, 0, 1, 1], [], []>} : vector<256x4xbf16>, vector<4x128xbf16>, vector<256x128xf32> -> vector<256x128xf32>
    %39 = arith.addf %33, %38 : vector<256x128xf32>
    %c0_35 = arith.constant 0 : index
    %c2_36 = arith.constant 2 : index
    %c0_37 = arith.constant 0 : index
    %c0_38 = arith.constant 0 : index
    %40 = vector.load %arg2[%c0_35, %c2_36, %c0_37, %c0_38] : memref<1x18x18x4xbf16, #tpu.memory_space<vmem>>, vector<1x16x16x4xbf16>
    %41 = vector.shape_cast %40 : vector<1x16x16x4xbf16> to vector<16x16x4xbf16>
    %42 = vector.shape_cast %41 : vector<16x16x4xbf16> to vector<256x4xbf16>
    %c24 = arith.constant 24 : index
    %c0_39 = arith.constant 0 : index
    %43 = vector.load %arg3[%c24, %c0_39] : memref<36x128xbf16, #tpu.memory_space<vmem>>, vector<4x128xbf16>
    %cst_40 = arith.constant dense<0.000000e+00> : vector<256x128xf32>
    %44 = tpu.matmul %42, %43, %cst_40 {dimension_numbers = #tpu.dot_dimension_numbers<[1], [0], [0], [1], [0, 0, 1, 1], [], []>} : vector<256x4xbf16>, vector<4x128xbf16>, vector<256x128xf32> -> vector<256x128xf32>
    %45 = arith.addf %39, %44 : vector<256x128xf32>
    %c0_41 = arith.constant 0 : index
    %c2_42 = arith.constant 2 : index
    %c1_43 = arith.constant 1 : index
    %c0_44 = arith.constant 0 : index
    %46 = vector.load %arg2[%c0_41, %c2_42, %c1_43, %c0_44] : memref<1x18x18x4xbf16, #tpu.memory_space<vmem>>, vector<1x16x16x4xbf16>
    %47 = vector.shape_cast %46 : vector<1x16x16x4xbf16> to vector<16x16x4xbf16>
    %48 = vector.shape_cast %47 : vector<16x16x4xbf16> to vector<256x4xbf16>
    %c28 = arith.constant 28 : index
    %c0_45 = arith.constant 0 : index
    %49 = vector.load %arg3[%c28, %c0_45] : memref<36x128xbf16, #tpu.memory_space<vmem>>, vector<4x128xbf16>
    %cst_46 = arith.constant dense<0.000000e+00> : vector<256x128xf32>
    %50 = tpu.matmul %48, %49, %cst_46 {dimension_numbers = #tpu.dot_dimension_numbers<[1], [0], [0], [1], [0, 0, 1, 1], [], []>} : vector<256x4xbf16>, vector<4x128xbf16>, vector<256x128xf32> -> vector<256x128xf32>
    %51 = arith.addf %45, %50 : vector<256x128xf32>
    %c0_47 = arith.constant 0 : index
    %c2_48 = arith.constant 2 : index
    %c2_49 = arith.constant 2 : index
    %c0_50 = arith.constant 0 : index
    %52 = vector.load %arg2[%c0_47, %c2_48, %c2_49, %c0_50] : memref<1x18x18x4xbf16, #tpu.memory_space<vmem>>, vector<1x16x16x4xbf16>
    %53 = vector.shape_cast %52 : vector<1x16x16x4xbf16> to vector<16x16x4xbf16>
    %54 = vector.shape_cast %53 : vector<16x16x4xbf16> to vector<256x4xbf16>
    %c32 = arith.constant 32 : index
    %c0_51 = arith.constant 0 : index
    %55 = vector.load %arg3[%c32, %c0_51] : memref<36x128xbf16, #tpu.memory_space<vmem>>, vector<4x128xbf16>
    %cst_52 = arith.constant dense<0.000000e+00> : vector<256x128xf32>
    %56 = tpu.matmul %54, %55, %cst_52 {dimension_numbers = #tpu.dot_dimension_numbers<[1], [0], [0], [1], [0, 0, 1, 1], [], []>} : vector<256x4xbf16>, vector<4x128xbf16>, vector<256x128xf32> -> vector<256x128xf32>
    %57 = arith.addf %51, %56 : vector<256x128xf32>
    %58 = arith.truncf %57 : vector<256x128xf32> to vector<256x128xbf16>
    %c0_53 = arith.constant 0 : index
    %c0_54 = arith.constant 0 : index
    %c0_55 = arith.constant 0 : index
    %59 = vector.load %arg4[%c0_53, %c0_54, %c0_55] : memref<1x256x128xbf16, #tpu.memory_space<vmem>>, vector<1x256x128xbf16>
    %60 = vector.shape_cast %59 : vector<1x256x128xbf16> to vector<256x128xbf16>
    %61 = vector.shape_cast %58 : vector<256x128xbf16> to vector<1x256x128xbf16>
    tpu.vector_store %arg4[%c0_53, %c0_54, %c0_55], %61 {strides = array<i32>} : memref<1x256x128xbf16, #tpu.memory_space<vmem>>, vector<1x256x128xbf16>,
    %c0_56 = arith.constant 0 : index
    %c0_57 = arith.constant 0 : index
    %62 = vector.load %arg5[%c0_56, %c0_57] : memref<2x128xf32, #tpu.memory_space<vmem>>, vector<1x128xf32>
    %cst_58 = arith.constant dense<0.000000e+00> : vector<128xf32>
    %63 = vector.multi_reduction <add>, %57, %cst_58 [0] : vector<256x128xf32> to vector<128xf32>
    %64 = vector.shape_cast %63 : vector<128xf32> to vector<1x128xf32>
    %65 = arith.addf %62, %64 : vector<1x128xf32>
    %c0_59 = arith.constant 0 : index
    %c0_60 = arith.constant 0 : index
    %66 = vector.load %arg5[%c0_59, %c0_60] : memref<2x128xf32, #tpu.memory_space<vmem>>, vector<1x128xf32>
    tpu.vector_store %arg5[%c0_59, %c0_60], %65 {strides = array<i32>} : memref<2x128xf32, #tpu.memory_space<vmem>>, vector<1x128xf32>,
    %c1_61 = arith.constant 1 : index
    %c0_62 = arith.constant 0 : index
    %67 = vector.load %arg5[%c1_61, %c0_62] : memref<2x128xf32, #tpu.memory_space<vmem>>, vector<1x128xf32>
    %68 = arith.mulf %57, %57 : vector<256x128xf32>
    %cst_63 = arith.constant dense<0.000000e+00> : vector<128xf32>
    %69 = vector.multi_reduction <add>, %68, %cst_63 [0] : vector<256x128xf32> to vector<128xf32>
    %70 = vector.shape_cast %69 : vector<128xf32> to vector<1x128xf32>
    %71 = arith.addf %67, %70 : vector<1x128xf32>
    %c1_64 = arith.constant 1 : index
    %c0_65 = arith.constant 0 : index
    %72 = vector.load %arg5[%c1_64, %c0_65] : memref<2x128xf32, #tpu.memory_space<vmem>>, vector<1x128xf32>
    tpu.vector_store %arg5[%c1_64, %c0_65], %71 {strides = array<i32>} : memref<2x128xf32, #tpu.memory_space<vmem>>, vector<1x128xf32>,
    return
  }
  func.func @transform_0(%arg0: i32, %arg1: i32) -> (i32, i32, i32, i32) {
    %c0_i32 = arith.constant 0 : i32
    %c0_i32_0 = arith.constant 0 : i32
    %c0_i32_1 = arith.constant 0 : i32
    %c0_i32_2 = arith.constant 0 : i32
    return %arg1, %c0_i32, %c0_i32_0, %c0_i32_1 : i32, i32, i32, i32
  }
  func.func @transform_1(%arg0: i32, %arg1: i32) -> (i32, i32) {
    %c0_i32 = arith.constant 0 : i32
    %c0_i32_0 = arith.constant 0 : i32
    return %c0_i32, %arg0 : i32, i32
  }
  func.func @transform_2(%arg0: i32, %arg1: i32) -> (i32, i32, i32) {
    %c0_i32 = arith.constant 0 : i32
    %c0_i32_0 = arith.constant 0 : i32
    return %arg1, %c0_i32, %arg0 : i32, i32, i32
  }
  func.func @transform_3(%arg0: i32, %arg1: i32) -> (i32, i32) {
    %c0_i32 = arith.constant 0 : i32
    %c0_i32_0 = arith.constant 0 : i32
    return %c0_i32, %arg0 : i32, i32
  }
}

</mosaic_0001>

<bundles_post_ra>
// kernel: tpu_custom_call.1
= control target key start
LH: loop header
LB: loop body
LE: loop exit
PB: predicated region body
PF: predicated region fallthrough
CT: control target
= control target key end

     0   :  { %9 = vsyncpa [#allocation3], 0  ;;  %s9200_s0 = inlined_call_operand.vmem [shape: bf16[2,18,18,4], index: 0, kind: input, shape index: {}]   ;;  %s9201_s1 = inlined_call_operand.vmem [shape: bf16[36,128], index: 1, kind: input, shape index: {}]   ;;  %s9202_s2 = inlined_call_operand.hbm [shape: bf16[2,256,128], index: 2, kind: output, shape index: {0}]   ;;  %s9203_s3 = inlined_call_operand.hbm [shape: f32[2,128], index: 3, kind: output, shape index: {1}]  }
   0x1   :  { %11 = vsyncpa [#allocation3 + $0x1], 0 }
   0x2   :  { %12 = vsyncpa [#allocation5], 0  ;;  %s6608_s12 = smov 0   ;;  %s6610_s13 = smov 0  }
   0x3   :  { %s6612_s14 = smov 0   ;;  %s6614_s15 = smov 0  }
   0x4   :  { %s6616_s16 = smov 0   ;;  %s6618_s17 = smov 0  }
   0x5 LB: > { %s5177_s18 = sadd.s32 4294967295, %s6581_s17   ;;  %s5178_s19 = sadd.s32 4294967294, %s6581_s17   ;;  %s6581_s17 = sphi %s6618_s17, %s18_s17   ;;  %s6577_s16 = sphi %s6616_s16, %s9432_s16   ;;  %s6573_s15 = sphi %s6614_s15, %s9431_s15   ;;  %s6569_s14 = sphi %s6612_s14, %s9430_s14   ;;  %s6565_s13 = sphi %s6610_s13, %s9429_s13   ;;  %s6561_s12 = sphi %s6608_s12, %s9428_s12  }
   0x6   : > { %s27_s20 = sadd.s32 1, %s6577_s16  ;;  %s91_s21 = sadd.s32 1, %s6569_s14 }
   0x7   : > { %p28_p0 = scmp.ge.s32.totalorder %s27_s20, 2  ;;  %p101_p1 = scmp.ne.s32.totalorder %s6569_s14, %s6565_s13 }
   0x8   : > { %p6644_p2 = scmp.eq.s32.totalorder %s5177_s18, 1  ;;  %p107_p3 = scmp.ne.s32.totalorder %s6565_s13, %s6561_s12 }
   0x9   : > { %s9434_s20 = smov (%p28_p0, %s27_s20), 0  ;;  %p108_p5 = scmp.eq.s32.totalorder %s5178_s19, 1 }
   0xa   : > { %p6654_p4 = por %p6644_p2, %p101_p1  ;;  %s86_s24 = ssub.s32 %s6577_s16, %s9434_s20 }
   0xb   : > { %p5182_p6 = scmp.ge.s32.totalorder %s6581_s17, 1  ;;  %p89_p7 = scmp.eq.s32.totalorder %s86_s24, 0 }
   0xc   : > { %p6661_p8 = por %p108_p5, %p107_p3  ;;  %p167_p9 = scmp.lt.s32.totalorder %s6581_s17, 3 }
   0xd   : > { %s6667_s26 = scalar_select %p89_p7, %s6569_s14, %s91_s21  }
   0xe   : > { %p168_p10 = pnand %p5182_p6, %p167_p9 }
  0x10   : > { %171 = sbr.rel (%p168_p10) target bundleno = 605 (0x25d), region = 28 }
  0x15   : > { %s190_s27 = sand.u32 1, %s6565_s13   ;;  %p195_p11 = scmp.lt.s32.totalorder %s6573_s15, 1 }
  0x16   : > { %s5183_s28 = sshll.u32 %s190_s27, 7  ;;  %p5185_p12 = scmp.ne.s32.totalorder %s6573_s15, 0 }
  0x17   : > { %s196_s29 = scalar_select %p195_p11, %s6573_s15, 1 }
  0x18   : > { %s6679_s7 = scalar_lea.vmem [#allocation2], %s5183_s28  ;;  %208 = sbr.rel (%p5185_p12) target bundleno = 31 (0x1f), region = 32 }
  0x19   : > { %s6356_s30 = smul.u32 216, %s196_s29 }
  0x1b   : > { %s6677_s6 = scalar_lea.vmem %s9200_s0, %s6356_s30 }
  0x1d   : > { %v6583_v0 = vmov 0.0  }
  0x1e   : > { %209 = vst [vmem:[#allocation4] sm:$0x3] %v6583_v0 }
  0x1f PF: > { %v6422_v1 = vld [vmem:[%s9201_s1] ss:$0 sps:$4 sm:$0xcc]   ;;  %vm748_vm0 = vcmask 1041408   ;;  %v6689_v3 = vld [vmem:[%s6677_s6 + $0x4] sm:$0xf] }
  0x20   : > { %v6686_v2 = vld [vmem:[%s6677_s6] sm:$0xf]  ;;  %v6692_v4 = vld [vmem:[%s6677_s6 + $0x8] sm:$0x1]  ;;  %v698_v5 = vrot.slane %v6422_v1, 2  ;;  %v272_v8 = vshll.u32 %v6689_v3, 16 }
  0x21   : > { %vm259_vm1 = vsmask.f32 3328  ;;  %v263_v6 = vshrl.u32 %v6686_v2, 16  ;;  %v266_v7 = vshll.u32 %v6686_v2, 16  ;;  %v276_v9 = vshrl.u32 %v6689_v3, 16  ;;  %s5064_s19 = sshll.u32 %s6679_s7, 4  ;;  %s9138_s19 = int_to_ptr.vmem [resolvable:$true] %s5064_s19 }
  0x22   : > { %v282_v10 = vshll.u32 %v6692_v4, 16  ;;  %v6700_v11 = vld [vmem:[%s6677_s6 + $0x60] sm:$0xf]  ;;  %6347 = vmatprep.subr.msk.bf16.mxu1 %vm748_vm0, %v698_v5  ;;  %6346 = vmatprep.subr.msk.bf16.mxu0 %vm748_vm0, %v698_v5  ;;  %v750_v12 = vsel %vm748_vm0, %v698_v5, 0  ;;  %vm260_vm2 = vsmask.f32 7440 }
  0x23   : > { %v265_v13 = vrot.slane %v263_v6, 4  ;;  %v6706_v14 = vld [vmem:[%s6677_s6 + $0x64] sm:$0xf]  ;;  %6345 = vmatpush3.bf16.msra.mxu1 %v750_v12  ;;  %6039 = vmatpush3.bf16.msra.mxu0 %v750_v12  ;;  %v268_v15 = vrot.slane %v266_v7, 5  ;;  %v274_v16 = vrot.slane %v272_v8, 5  ;;  %v278_v17 = vrot.slane %v276_v9, 4  ;;  %vm6728_vm4 = vmor %vm259_vm1, %vm260_vm2 }
  0x24   : > { %vm699_vm3 = vcmask 31744   ;;  %v6709_v18 = vld [vmem:[%s6677_s6 + $0x68] sm:$0x1]  ;;  %v455_v19 = vshrl.u32 %v6700_v11, 16  ;;  %v458_v20 = vshll.u32 %v6700_v11, 16  ;;  %v464_v21 = vshll.u32 %v6706_v14, 16 }
  0x25   : > { %v468_v22 = vshrl.u32 %v6706_v14, 16  ;;  %v242_v23 = vld [vmem:[%s9201_s1] sm:$0x3]  ;;  %v269_v24 = vor.u32 %v268_v15, %v265_v13  ;;  %v279_v25 = vor.u32 %v278_v17, %v274_v16  ;;  %v284_v26 = vrot.slane %v282_v10, 5  ;;  %v6721_v28 = vld [vmem:[%s6677_s6 + $0xc] sm:$0xf] }
  0x26   : > { %v474_v27 = vshll.u32 %v6709_v18, 16  ;;  %6348 = vmatprep.subr.msk.bf16.mxu1 %vm748_vm0, %v242_v23  ;;  %v6724_v29 = vld [vmem:[%s6677_s6 + $0x10] sm:$0xf]  ;;  %v457_v31 = vrot.slane %v455_v19, 4  ;;  %v460_v32 = vrot.slane %v458_v20, 5  ;;  %v466_v33 = vrot.slane %v464_v21, 5 }
  0x27   : > { %v470_v34 = vrot.slane %v468_v22, 4  ;;  %v270_v35 = vrot.slane %v269_v24, 4  ;;  %v280_v36 = vrot.slane %v279_v25, 4  ;;  %v287_v38 = vshrl.u32 %v6721_v28, 16  ;;  %v6734_v41 = vld [vmem:[%s6677_s6 + $0x14] sm:$0x1] }
  0x28   : > { %v476_v37 = vrot.slane %v474_v27, 5  ;;  %v461_v39 = vor.u32 %v460_v32, %v457_v31  ;;  %v290_v42 = vshll.u32 %v6721_v28, 16  ;;  %v296_v43 = vshll.u32 %v6724_v29, 16  ;;  %v1368_v48 = vld [vmem:[%s9201_s1 + $0x4] sm:$0x3]  ;;  %s6477_s29 = scalar_lea.vmem %s9138_s19, 2048 }
  0x29   : > { %v471_v40 = vor.u32 %v470_v34, %v466_v33  ;;  %v275_v44 = vsel %vm6728_vm4, %v270_v35, %v274_v16  ;;  %v285_v45 = vsel %vm6728_vm4, %v280_v36, %v284_v26  ;;  %v289_v46 = vrot.slane %v287_v38, 4  ;;  %v228_v53 = vld [vmem:[%s6677_s6 + $0x6c] sm:$0xf]  ;;  %6349 = vmatprep.subr.msk.bf16.mxu0 %vm748_vm0, %v1368_v48  ;;  %v6751_v58 = vld [vmem:[%s6677_s6 + $0x70] sm:$0xf]  ;;  %p6478_p13 = scmp.ne.s32.totalorder %s9138_s19, %s6477_s29  ;;  %s6584_s30 = smov [#allocation2]  }
  0x2a   : > { %v300_v47 = vshrl.u32 %v6724_v29, 16  ;;  %v5186_v49 = vcombine.low %v275_v44, %v285_v45  ;;  %v462_v50 = vrot.slane %v461_v39, 4  ;;  %v292_v52 = vrot.slane %v290_v42, 5  ;;  %v6760_v63 = vld [vmem:[%s6677_s6 + $0x74] sm:$0x1]  ;;  %s6481_s4 = sshll.u32 %s6584_s30, 4  ;;  %s6482_s4 = int_to_ptr.vmem [resolvable:$false] %s6481_s4 }
  0x2b   : > { %v472_v51 = vrot.slane %v471_v40, 4  ;;  %v298_v55 = vrot.slane %v296_v43, 5  ;;  %v306_v57 = vshll.u32 %v6734_v41, 16  ;;  %v479_v6 = vshrl.u32 %v228_v53, 16  ;;  %v6765_v12 = vld [vmem:[%s6677_s6 + $0x18] sm:$0xf]  ;;  %p6479_p0 = pnand %p6478_p13, %p6654_p4  ;;  %p6484_p3 = scmp.lt.s32.totalorder %s9138_s19, %s6482_s4 }
  0x2c   : > { %v302_v56 = vrot.slane %v300_v47, 4  ;;  %6040 = vmatprep.mubr.msk.bf16.mxu0 %vm699_vm3, %v5186_v49  ;;  %v467_v59 = vsel %vm6728_vm4, %v462_v50, %v466_v33  ;;  %v293_v61 = vor.u32 %v292_v52, %v289_v46  ;;  %v482_v8 = vshll.u32 %v228_v53, 16  ;;  %v6771_v19 = vld [vmem:[%s6677_s6 + $0x1c] sm:$0xf]  ;;  %v6776_v25 = vld [vmem:[%s6677_s6 + $0x20] sm:$0x1] }
  0x2d   : > { %v477_v60 = vsel %vm6728_vm4, %v472_v51, %v476_v37  ;;  %v308_v5 = vrot.slane %v306_v57, 5  ;;  %v488_v9 = vshll.u32 %v6751_v58, 16  ;;  %v492_v10 = vshrl.u32 %v6751_v58, 16  ;;  %v6783_v32 = vld [vmem:[%s6677_s6 + $0x78] sm:$0xf]  ;;  %p6480_p1 = pneg %p6479_p0  ;;  %s6483_s5 = scalar_lea.vmem %s6482_s4, 4096 }
  0x2e   : > { %v5194_v0 = vcombine.low %v467_v59, %v477_v60  ;;  %v303_v1 = vor.u32 %v302_v56, %v298_v55  ;;  %v294_v7 = vrot.slane %v293_v61, 4  ;;  %v481_v15 = vrot.slane %v479_v6, 4  ;;  %9237 = vst [vmem:[#allocation8_spill] sm:$0xff] %v6783_v32  ;;  %v6790_v42 = vld [vmem:[%s6677_s6 + $0x7c] sm:$0xf]  ;;  %p6485_p5 = scmp.lt.s32.totalorder %s6483_s5, %s6477_s29 }
  0x2f   : > { %v498_v16 = vshll.u32 %v6760_v63, 16  ;;  %v1042_v17 = vsel %vm748_vm0, %v242_v23, 0  ;;  %v484_v21 = vrot.slane %v482_v8, 5  ;;  %v490_v22 = vrot.slane %v488_v9, 5  ;;  %v6794_v46 = vld [vmem:[%s6677_s6 + $0x80] sm:$0x1] }
  0x30   : > { %6056 = vmatprep.mubr.msk.bf16.mxu1 %vm699_vm3, %v5194_v0  ;;  %v304_v13 = vrot.slane %v303_v1, 4  ;;  %v299_v20 = vsel %vm6728_vm4, %v294_v7, %v298_v55  ;;  %v494_v24 = vrot.slane %v492_v10, 4  ;;  %v1466_v31 = vsel %vm748_vm0, %v1368_v48, 0  ;;  %v6799_v52 = vld [vmem:[%s6677_s6 + $0x24] sm:$0xf]  ;;  %p6486_p6 = por %p6485_p5, %p6484_p3 }
  0x31   : > { %v500_v27 = vrot.slane %v498_v16, 5  ;;  %v311_v23 = vshrl.u32 %v6765_v12, 16  ;;  %v485_v34 = vor.u32 %v484_v21, %v481_v15  ;;  %v314_v36 = vshll.u32 %v6765_v12, 16  ;;  %v6809_v7 = vld [vmem:[%s6677_s6 + $0x28] sm:$0xf] }
  0x32   : > { %v309_v26 = vsel %vm6728_vm4, %v304_v13, %v308_v5  ;;  %v495_v35 = vor.u32 %v494_v24, %v490_v22  ;;  %v320_v38 = vshll.u32 %v6771_v19, 16  ;;  %v324_v39 = vshrl.u32 %v6771_v19, 16  ;;  %v6814_v15 = vld [vmem:[%s6677_s6 + $0x2c] sm:$0x1]  ;;  %v6954_v62 = vld [vmem:[%s6677_s6 + $0xb0] sm:$0x1]  ;;  %p6487_p7 = pnand %p6486_p6, %p6480_p1 }
  0x33   : > { %v5187_v33 = vcombine.low %v299_v20, %v309_v26  ;;  %v313_v37 = vrot.slane %v311_v23, 4  ;;  %v330_v40 = vshll.u32 %v6776_v25, 16  ;;  %v486_v43 = vrot.slane %v485_v34, 4  ;;  %v6820_v26 = vld [vmem:[%s6677_s6 + $0x84] sm:$0xf]  ;;  %9243 = vst [vmem:[#allocation14_spill] sm:$0xff] %v6954_v62 }
  0x34   : > { %v496_v44 = vrot.slane %v495_v35, 4  ;;  %v316_v45 = vrot.slane %v314_v36, 5  ;;  %v503_v47 = vshrl.u32 %v6783_v32, 16  ;;  %v322_v48 = vrot.slane %v320_v38, 5 }
  0x35   : > { %6041 = vmatmul.mubr.msk.bf16.vlgmr.msra.gmra.mxu0 %vm699_vm3, %v5187_v33  ;;  %v326_v49 = vrot.slane %v324_v39, 4  ;;  %v332_v50 = vrot.slane %v330_v40, 5  ;;  %v506_v51 = vshll.u32 %v6783_v32, 16  ;;  %v491_v53 = vsel %vm6728_vm4, %v486_v43, %v490_v22  ;;  %v6833_v43 = vld [vmem:[%s6677_s6 + $0x8c] sm:$0x1] }
  0x36   : > { %6107 = vmatpush3.bf16.msra.mxu0 %v1466_v31  ;;  %v501_v55 = vsel %vm6728_vm4, %v496_v44, %v500_v27  ;;  %v317_v56 = vor.u32 %v316_v45, %v313_v37  ;;  %v505_v57 = vrot.slane %v503_v47, 4  ;;  %v512_v0 = vshll.u32 %v6790_v42, 16  ;;  %v6828_v37 = vld [vmem:[%s6677_s6 + $0x88] sm:$0xf] }
  0x37   : > { %v5195_v59 = vcombine.low %v491_v53, %v501_v55  ;;  %v327_v60 = vor.u32 %v326_v49, %v322_v48  ;;  %v508_v61 = vrot.slane %v506_v51, 5  ;;  %v516_v5 = vshrl.u32 %v6790_v42, 16 }
  0x38   : > { %v318_v1 = vrot.slane %v317_v56, 4  ;;  %v522_v6 = vshll.u32 %v6794_v46, 16  ;;  %v335_v8 = vshrl.u32 %v6799_v52, 16  ;;  %v514_v13 = vrot.slane %v512_v0, 5  ;;  %v6841_v56 = vld [vmem:[%s6677_s6 + $0x30] sm:$0xf] }
  0x39   : > { %6057 = vmatmul.mubr.msk.bf16.vlgmr.msra.gmra.mxu1 %vm699_vm3, %v5195_v59  ;;  %v328_v9 = vrot.slane %v327_v60, 4  ;;  %v509_v10 = vor.u32 %v508_v61, %v505_v57  ;;  %v338_v16 = vshll.u32 %v6799_v52, 16  ;;  %v518_v21 = vrot.slane %v516_v5, 4  ;;  %v6847_v0 = vld [vmem:[%s6677_s6 + $0x34] sm:$0xf] }
  0x3a   : > { %6073 = vmatpush3.bf16.msra.mxu1 %v1042_v17  ;;  %v323_v20 = vsel %vm6728_vm4, %v318_v1, %v322_v48  ;;  %v524_v22 = vrot.slane %v522_v6, 5  ;;  %v337_v24 = vrot.slane %v335_v8, 4  ;;  %v344_v33 = vshll.u32 %v6809_v7, 16 }
  0x3b   : > { %v333_v27 = vsel %vm6728_vm4, %v328_v9, %v332_v50  ;;  %v510_v31 = vrot.slane %v509_v10, 4  ;;  %v340_v23 = vrot.slane %v338_v16, 5  ;;  %v519_v35 = vor.u32 %v518_v21, %v514_v13  ;;  %v6852_v9 = vld [vmem:[%s6677_s6 + $0x38] sm:$0x1] }
  0x3c   : > { %v5188_v34 = vcombine.low %v323_v20, %v333_v27  ;;  %v348_v17 = vshrl.u32 %v6809_v7, 16  ;;  %v354_v36 = vshll.u32 %v6814_v15, 16  ;;  %v346_v40 = vrot.slane %v344_v33, 5 }
  0x3d   : > { %v515_v38 = vsel %vm6728_vm4, %v510_v31, %v514_v13  ;;  %v341_v39 = vor.u32 %v340_v23, %v337_v24  ;;  %v527_v44 = vshrl.u32 %v6820_v26, 16  ;;  %v520_v45 = vrot.slane %v519_v35, 4  ;;  %v6860_v31 = vld [vmem:[%s6677_s6 + $0x90] sm:$0xf] }
  0x3e   : > { %6044 = vmatprep.mubr.msk.bf16.mxu0 %vm699_vm3, %v5188_v34  ;;  %v350_v47 = vrot.slane %v348_v17, 4  ;;  %v356_v48 = vrot.slane %v354_v36, 5  ;;  %v530_v49 = vshll.u32 %v6820_v26, 16  ;;  %v536_v53 = vshll.u32 %v6828_v37, 16  ;;  %v6866_v17 = vld [vmem:[%s6677_s6 + $0x94] sm:$0xf] }
  0x3f   : > { %v342_v50 = vrot.slane %v341_v39, 4  ;;  %v529_v51 = vrot.slane %v527_v44, 4  ;;  %v540_v55 = vshrl.u32 %v6828_v37, 16  ;;  %v525_v57 = vsel %vm6728_vm4, %v520_v45, %v524_v22 }
  0x40   : > { %v351_v59 = vor.u32 %v350_v47, %v346_v40  ;;  %v532_v60 = vrot.slane %v530_v49, 5  ;;  %v546_v61 = vshll.u32 %v6833_v43, 16  ;;  %v5196_v1 = vcombine.low %v515_v38, %v525_v57  ;;  %v6871_v49 = vld [vmem:[%s6677_s6 + $0x98] sm:$0x1]  ;;  %v6880_v57 = vld [vmem:[%s6677_s6 + $0x3c] sm:$0xf] }
  0x41   : > { %v347_v5 = vsel %vm6728_vm4, %v342_v50, %v346_v40  ;;  %v538_v6 = vrot.slane %v536_v53, 5  ;;  %v542_v8 = vrot.slane %v540_v55, 4  ;;  %v359_v20 = vshrl.u32 %v6841_v56, 16 }
  0x42   : > { %v352_v10 = vrot.slane %v351_v59, 4  ;;  %v533_v13 = vor.u32 %v532_v60, %v529_v51  ;;  %v548_v16 = vrot.slane %v546_v61, 5  ;;  %6060 = vmatprep.mubr.msk.bf16.mxu1 %vm699_vm3, %v5196_v1  ;;  %v362_v22 = vshll.u32 %v6841_v56, 16  ;;  %v6885_v59 = vld [vmem:[%s9201_s1 + $0x8] sm:$0x3] }
  0x43   : > { %v543_v21 = vor.u32 %v542_v8, %v538_v6  ;;  %v368_v24 = vshll.u32 %v6847_v0, 16  ;;  %v372_v27 = vshrl.u32 %v6847_v0, 16  ;;  %v361_v34 = vrot.slane %v359_v20, 4  ;;  %6351 = vmatprep.subr.msk.bf16.mxu0 %vm748_vm0, %v6885_v59 }
  0x44   : > { %v357_v23 = vsel %vm6728_vm4, %v352_v10, %v356_v48  ;;  %v534_v33 = vrot.slane %v533_v13, 4  ;;  %v378_v35 = vshll.u32 %v6852_v9, 16  ;;  %v364_v39 = vrot.slane %v362_v22, 5 }
  0x45   : > { %v5189_v36 = vcombine.low %v347_v5, %v357_v23  ;;  %v544_v38 = vrot.slane %v543_v21, 4  ;;  %v370_v40 = vrot.slane %v368_v24, 5  ;;  %v374_v45 = vrot.slane %v372_v27, 4 }
  0x46   : > { %v539_v44 = vsel %vm6728_vm4, %v534_v33, %v538_v6  ;;  %v380_v47 = vrot.slane %v378_v35, 5  ;;  %v551_v48 = vshrl.u32 %v6860_v31, 16  ;;  %v365_v51 = vor.u32 %v364_v39, %v361_v34  ;;  %v6889_v6 = vld [vmem:[%s6677_s6 + $0x40] sm:$0xf]  ;;  %v6900_v34 = vld [vmem:[%s6677_s6 + $0x44] sm:$0x1] }
  0x47   : > { %6045 = vmatmul.mubr.msk.bf16.gmra.mxu0 %vm699_vm3, %v5189_v36  ;;  %v549_v50 = vsel %vm6728_vm4, %v544_v38, %v548_v16  ;;  %v554_v53 = vshll.u32 %v6860_v31, 16  ;;  %v560_v55 = vshll.u32 %v6866_v17, 16  ;;  %v375_v61 = vor.u32 %v374_v45, %v370_v40  ;;  %v6904_v36 = vld [vmem:[%s6677_s6 + $0x9c] sm:$0xf] }
  0x48   : > { %v5197_v60 = vcombine.low %v539_v44, %v549_v50  ;;  %v553_v1 = vrot.slane %v551_v48, 4  ;;  %v564_v5 = vshrl.u32 %v6866_v17, 16  ;;  %v366_v8 = vrot.slane %v365_v51, 4  ;;  %9238 = vst [vmem:[#allocation9_spill] sm:$0xff] %v6904_v36  ;;  %v6909_v48 = vld [vmem:[%s6677_s6 + $0xa0] sm:$0xf] }
  0x49   : > { %v556_v10 = vrot.slane %v554_v53, 5  ;;  %v562_v13 = vrot.slane %v560_v55, 5  ;;  %v570_v16 = vshll.u32 %v6871_v49, 16  ;;  %v376_v20 = vrot.slane %v375_v61, 4  ;;  %9239 = vst [vmem:[#allocation10_spill] sm:$0xff] %v6909_v48 }
  0x4a   : > { %6061 = vmatmul.mubr.msk.bf16.gmra.mxu1 %vm699_vm3, %v5197_v60  ;;  %v566_v21 = vrot.slane %v564_v5, 4  ;;  %v383_v22 = vshrl.u32 %v6880_v57, 16  ;;  %v386_v24 = vshll.u32 %v6880_v57, 16  ;;  %v371_v27 = vsel %vm6728_vm4, %v366_v8, %v370_v40 }
  0x4b   : > { %v557_v23 = vor.u32 %v556_v10, %v553_v1  ;;  %v572_v33 = vrot.slane %v570_v16, 5  ;;  %v392_v35 = vshll.u32 %v6889_v6, 16  ;;  %v381_v38 = vsel %vm6728_vm4, %v376_v20, %v380_v47  ;;  %v6914_v1 = vld [vmem:[%s6677_s6 + $0xa4] sm:$0x1]  ;;  %v6923_v20 = vld [vmem:[%s6677_s6 + $0x48] sm:$0xf] }
  0x4c   : > { %v567_v39 = vor.u32 %v566_v21, %v562_v13  ;;  %v385_v44 = vrot.slane %v383_v22, 4  ;;  %v388_v45 = vrot.slane %v386_v24, 5  ;;  %v5190_v50 = vcombine.low %v371_v27, %v381_v38  ;;  %9240 = vst [vmem:[#allocation11_spill] sm:$0xff] %v6914_v1 }
  0x4d   : > { %v558_v40 = vrot.slane %v557_v23, 4  ;;  %v394_v51 = vrot.slane %v392_v35, 5  ;;  %v396_v53 = vshrl.u32 %v6889_v6, 16  ;;  %v402_v61 = vshll.u32 %v6900_v34, 16  ;;  %v6928_v23 = vld [vmem:[%s6677_s6 + $0x4c] sm:$0xf] }
  0x4e   : > { %v568_v55 = vrot.slane %v567_v39, 4  ;;  %v389_v60 = vor.u32 %v388_v45, %v385_v44  ;;  %v575_v47 = vshrl.u32 %v6904_v36, 16  ;;  %6048 = vmatprep.mubr.msk.bf16.mxu0 %vm699_vm3, %v5190_v50  ;;  %v578_v10 = vshll.u32 %v6904_v36, 16  ;;  %v6931_v44 = vld [vmem:[%s6677_s6 + $0x50] sm:$0x1] }
  0x4f   : > { %v563_v5 = vsel %vm6728_vm4, %v558_v40, %v562_v13  ;;  %v398_v8 = vrot.slane %v396_v53, 4  ;;  %v584_v16 = vshll.u32 %v6909_v48, 16  ;;  %v404_v24 = vrot.slane %v402_v61, 5 }
  0x50   : > { %v573_v21 = vsel %vm6728_vm4, %v568_v55, %v572_v33  ;;  %v390_v22 = vrot.slane %v389_v60, 4  ;;  %v577_v27 = vrot.slane %v575_v47, 4  ;;  %v580_v39 = vrot.slane %v578_v10, 5  ;;  %v6943_v10 = vld [vmem:[%s6677_s6 + $0xa8] sm:$0xf] }
  0x51   : > { %v5198_v35 = vcombine.low %v563_v5, %v573_v21  ;;  %v399_v38 = vor.u32 %v398_v8, %v394_v51  ;;  %v586_v13 = vrot.slane %v584_v16, 5  ;;  %v588_v50 = vshrl.u32 %v6909_v48, 16  ;;  %9241 = vst [vmem:[#allocation12_spill] sm:$0xff] %v6943_v10 }
  0x52   : > { %v395_v45 = vsel %vm6728_vm4, %v390_v22, %v394_v51  ;;  %v594_v40 = vshll.u32 %v6914_v1, 16  ;;  %v407_v33 = vshrl.u32 %v6923_v20, 16  ;;  %v581_v55 = vor.u32 %v580_v39, %v577_v27  ;;  %v6948_v27 = vld [vmem:[%s6677_s6 + $0xac] sm:$0xf] }
  0x53   : > { %6064 = vmatprep.mubr.msk.bf16.mxu1 %vm699_vm3, %v5198_v35  ;;  %v400_v53 = vrot.slane %v399_v38, 4  ;;  %v410_v60 = vshll.u32 %v6923_v20, 16  ;;  %v416_v61 = vshll.u32 %v6928_v23, 16  ;;  %v590_v47 = vrot.slane %v588_v50, 4  ;;  %9242 = vst [vmem:[#allocation13_spill] sm:$0xff] %v6948_v27 }
  0x54   : > { %v596_v5 = vrot.slane %v594_v40, 5  ;;  %v409_v8 = vrot.slane %v407_v33, 4  ;;  %v420_v51 = vshrl.u32 %v6928_v23, 16  ;;  %v582_v21 = vrot.slane %v581_v55, 4 }
  0x55   : > { %v405_v16 = vsel %vm6728_vm4, %v400_v53, %v404_v24  ;;  %v412_v22 = vrot.slane %v410_v60, 5  ;;  %v418_v35 = vrot.slane %v416_v61, 5  ;;  %v591_v39 = vor.u32 %v590_v47, %v586_v13  ;;  %v6959_v53 = vld [vmem:[%s6677_s6 + $0x54] sm:$0xf] }
  0x56   : > { %v5191_v38 = vcombine.low %v395_v45, %v405_v16  ;;  %v422_v54 = vrot.slane %v420_v51, 4  ;;  %v426_v50 = vshll.u32 %v6931_v44, 16  ;;  %v587_v40 = vsel %vm6728_vm4, %v582_v21, %v586_v13 }
  0x57   : > { %v413_v33 = vor.u32 %v412_v22, %v409_v8  ;;  %v599_v32 = vshrl.u32 %v6943_v10, 16  ;;  %v602_v24 = vshll.u32 %v6943_v10, 16  ;;  %v592_v45 = vrot.slane %v591_v39, 4 }
  0x58   : > { %6049 = vmatmul.mubr.msk.bf16.gmra.mxu0 %vm699_vm3, %v5191_v38  ;;  %v423_v55 = vor.u32 %v422_v54, %v418_v35  ;;  %v428_v60 = vrot.slane %v426_v50, 5  ;;  %v608_v61 = vshll.u32 %v6948_v27, 16  ;;  %v612_v51 = vshrl.u32 %v6948_v27, 16  ;;  %v6968_v38 = vld [vmem:[%s6677_s6 + $0x58] sm:$0xf] }
  0x59   : > { %v414_v47 = vrot.slane %v413_v33, 4  ;;  %v601_v13 = vrot.slane %v599_v32, 4  ;;  %v604_v8 = vrot.slane %v602_v24, 5  ;;  %v597_v16 = vsel %vm6728_vm4, %v592_v45, %v596_v5  ;;  %v6973_v32 = vld [vmem:[%s6677_s6 + $0x5c] sm:$0x1] }
  0x5a   : > { %v424_v21 = vrot.slane %v423_v55, 4  ;;  %v610_v22 = vrot.slane %v608_v61, 5  ;;  %v618_v10 = vshll.u32 %v6954_v62, 16  ;;  %v5199_v54 = vcombine.low %v587_v40, %v597_v16  ;;  %v6980_v55 = vld [vmem:[%s6677_s6 + $0xb4] sm:$0xf] }
  0x5b   : > { %v419_v39 = vsel %vm6728_vm4, %v414_v47, %v418_v35  ;;  %v605_v50 = vor.u32 %v604_v8, %v601_v13  ;;  %v614_v33 = vrot.slane %v612_v51, 4  ;;  %v431_v5 = vshrl.u32 %v6959_v53, 16  ;;  %9244 = vst [vmem:[#allocation15_spill] sm:$0xff] %v6980_v55  ;;  %v7000_v62 = vld [vmem:[%s9201_s1 + $0x4] ss:$0 sps:$4 sm:$0xcc]  }
  0x5c   : > { %v429_v24 = vsel %vm6728_vm4, %v424_v21, %v428_v60  ;;  %v620_v27 = vrot.slane %v618_v10, 5  ;;  %v434_v45 = vshll.u32 %v6959_v53, 16  ;;  %6065 = vmatmul.mubr.msk.bf16.gmra.mxu1 %vm699_vm3, %v5199_v54  ;;  %v440_v47 = vshll.u32 %v6968_v38, 16  ;;  %v6987_v60 = vld [vmem:[%s6677_s6 + $0xb8] sm:$0xf] }
  0x5d   : > { %v5192_v40 = vcombine.low %v419_v39, %v429_v24  ;;  %v606_v35 = vrot.slane %v605_v50, 4  ;;  %v615_v61 = vor.u32 %v614_v33, %v610_v22  ;;  %v433_v13 = vrot.slane %v431_v5, 4  ;;  %v6993_v39 = vld [vmem:[%s6677_s6 + $0xbc] sm:$0x1] }
  0x5e   : > { %v436_v8 = vrot.slane %v434_v45, 5  ;;  %v444_v51 = vshrl.u32 %v6968_v38, 16  ;;  %v450_v10 = vshll.u32 %v6973_v32, 16  ;;  %v442_v54 = vrot.slane %v440_v47, 5 }
  0x5f   : > { %6052 = vmatprep.mubr.msk.bf16.mxu0 %vm699_vm3, %v5192_v40  ;;  %v611_v16 = vsel %vm6728_vm4, %v606_v35, %v610_v22  ;;  %v616_v21 = vrot.slane %v615_v61, 4  ;;  %v623_v50 = vshrl.u32 %v6980_v55, 16  ;;  %v626_v45 = vshll.u32 %v6980_v55, 16 }
  0x60   : > { %v437_v33 = vor.u32 %v436_v8, %v433_v13  ;;  %v446_v24 = vrot.slane %v444_v51, 4  ;;  %v452_v5 = vrot.slane %v450_v10, 5  ;;  %v632_v35 = vshll.u32 %v6987_v60, 16  ;;  %v1205_v10 = vld [vmem:[%s6677_s6] sm:$0xe] }
  0x61   : > { %v621_v22 = vsel %vm6728_vm4, %v616_v21, %v620_v27  ;;  %v625_v40 = vrot.slane %v623_v50, 4  ;;  %v636_v61 = vshrl.u32 %v6987_v60, 16  ;;  %v628_v51 = vrot.slane %v626_v45, 5 }
  0x62   : > { %v5200_v47 = vcombine.low %v611_v16, %v621_v22  ;;  %v438_v13 = vrot.slane %v437_v33, 4  ;;  %v447_v8 = vor.u32 %v446_v24, %v442_v54  ;;  %v1268_v55 = vrot.slane %v6734_v41, 5  ;;  %v1206_v16 = vld [vmem:[%s6677_s6 + $0xc] sm:$0xe] }
  0x63   : > { %v634_v1 = vrot.slane %v632_v35, 5  ;;  %v638_v36 = vrot.slane %v636_v61, 4  ;;  %v642_v48 = vshll.u32 %v6993_v39, 16  ;;  %v629_v50 = vor.u32 %v628_v51, %v625_v40 }
  0x64   : > { %6068 = vmatprep.mubr.msk.bf16.mxu1 %vm699_vm3, %v5200_v47  ;;  %v443_v27 = vsel %vm6728_vm4, %v438_v13, %v442_v54  ;;  %v448_v21 = vrot.slane %v447_v8, 4  ;;  %vm1253_vm5 = vcmask 1042432   ;;  %vm1254_vm6 = vcmask 1046532   ;;  %v1207_v13 = vld [vmem:[%s6677_s6 + $0x18] sm:$0xe] }
  0x65   : > { %v639_v33 = vor.u32 %v638_v36, %v634_v1  ;;  %v644_v24 = vrot.slane %v642_v48, 5  ;;  %v5251_v45 = vrot.slane %v1205_v10, 9  ;;  %v630_v22 = vrot.slane %v629_v50, 4  ;;  %vm7015_vm7 = vmor %vm1253_vm5, %vm1254_vm6 }
  0x66   : > { %v453_v41 = vsel %vm6728_vm4, %v448_v21, %v452_v5  ;;  %v1258_v61 = vrot.slane %v6689_v3, 5  ;;  %v1778_v54 = vrot.slane %v7000_v62, 2  ;;  %v5220_v36 = vcombine.low %v6721_v28, %v6724_v29 }
  0x67   : > { %v5193_v40 = vcombine.low %v443_v27, %v453_v41  ;;  %v640_v47 = vrot.slane %v639_v33, 4  ;;  %v5252_v48 = vrot.slane %v1206_v16, 9  ;;  %v635_v5 = vsel %vm6728_vm4, %v630_v22, %v634_v1  ;;  %v1208_v41 = vld [vmem:[%s6677_s6 + $0x24] sm:$0xe] }
  0x68   : > { %v1259_v8 = vsel %vm7015_vm7, %v5251_v45, %v1258_v61  ;;  %v1260_v51 = vrot.slane %v1258_v61, 4  ;;  %6350 = vmatprep.subr.msk.bf16.mxu1 %vm748_vm0, %v1778_v54  ;;  %v9247_v10 = vrot.slane %v6724_v29, 5  ;;  %v5219_v27 = vcombine.low %v6686_v2, %v6689_v3  ;;  %v1209_v61 = vld [vmem:[%s6677_s6 + $0x30] sm:$0xe] }
  0x69   : > { %6053 = vmatmul.mubr.msk.bf16.gmra.mxu0 %vm699_vm3, %v5193_v40  ;;  %v645_v28 = vsel %vm6728_vm4, %v640_v47, %v644_v24  ;;  %v9249_v16 = vrot.slane %v6692_v4, 5  ;;  %v5221_v24 = vcombine.low %v6765_v12, %v6771_v19  ;;  %v5253_v2 = vrot.slane %v1207_v13, 9  ;;  %v1210_v40 = vld [vmem:[%s6677_s6 + $0x3c] sm:$0xe] }
  0x6a   : > { %v1267_v62 = vrot.slane %v9247_v10, 4  ;;  %v9248_v1 = vmov %v9247_v10  ;;  %v5201_v50 = vcombine.low %v635_v5, %v645_v28  ;;  %v1272_v3 = vrot.slane %v6771_v19, 5  ;;  %v1211_v5 = vld [vmem:[%s6677_s6 + $0x48] sm:$0xe]  ;;  %v7070_v28 = vld [vmem:[%s9201_s1 + $0xc] sm:$0x3] }
  0x6b   : > { %v1266_v21 = vsel %vm7015_vm7, %v5252_v48, %v9248_v1  ;;  %v1262_v33 = vsel %vm7015_vm7, %v1260_v51, %v9249_v16  ;;  %v1275_v29 = vrot.slane %v6776_v25, 5  ;;  %v1279_v4 = vrot.slane %v6809_v7, 5  ;;  %v1212_v16 = vld [vmem:[%s6677_s6 + $0x54] sm:$0xe] }
  0x6c   : > { %v1269_v45 = vsel %vm7015_vm7, %v1267_v62, %v1268_v55  ;;  %v5267_v22 = vcombine.low %v1259_v8, %v1262_v33  ;;  %6069 = vmatmul.mubr.msk.bf16.gmra.mxu1 %vm699_vm3, %v5201_v50  ;;  %v1273_v12 = vsel %vm7015_vm7, %v5253_v2, %v1272_v3  ;;  %v1274_v47 = vrot.slane %v1272_v3, 4 }
  0x6d   : > { %6074 = vmatprep.mubr.msk.bf16.mxu1 %vm699_vm3, %v5219_v27  ;;  %v5268_v55 = vcombine.low %v1266_v21, %v1269_v45  ;;  %v5254_v48 = vrot.slane %v1208_v41, 9  ;;  %v1281_v13 = vrot.slane %v1279_v4, 4  ;;  %v1282_v19 = vrot.slane %v6814_v15, 5 }
  0x6e   : > { %6108 = vmatprep.mubr.msk.bf16.mxu0 %vm699_vm3, %v5267_v22  ;;  %v1286_v25 = vrot.slane %v6847_v0, 5  ;;  %v2553_v8 = vsel %vm748_vm0, %v6885_v59, 0  ;;  %v1276_v51 = vsel %vm7015_vm7, %v1274_v47, %v1275_v29  ;;  %v5255_v10 = vrot.slane %v1209_v61, 9  ;;  %v1213_v61 = vld [vmem:[%s6677_s6 + $0x60] sm:$0xe] }
  0x6f   : > { %v1289_v62 = vrot.slane %v6852_v9, 5  ;;  %v5269_v27 = vcombine.low %v1273_v12, %v1276_v51  ;;  %v1828_v15 = vsel %vm748_vm0, %v1778_v54, 0  ;;  %v1280_v59 = vsel %vm7015_vm7, %v5254_v48, %v1279_v4 }
  0x70   : > { %v1288_v1 = vrot.slane %v1286_v25, 4  ;;  %v5256_v21 = vrot.slane %v1210_v40, 9  ;;  %v1293_v50 = vrot.slane %v6889_v6, 5  ;;  %v1283_v9 = vsel %vm7015_vm7, %v1281_v13, %v1282_v19 }
  0x71   : > { %6109 = vmatmul.mubr.msk.bf16.vlgmr.msra.gmra.mxu0 %vm699_vm3, %v5268_v55  ;;  %v1296_v33 = vrot.slane %v6900_v34, 5  ;;  %v5257_v45 = vrot.slane %v1211_v5, 9  ;;  %v1300_v41 = vrot.slane %v6928_v23, 5  ;;  %v1287_v54 = vsel %vm7015_vm7, %v5255_v10, %v1286_v25 }
  0x72   : > { %6175 = vmatpush3.bf16.msra.mxu0 %v2553_v8  ;;  %6112 = vmatprep.mubr.msk.bf16.mxu0 %vm699_vm3, %v5269_v27  ;;  %v1290_v22 = vsel %vm7015_vm7, %v1288_v1, %v1289_v62  ;;  %v1295_v2 = vrot.slane %v1293_v50, 4  ;;  %v1303_v3 = vrot.slane %v6931_v44, 5  ;;  %v5258_v4 = vrot.slane %v1212_v16, 9  ;;  %v1216_v8 = vld [vmem:[%s6677_s6 + $0x84] sm:$0xe] }
  0x73   : > { %6353 = vmatprep.subr.msk.bf16.mxu0 %vm748_vm0, %v7070_v28  ;;  %v1302_v29 = vrot.slane %v1300_v41, 4  ;;  %v1307_v34 = vrot.slane %v6968_v38, 5  ;;  %v1317_v40 = vrot.slane %v6709_v18, 5  ;;  %v5222_v55 = vcombine.low %v6799_v52, %v6809_v7  ;;  %v7130_v1 = vld [vmem:[%s6677_s6 + $0x78] sm:$0xe] }
  0x74   : > { %6075 = vmatmul.mubr.msk.bf16.vlgmr.msra.gmra.mxu1 %vm699_vm3, %v5220_v36  ;;  %v5270_v44 = vcombine.low %v1280_v59, %v1283_v9  ;;  %v1310_v12 = vrot.slane %v6973_v32, 5  ;;  %v5223_v36 = vcombine.low %v6841_v56, %v6847_v0  ;;  %v5271_v47 = vcombine.low %v1287_v54, %v1290_v22  ;;  %v1214_v32 = vld [vmem:[%s6677_s6 + $0x6c] sm:$0xe]  ;;  %v1218_v16 = vld [vmem:[%s6677_s6 + $0x9c] sm:$0xe] }
  0x75   : > { %6141 = vmatpush3.bf16.msra.mxu1 %v1828_v15  ;;  %6078 = vmatprep.mubr.msk.bf16.mxu1 %vm699_vm3, %v5221_v24  ;;  %v1294_v48 = vsel %vm7015_vm7, %v5256_v21, %v1293_v50  ;;  %v1309_v13 = vrot.slane %v1307_v34, 4  ;;  %v1297_v19 = vsel %vm7015_vm7, %v1295_v2, %v1296_v33  ;;  %v1301_v24 = vsel %vm7015_vm7, %v5257_v45, %v1300_v41  ;;  %v1217_v50 = vld [vmem:[%s6677_s6 + $0x90] sm:$0xe] }
  0x76   : > { %v1304_v52 = vsel %vm7015_vm7, %v1302_v29, %v1303_v3  ;;  %v5259_v7 = vrot.slane %v1213_v61, 9  ;;  %v7111_v56 = vsel %vm7015_vm7, %v5258_v4, %v1307_v34  ;;  %v1314_v25 = vrot.slane %v6706_v14, 5  ;;  %v1219_v3 = vld [vmem:[%s6677_s6 + $0xa8] sm:$0xe]  ;;  %v7330_v4 = vld [vmem:[%s6677_s6 + $0x4c] sm:$0xf] }
  0x77   : > { %v7115_v0 = vsel %vm7015_vm7, %v1309_v13, %v1310_v12  ;;  %v1321_v5 = vrot.slane %v6751_v58, 5  ;;  %v5224_v51 = vcombine.low %v6880_v57, %v6889_v6  ;;  %v5225_v10 = vcombine.low %v6923_v20, %v6928_v23 }
  0x78   : > { %v5226_v62 = vcombine.low %v6959_v53, %v6968_v38  ;;  %v5227_v27 = vcombine.low %v6700_v11, %v6706_v14  ;;  %v5272_v58 = vcombine.low %v1294_v48, %v1297_v19  ;;  %v5273_v15 = vcombine.low %v1301_v24, %v1304_v52  ;;  %v9252_v52 = vld [vmem:[#allocation11_spill] sm:$0xff]  ;;  %v7285_v11 = vld [vmem:[%s6677_s6 + $0x34] sm:$0xf] }
  0x79   : > { %6113 = vmatmul.mubr.msk.bf16.gmra.mxu0 %vm699_vm3, %v5270_v44  ;;  %v5260_v59 = vrot.slane %v1214_v32, 9  ;;  %v1324_v21 = vrot.slane %v6760_v63, 5  ;;  %v5274_v57 = vcombine.low %v7111_v56, %v7115_v0  ;;  %v5262_v20 = vrot.slane %v1216_v8, 9  ;;  %v9254_v32 = vld [vmem:[#allocation12_spill] sm:$0xff] }
  0x7a   : > { %6116 = vmatprep.mubr.msk.bf16.mxu0 %vm699_vm3, %v5271_v47  ;;  %v1335_v23 = vrot.slane %v6828_v37, 5  ;;  %v7144_v9 = vsel %vm7015_vm7, %v5259_v7, %v1314_v25  ;;  %v1316_v33 = vrot.slane %v1314_v25, 4  ;;  %v1323_v63 = vrot.slane %v1321_v5, 4  ;;  %v9253_v7 = vld [vmem:[#allocation13_spill] sm:$0xff] }
  0x7b   : > { %v5261_v45 = vrot.slane %v7130_v1, 9  ;;  %v1328_v41 = vrot.slane %v6790_v42, 5  ;;  %v1338_v2 = vrot.slane %v6833_v43, 5  ;;  %v7157_v29 = vsel %vm7015_vm7, %v5260_v59, %v1321_v5  ;;  %v9250_v43 = vld [vmem:[#allocation10_spill] sm:$0xff] }
  0x7c   : > { %6079 = vmatmul.mubr.msk.bf16.gmra.mxu1 %vm699_vm3, %v5222_v55  ;;  %v7151_v54 = vsel %vm7015_vm7, %v5262_v20, %v1335_v23  ;;  %v1337_v22 = vrot.slane %v1335_v23, 4  ;;  %v5263_v34 = vrot.slane %v1217_v50, 9  ;;  %v1342_v61 = vrot.slane %v6866_v17, 5  ;;  %v9255_v59 = vld [vmem:[#allocation14_spill] sm:$0xff]  ;;  %v5364_v23 = vld [vmem:[%s6677_s6 + $0xc] sm:$0xf] }
  0x7d   : > { %6082 = vmatprep.mubr.msk.bf16.mxu1 %vm699_vm3, %v5223_v36  ;;  %v1331_v55 = vrot.slane %v6794_v46, 5  ;;  %v1345_v12 = vrot.slane %v6871_v49, 5  ;;  %v9251_v36 = vld [vmem:[#allocation9_spill] sm:$0xff]  ;;  %v5264_v46 = vrot.slane %v1218_v16, 9  ;;  %v1349_v24 = vrot.slane %v9250_v43, 5 }
  0x7e   : > { %v7165_v44 = vsel %vm7015_vm7, %v1337_v22, %v1338_v2  ;;  %v7174_v13 = vsel %vm7015_vm7, %v5263_v34, %v1342_v61  ;;  %v1344_v19 = vrot.slane %v1342_v61, 4  ;;  %v1352_v49 = vrot.slane %v9252_v52, 5  ;;  %v7192_v16 = vld [vmem:[%s6677_s6 + $0x10] sm:$0xf]  ;;  %v7240_v20 = vld [vmem:[%s6677_s6 + $0x1c] sm:$0xf] }
  0x7f   : > { %v5278_v48 = vcombine.low %v7151_v54, %v7165_v44  ;;  %v5265_v5 = vrot.slane %v1219_v3, 9  ;;  %v1356_v1 = vrot.slane %v9253_v7, 5  ;;  %v1359_v50 = vrot.slane %v9255_v59, 5  ;;  %v7207_v34 = vld [vmem:[%s9201_s1 + $0x8] ss:$0 sps:$4 sm:$0xcc]  }
  0x80   : > { %v7184_v8 = vsel %vm7015_vm7, %v1344_v19, %v1345_v12  ;;  %v7202_v2 = vsel %vm7015_vm7, %v5264_v46, %v1349_v24  ;;  %v1351_v3 = vrot.slane %v1349_v24, 4  ;;  %v1330_v61 = vrot.slane %v1328_v41, 4  ;;  %v1220_v19 = vld [vmem:[%s6677_s6 + $0xb4] sm:$0xe] }
  0x81   : > { %6117 = vmatmul.mubr.msk.bf16.gmra.mxu0 %vm699_vm3, %v5272_v58  ;;  %v9256_v58 = vld [vmem:[#allocation15_spill] sm:$0xff]  ;;  %v7212_v18 = vsel %vm7015_vm7, %v5265_v5, %v1356_v1  ;;  %v2072_v46 = vshrl.u32 %v5364_v23, 16  ;;  %v2081_v24 = vshll.u32 %v7192_v16, 16  ;;  %v1325_v5 = vsel %vm7015_vm7, %v1323_v63, %v1324_v21 }
  0x82   : > { %6120 = vmatprep.mubr.msk.bf16.mxu0 %vm699_vm3, %v5273_v15  ;;  %v1318_v15 = vsel %vm7015_vm7, %v1316_v33, %v1317_v40  ;;  %v1358_v40 = vrot.slane %v1356_v1, 4  ;;  %v1363_v33 = vrot.slane %v6987_v60, 5  ;;  %v7218_v12 = vsel %vm7015_vm7, %v1351_v3, %v1352_v49 }
  0x83   : > { %v5275_v52 = vcombine.low %v7144_v9, %v1318_v15  ;;  %v1329_v49 = vsel %vm7015_vm7, %v5261_v45, %v1328_v41  ;;  %v2074_v3 = vrot.slane %v2072_v46, 4  ;;  %v5367_v15 = vld [vmem:[%s6677_s6 + $0x18] sm:$0xf]  ;;  %v5266_v21 = vrot.slane %v1220_v19, 9 }
  0x84   : > { %6083 = vmatmul.mubr.msk.bf16.gmra.mxu1 %vm699_vm3, %v5224_v51  ;;  %v2075_v51 = vshll.u32 %v5364_v23, 16  ;;  %v7236_v23 = vld [vmem:[%s6677_s6 + $0x14] sm:$0x1]  ;;  %v1366_v63 = vrot.slane %v6993_v39, 5  ;;  %v1332_v45 = vsel %vm7015_vm7, %v1330_v61, %v1331_v55  ;;  %v1365_v41 = vrot.slane %v1363_v33, 4 }
  0x85   : > { %6086 = vmatprep.mubr.msk.bf16.mxu1 %vm699_vm3, %v5225_v10  ;;  %v7229_v10 = vsel %vm7015_vm7, %v1358_v40, %v1359_v50  ;;  %v2085_v50 = vshrl.u32 %v7192_v16, 16  ;;  %v2976_v40 = vrot.slane %v7207_v34, 2  ;;  %v7251_v19 = vrot.slane %v2081_v24, 5  ;;  %v6474_v55 = vld [vmem:[%s6677_s6 + $0x6c] sm:$0xf] }
  0x86   : > { %v2077_v9 = vrot.slane %v2075_v51, 5  ;;  %v2096_v34 = vshrl.u32 %v5367_v15, 16  ;;  %v2099_v51 = vshll.u32 %v5367_v15, 16  ;;  %v2105_v56 = vshll.u32 %v7240_v20, 16  ;;  %v6475_v61 = vld [vmem:[%s6677_s6 + $0x70] sm:$0xf] }
  0x87   : > { %v2087_v39 = vrot.slane %v2085_v50, 4  ;;  %6352 = vmatprep.subr.msk.bf16.mxu1 %vm748_vm0, %v2976_v40  ;;  %v2109_v0 = vshrl.u32 %v7240_v20, 16  ;;  %v5228_v24 = vcombine.low %v6474_v55, %v6475_v61  ;;  %v5369_v15 = vld [vmem:[%s6677_s6 + $0x20] sm:$0x1]  ;;  %v7268_v50 = vld [vmem:[%s6677_s6 + $0x28] sm:$0xf]  ;;  %v7276_v53 = vsel %vm7015_vm7, %v5266_v21, %v1363_v33 }
  0x88   : > { %v2078_v46 = vor.u32 %v2077_v9, %v2074_v3  ;;  %v5277_v3 = vcombine.low %v1329_v49, %v1332_v45  ;;  %v2091_v9 = vshll.u32 %v7236_v23, 16  ;;  %v7280_v38 = vsel %vm7015_vm7, %v1365_v41, %v1366_v63  ;;  %v7290_v33 = vld [vmem:[%s6677_s6 + $0x2c] sm:$0x1]  ;;  %v9258_v41 = vld [vmem:[#allocation8_spill] sm:$0xff] }
  0x89   : > { %6121 = vmatmul.mubr.msk.bf16.gmra.mxu0 %vm699_vm3, %v5274_v57  ;;  %v5370_v57 = vld [vmem:[%s6677_s6 + $0x24] sm:$0xf]  ;;  %v2098_v49 = vrot.slane %v2096_v34, 4  ;;  %v2101_v45 = vrot.slane %v2099_v51, 5  ;;  %v7287_v14 = vrot.slane %v2105_v56, 5  ;;  %9257 = vst [vmem:[#allocation10_spill] sm:$0xff] %v7290_v33 }
  0x8a   : > { %6124 = vmatprep.mubr.msk.bf16.mxu0 %vm699_vm3, %v5275_v52  ;;  %v5276_v52 = vcombine.low %v7157_v29, %v1325_v5  ;;  %v2088_v29 = vor.u32 %v2087_v39, %v7251_v19  ;;  %v5373_v5 = vld [vmem:[%s6677_s6 + $0x30] sm:$0xf]  ;;  %v2120_v55 = vshrl.u32 %v5370_v57, 16  ;;  %v2123_v61 = vshll.u32 %v5370_v57, 16  ;;  %v5376_v57 = vld [vmem:[%s6677_s6 + $0x3c] sm:$0xf] }
  0x8b   : > { %v2129_v21 = vshll.u32 %v7268_v50, 16  ;;  %v2133_v63 = vshrl.u32 %v7268_v50, 16  ;;  %v2093_v34 = vrot.slane %v2091_v9, 5  ;;  %v2115_v51 = vshll.u32 %v5369_v15, 16  ;;  %v7310_v15 = vld [vmem:[%s6677_s6 + $0x38] sm:$0x1] }
  0x8c   : > { %6087 = vmatmul.mubr.msk.bf16.gmra.mxu1 %vm699_vm3, %v5226_v62  ;;  %v2079_v62 = vrot.slane %v2078_v46, 4  ;;  %v5229_v46 = vcombine.low %v9258_v41, %v6790_v42  ;;  %v7304_v25 = vsel %vm748_vm0, %v2976_v40, 0  ;;  %v2122_v47 = vrot.slane %v2120_v55, 4 }
  0x8d   : > { %6090 = vmatprep.mubr.msk.bf16.mxu1 %vm699_vm3, %v5227_v27  ;;  %v2111_v27 = vrot.slane %v2109_v0, 4  ;;  %v2089_v0 = vrot.slane %v2088_v29, 4  ;;  %v2125_v42 = vrot.slane %v2123_v61, 5  ;;  %v7307_v41 = vrot.slane %v2129_v21, 5  ;;  %v5379_v61 = vld [vmem:[%s6677_s6 + $0x48] sm:$0xf] }
  0x8e   : > { %v2084_v56 = vsel %vm6728_vm4, %v2079_v62, %v7251_v19  ;;  %v2135_v9 = vrot.slane %v2133_v63, 4  ;;  %v2144_v39 = vshrl.u32 %v5373_v5, 16  ;;  %v2147_v1 = vshll.u32 %v5373_v5, 16  ;;  %v7315_v62 = vld [vmem:[%s6677_s6 + $0x40] sm:$0xf] }
  0x8f   : > { %v2112_v59 = vor.u32 %v2111_v27, %v7287_v14  ;;  %v2153_v19 = vshll.u32 %v7285_v11, 16  ;;  %v7318_v40 = vrot.slane %v2115_v51, 5  ;;  %v2157_v55 = vshrl.u32 %v7285_v11, 16 }
  0x90   : > { %v2146_v29 = vrot.slane %v2144_v39, 4  ;;  %v2094_v5 = vsel %vm6728_vm4, %v2089_v0, %v2093_v34  ;;  %v2168_v27 = vshrl.u32 %v5376_v57, 16  ;;  %v2126_v21 = vor.u32 %v2125_v42, %v2122_v47 }
  0x91   : > { %6125 = vmatmul.mubr.msk.bf16.gmra.mxu0 %vm699_vm3, %v5276_v52  ;;  %v2102_v52 = vor.u32 %v2101_v45, %v2098_v49  ;;  %v2149_v49 = vrot.slane %v2147_v1, 5  ;;  %v7326_v45 = vrot.slane %v2153_v19, 5  ;;  %v2159_v63 = vrot.slane %v2157_v55, 4 }
  0x92   : > { %6128 = vmatprep.mubr.msk.bf16.mxu0 %vm699_vm3, %v5277_v3  ;;  %v2139_v3 = vshll.u32 %v7290_v33, 16  ;;  %v2171_v51 = vshll.u32 %v5376_v57, 16  ;;  %v2113_v6 = vrot.slane %v2112_v59, 4  ;;  %v2170_v1 = vrot.slane %v2168_v27, 4  ;;  %v7359_v27 = vld [vmem:[%s6677_s6 + $0x58] sm:$0xf] }
  0x93   : > { %v2103_v39 = vrot.slane %v2102_v52, 4  ;;  %v2150_v22 = vor.u32 %v2149_v49, %v2146_v29  ;;  %v2160_v34 = vor.u32 %v2159_v63, %v7326_v45  ;;  %v2177_v19 = vshll.u32 %v7315_v62, 16 }
  0x94   : > { %6091 = vmatmul.mubr.msk.bf16.gmra.mxu1 %vm699_vm3, %v5228_v24  ;;  %v2136_v24 = vor.u32 %v2135_v9, %v7307_v41  ;;  %v2173_v0 = vrot.slane %v2171_v51, 5  ;;  %v7339_v47 = vcombine.low %v2084_v56, %v2094_v5  ;;  %v7343_v59 = vsel %vm748_vm0, %v7070_v28, 0  ;;  %v5382_v9 = vld [vmem:[%s6677_s6 + $0x54] sm:$0xf] }
  0x95   : > { %6094 = vmatprep.mubr.msk.bf16.mxu1 %vm699_vm3, %v5229_v46  ;;  %v2163_v46 = vshll.u32 %v7310_v15, 16  ;;  %v2181_v57 = vshrl.u32 %v7315_v62, 16  ;;  %v2192_v42 = vshrl.u32 %v5379_v61, 16  ;;  %v9259_v52 = vcombine.low %v7174_v13, %v7184_v8 }
  0x96   : > { %v2127_v29 = vrot.slane %v2126_v21, 4  ;;  %v2137_v54 = vrot.slane %v2136_v24, 4  ;;  %v2141_v44 = vrot.slane %v2139_v3, 5  ;;  %v2195_v56 = vshll.u32 %v5379_v61, 16  ;;  %v7375_v24 = vld [vmem:[%s6677_s6 + $0x50] sm:$0x1] }
  0x97   : > { %v2108_v28 = vsel %vm6728_vm4, %v2103_v39, %v7287_v14  ;;  %v2151_v55 = vrot.slane %v2150_v22, 4  ;;  %v2165_v5 = vrot.slane %v2163_v46, 5  ;;  %v2201_v49 = vshll.u32 %v7330_v4, 16  ;;  %v7387_v46 = vld [vmem:[%s6677_s6 + $0x5c] sm:$0x1] }
  0x98   : > { %v9260_v13 = vcombine.low %v6820_v26, %v6828_v37  ;;  %v2118_v8 = vsel %vm6728_vm4, %v2113_v6, %v7318_v40  ;;  %v2161_v3 = vrot.slane %v2160_v34, 4  ;;  %v2174_v61 = vor.u32 %v2173_v0, %v2170_v1 }
  0x99   : > { %6129 = vmatmul.mubr.msk.bf16.gmra.mxu0 %vm699_vm3, %v5278_v48  ;;  %v7352_v48 = vld [vmem:[%s6677_s6 + $0x44] sm:$0x1]  ;;  %v7368_v21 = vrot.slane %v2177_v19, 5  ;;  %v9261_v22 = vcombine.low %v6860_v31, %v6866_v17  ;;  %v2183_v14 = vrot.slane %v2181_v57, 4  ;;  %v2194_v26 = vrot.slane %v2192_v42, 4 }
  0x9a   : > { %6132 = vmatprep.mubr.msk.bf16.mxu0 %vm699_vm3, %v9259_v52  ;;  %v2197_v37 = vrot.slane %v2195_v56, 5  ;;  %v2205_v63 = vshrl.u32 %v7330_v4, 16  ;;  %v2132_v6 = vsel %vm6728_vm4, %v2127_v29, %v7307_v41  ;;  %v2142_v40 = vsel %vm6728_vm4, %v2137_v54, %v2141_v44  ;;  %v5385_v42 = vld [vmem:[%s6677_s6 + $0x60] sm:$0xf] }
  0x9b   : > { %v7383_v51 = vrot.slane %v2201_v49, 5  ;;  %v2216_v31 = vshrl.u32 %v5382_v9, 16  ;;  %v2187_v17 = vshll.u32 %v7352_v48, 16  ;;  %v2219_v34 = vshll.u32 %v5382_v9, 16 }
  0x9c   : > { %6095 = vmatmul.mubr.msk.bf16.gmra.mxu1 %vm699_vm3, %v9260_v13  ;;  %v2207_v39 = vrot.slane %v2205_v63, 4  ;;  %v2225_v1 = vshll.u32 %v7359_v27, 16  ;;  %v2156_v0 = vsel %vm6728_vm4, %v2151_v55, %v7326_v45  ;;  %v2166_v41 = vsel %vm6728_vm4, %v2161_v3, %v2165_v5  ;;  %v7413_v5 = vld [vmem:[%s6677_s6 + $0x64] sm:$0xf] }
  0x9d   : > { %6098 = vmatprep.mubr.msk.bf16.mxu1 %vm699_vm3, %v9261_v22  ;;  %v2218_v19 = vrot.slane %v2216_v31, 4  ;;  %v2229_v57 = vshrl.u32 %v7359_v27, 16  ;;  %v9262_v52 = vcombine.low %v7202_v2, %v7218_v12  ;;  %v7401_v9 = vrot.slane %v2174_v61, 4 }
  0x9e   : > { %v2184_v29 = vor.u32 %v2183_v14, %v7368_v21  ;;  %v2221_v54 = vrot.slane %v2219_v34, 5  ;;  %v7404_v44 = vrot.slane %v2225_v1, 5  ;;  %v9263_v45 = vcombine.low %v7212_v18, %v7229_v10  ;;  %v6440_v34 = vld [vmem:[%s6677_s6 + $0xc] sm:$0xff]  }
  0x9f   : > { %v2198_v56 = vor.u32 %v2197_v37, %v2194_v26  ;;  %v2208_v55 = vor.u32 %v2207_v39, %v7383_v51  ;;  %v2211_v2 = vshll.u32 %v7375_v24, 16  ;;  %v2231_v12 = vrot.slane %v2229_v57, 4  ;;  %v5391_v39 = vld [vmem:[%s6677_s6 + $0x78] sm:$0xf] }
  0xa0   : > { %v7415_v49 = vcombine.low %v2108_v28, %v2118_v8  ;;  %v7417_v13 = vcombine.low %v2132_v6, %v2142_v40  ;;  %v2235_v3 = vshll.u32 %v7387_v46, 16  ;;  %v2240_v61 = vshrl.u32 %v5385_v42, 16  ;;  %v5388_v28 = vld [vmem:[%s6677_s6 + $0x6c] sm:$0xf]  ;;  %v7439_v6 = vld [vmem:[%s6677_s6 + $0x70] sm:$0xf] }
  0xa1   : > { %6133 = vmatmul.mubr.msk.bf16.gmra.mxu0 %vm699_vm3, %v9262_v52  ;;  %v9264_v18 = vcombine.low %v9251_v36, %v9250_v43  ;;  %v2189_v10 = vrot.slane %v2187_v17, 5  ;;  %v2222_v22 = vor.u32 %v2221_v54, %v2218_v19  ;;  %v2232_v14 = vor.u32 %v2231_v12, %v7404_v44  ;;  %v7447_v52 = vld [vmem:[%s6677_s6 + $0x74] sm:$0x1] }
  0xa2   : > { %6136 = vmatprep.mubr.msk.bf16.mxu0 %vm699_vm3, %v9263_v45  ;;  %v2243_v26 = vshll.u32 %v5385_v42, 16  ;;  %v9265_v8 = vcombine.low %v9254_v32, %v9253_v7  ;;  %v7430_v37 = vcombine.low %v2156_v0, %v2166_v41  ;;  %v2180_v43 = vsel %vm6728_vm4, %v7401_v9, %v7368_v21  ;;  %v7442_v32 = vld [vmem:[%s6677_s6 + $0x68] sm:$0x1] }
  0xa3   : > { %v2249_v36 = vshll.u32 %v7413_v5, 16  ;;  %v2253_v63 = vshrl.u32 %v7413_v5, 16  ;;  %v2185_v40 = vrot.slane %v2184_v29, 4  ;;  %v2199_v31 = vrot.slane %v2198_v56, 4 }
  0xa4   : > { %6099 = vmatmul.mubr.msk.bf16.gmra.mxu1 %vm699_vm3, %v9264_v18  ;;  %v2209_v17 = vrot.slane %v2208_v55, 4  ;;  %v2213_v7 = vrot.slane %v2211_v2, 5  ;;  %v2237_v1 = vrot.slane %v2235_v3, 5  ;;  %v2242_v0 = vrot.slane %v2240_v61, 4 }
  0xa5   : > { %6102 = vmatprep.mubr.msk.bf16.mxu1 %vm699_vm3, %v9265_v8  ;;  %v2264_v41 = vshrl.u32 %v5388_v28, 16  ;;  %v2267_v19 = vshll.u32 %v5388_v28, 16  ;;  %v2223_v21 = vrot.slane %v2222_v22, 4  ;;  %v2233_v57 = vrot.slane %v2232_v14, 4  ;;  %v5394_v8 = vld [vmem:[%s6677_s6 + $0x84] sm:$0xf] }
  0xa6   : > { %v2245_v42 = vrot.slane %v2243_v26, 5  ;;  %v2273_v9 = vshll.u32 %v7439_v6, 16  ;;  %v9266_v29 = vcombine.low %v7276_v53, %v7280_v38  ;;  %v7454_v54 = vrot.slane %v2249_v36, 5  ;;  %v7467_v38 = vld [vmem:[%s6677_s6 + $0x7c] sm:$0xf] }
  0xa7   : > { %v2255_v45 = vrot.slane %v2253_v63, 4  ;;  %v2266_v56 = vrot.slane %v2264_v41, 4  ;;  %v2269_v55 = vrot.slane %v2267_v19, 5  ;;  %v2190_v2 = vsel %vm6728_vm4, %v2185_v40, %v2189_v10  ;;  %v7487_v40 = vld [vmem:[%s6677_s6 + $0x88] sm:$0xf] }
  0xa8   : > { %v2204_v12 = vsel %vm6728_vm4, %v2199_v31, %v7383_v51  ;;  %v7463_v3 = vrot.slane %v2273_v9, 5  ;;  %v2277_v53 = vshrl.u32 %v7439_v6, 16  ;;  %v2214_v61 = vsel %vm6728_vm4, %v2209_v17, %v2213_v7  ;;  %9268 = vst [vmem:[#allocation9_spill] sm:$0xff] %v7487_v40 }
  0xa9   : > { %6137 = vmatmul.mubr.msk.bf16.gmra.mxu0 %vm699_vm3, %v9266_v29  ;;  %v2259_v18 = vshll.u32 %v7442_v32, 16  ;;  %v2291_v22 = vshll.u32 %v5391_v39, 16  ;;  %v9267_v10 = vcombine.low %v9256_v58, %v6987_v60  ;;  %v2228_v51 = vsel %vm6728_vm4, %v2223_v21, %v7404_v44  ;;  %v6443_v21 = vld [vmem:[%s6677_s6 + $0x24] sm:$0xff]  }
  0xaa   : > { %6176 = vmatprep.mubr.msk.bf16.mxu0 %vm699_vm3, %v7339_v47  ;;  %v2288_v47 = vshrl.u32 %v5391_v39, 16  ;;  %v2238_v14 = vsel %vm6728_vm4, %v2233_v57, %v2237_v1  ;;  %v2246_v26 = vor.u32 %v2245_v42, %v2242_v0  ;;  %v2279_v28 = vrot.slane %v2277_v53, 4  ;;  %v6442_v39 = vld [vmem:[%s6677_s6 + $0x18] sm:$0xff]   ;;  %v7497_v0 = vld [vmem:[%s6677_s6 + $0x80] sm:$0x1] }
  0xab   : > { %v2256_v36 = vor.u32 %v2255_v45, %v7454_v54  ;;  %v2270_v60 = vor.u32 %v2269_v55, %v2266_v56  ;;  %v2283_v58 = vshll.u32 %v7447_v52, 16  ;;  %v2297_v63 = vshll.u32 %v7467_v38, 16  ;;  %9269 = vst [vmem:[#allocation11_spill] sm:$0xff] %v7497_v0 }
  0xac   : > { %6103 = vmatmul.mubr.msk.bf16.gmra.mxu1 %vm699_vm3, %v9267_v10  ;;  %v2280_v44 = vor.u32 %v2279_v28, %v7463_v3  ;;  %v2290_v31 = vrot.slane %v2288_v47, 4  ;;  %v2293_v17 = vrot.slane %v2291_v22, 5  ;;  %v2301_v7 = vshrl.u32 %v7467_v38, 16  ;;  %v7518_v22 = vld [vmem:[%s6677_s6 + $0x94] sm:$0xf] }
  0xad   : > { %6142 = vmatprep.mubr.msk.bf16.mxu1 %vm699_vm3, %v6440_v34  ;;  %v7492_v1 = vcombine.low %v2180_v43, %v2190_v2  ;;  %v7494_v34 = vcombine.low %v2204_v12, %v2214_v61  ;;  %v2312_v41 = vshrl.u32 %v5394_v8, 16  ;;  %v2315_v19 = vshll.u32 %v5394_v8, 16  ;;  %v7506_v43 = vld [vmem:[%s9201_s1 + $0x10] sm:$0x3]  ;;  %9271 = vst [vmem:[#allocation12_spill] sm:$0xff] %v7518_v22 }
  0xae   : > { %v7500_v57 = vcombine.low %v2228_v51, %v2238_v14  ;;  %v2247_v42 = vrot.slane %v2246_v26, 4  ;;  %v2261_v9 = vrot.slane %v2259_v18, 5  ;;  %v2321_v29 = vshll.u32 %v7487_v40, 16  ;;  %9270 = vst [vmem:[#allocation13_spill] sm:$0xff] %v7506_v43  ;;  %v5397_v12 = vld [vmem:[%s6677_s6 + $0x90] sm:$0xf] }
  0xaf   : > { %v2257_v45 = vrot.slane %v2256_v36, 4  ;;  %v2271_v56 = vrot.slane %v2270_v60, 4  ;;  %v2285_v55 = vrot.slane %v2283_v58, 5  ;;  %v2325_v2 = vshrl.u32 %v7487_v40, 16  ;;  %v7530_v26 = vld [vmem:[%s6677_s6 + $0x8c] sm:$0x1] }
  0xb0   : > { %v2281_v53 = vrot.slane %v2280_v44, 4  ;;  %v2294_v61 = vor.u32 %v2293_v17, %v2290_v31  ;;  %v7515_v18 = vrot.slane %v2297_v63, 5  ;;  %v2303_v47 = vrot.slane %v2301_v7, 4  ;;  %9272 = vst [vmem:[#allocation14_spill] sm:$0xff] %v7530_v26  ;;  %v5400_v63 = vld [vmem:[%s6677_s6 + $0x9c] sm:$0xf] }
  0xb1   : > { %6177 = vmatmul.mubr.msk.bf16.vlgmr.msra.gmra.mxu0 %vm699_vm3, %v7415_v49  ;;  %v2314_v49 = vrot.slane %v2312_v41, 4  ;;  %v2317_v10 = vrot.slane %v2315_v19, 5  ;;  %v7520_v51 = vrot.slane %v2321_v29, 5  ;;  %v2327_v14 = vrot.slane %v2325_v2, 4  ;;  %v7546_v7 = vld [vmem:[%s6677_s6 + $0xa0] sm:$0xf] }
  0xb2   : > { %6243 = vmatpush3.bf16.msra.mxu0 %v7343_v59  ;;  %6180 = vmatprep.mubr.msk.bf16.mxu0 %vm699_vm3, %v7417_v13  ;;  %v2252_v59 = vsel %vm6728_vm4, %v2247_v42, %v7454_v54  ;;  %v2307_v13 = vshll.u32 %v7497_v0, 16  ;;  %v2336_v28 = vshrl.u32 %v5397_v12, 16  ;;  %v2339_v8 = vshll.u32 %v5397_v12, 16  ;;  %9273 = vst [vmem:[#allocation15_spill] sm:$0xff] %v7546_v7  ;;  %v7558_v29 = vld [vmem:[%s6677_s6 + $0x98] sm:$0x1] }
  0xb3   : > { %6355 = vmatprep.subr.msk.bf16.mxu0 %vm748_vm0, %v7506_v43  ;;  %v2262_v36 = vsel %vm6728_vm4, %v2257_v45, %v2261_v9  ;;  %v2276_v60 = vsel %vm6728_vm4, %v2271_v56, %v7463_v3  ;;  %v2345_v54 = vshll.u32 %v7518_v22, 16  ;;  %v2349_v58 = vshrl.u32 %v7518_v22, 16  ;;  %9274 = vst [vmem:[#allocation8_spill] sm:$0xff] %v7558_v29  ;;  %v6447_v43 = vld [vmem:[%s6677_s6 + $0x54] sm:$0xff]   ;;  %v7654_v22 = vld [vmem:[%s6677_s6 + $0xc8] sm:$0x1] }
  0xb4   : > { %6143 = vmatmul.mubr.msk.bf16.vlgmr.msra.gmra.mxu1 %vm699_vm3, %v6442_v39  ;;  %v7542_v44 = vrot.slane %v2294_v61, 4  ;;  %v2338_v31 = vrot.slane %v2336_v28, 4  ;;  %v2341_v17 = vrot.slane %v2339_v8, 5  ;;  %v2286_v39 = vsel %vm6728_vm4, %v2281_v53, %v2285_v55  ;;  %v6445_v55 = vld [vmem:[%s6677_s6 + $0x3c] sm:$0xff]  }
  0xb5   : > { %6209 = vmatpush3.bf16.msra.mxu1 %v7304_v25  ;;  %6146 = vmatprep.mubr.msk.bf16.mxu1 %vm699_vm3, %v6443_v21  ;;  %v2304_v25 = vor.u32 %v2303_v47, %v7515_v18  ;;  %v2318_v3 = vor.u32 %v2317_v10, %v2314_v49  ;;  %v2328_v41 = vor.u32 %v2327_v14, %v7520_v51  ;;  %v2331_v19 = vshll.u32 %v7530_v26, 16  ;;  %v6444_v21 = vld [vmem:[%s6677_s6 + $0x30] sm:$0xff]   ;;  %v5403_v47 = vld [vmem:[%s6677_s6 + $0xa8] sm:$0xf] }
  0xb6   : > { %v7553_v42 = vcombine.low %v2252_v59, %v2262_v36  ;;  %v7555_v9 = vrot.slane %v2307_v13, 5  ;;  %v7560_v45 = vrot.slane %v2345_v54, 5  ;;  %v2360_v56 = vshrl.u32 %v5400_v63, 16  ;;  %v7579_v59 = vld [vmem:[%s6677_s6 + $0xac] sm:$0xf] }
  0xb7   : > { %v2342_v2 = vor.u32 %v2341_v17, %v2338_v31  ;;  %v2351_v12 = vrot.slane %v2349_v58, 4  ;;  %v2363_v53 = vshll.u32 %v5400_v63, 16  ;;  %v2369_v61 = vshll.u32 %v7546_v7, 16  ;;  %9275 = vst [vmem:[#allocation16_spill] sm:$0xff] %v7579_v59  ;;  %v7590_v36 = vld [vmem:[%s6677_s6 + $0xa4] sm:$0x1] }
  0xb8   : > { %v7569_v49 = vcombine.low %v2276_v60, %v2286_v39  ;;  %v7575_v14 = vrot.slane %v2304_v25, 4  ;;  %v7581_v13 = vrot.slane %v2318_v3, 4  ;;  %v7583_v28 = vrot.slane %v2328_v41, 4  ;;  %9276 = vst [vmem:[#allocation17_spill] sm:$0xff] %v7590_v36  ;;  %v5406_v3 = vld [vmem:[%s6677_s6 + $0xb4] sm:$0xf] }
  0xb9   : > { %6181 = vmatmul.mubr.msk.bf16.gmra.mxu0 %vm699_vm3, %v7430_v37  ;;  %v2373_v37 = vshrl.u32 %v7546_v7, 16  ;;  %v7585_v8 = vrot.slane %v2331_v19, 5  ;;  %v2362_v60 = vrot.slane %v2360_v56, 4  ;;  %v2365_v54 = vrot.slane %v2363_v53, 5  ;;  %v7602_v53 = vld [vmem:[%s6677_s6 + $0xb8] sm:$0xf] }
  0xba   : > { %6184 = vmatprep.mubr.msk.bf16.mxu0 %vm699_vm3, %v7492_v1  ;;  %v2355_v1 = vshll.u32 %v7558_v29, 16  ;;  %v2384_v58 = vshrl.u32 %v5403_v47, 16  ;;  %v2387_v63 = vshll.u32 %v5403_v47, 16  ;;  %v7593_v25 = vrot.slane %v2342_v2, 4  ;;  %9277 = vst [vmem:[#allocation18_spill] sm:$0xff] %v7602_v53 }
  0xbb   : > { %v2352_v31 = vor.u32 %v2351_v12, %v7560_v45  ;;  %v7596_v17 = vrot.slane %v2369_v61, 5  ;;  %v2393_v39 = vshll.u32 %v7579_v59, 16  ;;  %v2375_v41 = vrot.slane %v2373_v37, 4  ;;  %v7616_v47 = vld [vmem:[%s6677_s6 + $0xb0] sm:$0x1]  ;;  %v6446_v37 = vld [vmem:[%s6677_s6 + $0x48] sm:$0xff]  }
  0xbc   : > { %6147 = vmatmul.mubr.msk.bf16.gmra.mxu1 %vm699_vm3, %v6444_v21  ;;  %v2386_v19 = vrot.slane %v2384_v58, 4  ;;  %v2389_v21 = vrot.slane %v2387_v63, 5  ;;  %v2397_v56 = vshrl.u32 %v7579_v59, 16  ;;  %v7612_v12 = vrot.slane %v2355_v1, 5  ;;  %9278 = vst [vmem:[#allocation19_spill] sm:$0xff] %v7616_v47 }
  0xbd   : > { %6150 = vmatprep.mubr.msk.bf16.mxu1 %vm699_vm3, %v6445_v55  ;;  %v2379_v61 = vshll.u32 %v7590_v36, 16  ;;  %v2366_v58 = vor.u32 %v2365_v54, %v2362_v60  ;;  %v7619_v63 = vrot.slane %v2393_v39, 5  ;;  %v2408_v55 = vshrl.u32 %v5406_v3, 16  ;;  %v5409_v2 = vld [vmem:[%s6677_s6 + $0xc0] sm:$0xf] }
  0xbe   : > { %v2399_v10 = vrot.slane %v2397_v56, 4  ;;  %v2411_v54 = vshll.u32 %v5406_v3, 16  ;;  %v2417_v39 = vshll.u32 %v7602_v53, 16  ;;  %v7636_v56 = vrot.slane %v2352_v31, 4  ;;  %v7641_v59 = vld [vmem:[%s6677_s6 + $0xbc] sm:$0x1] }
  0xbf   : > { %v2390_v33 = vor.u32 %v2389_v21, %v2386_v19  ;;  %v2403_v1 = vshll.u32 %v7616_v47, 16  ;;  %9279 = vst [vmem:[#allocation20_spill] sm:$0xff] %v7641_v59  ;;  %v7644_v36 = vld [vmem:[%s6677_s6 + $0xc4] sm:$0xf]  ;;  %v2410_v60 = vrot.slane %v2408_v55, 4  ;;  %v2421_v29 = vshrl.u32 %v7602_v53, 16 }
  0xc0   : > { %v2413_v3 = vrot.slane %v2411_v54, 5  ;;  %v7646_v7 = vrot.slane %v2417_v39, 5  ;;  %v2381_v31 = vrot.slane %v2379_v61, 5  ;;  %v2432_v19 = vshrl.u32 %v5409_v2, 16 }
  0xc1   : > { %6185 = vmatmul.mubr.msk.bf16.gmra.mxu0 %vm699_vm3, %v7494_v34  ;;  %v2376_v34 = vor.u32 %v2375_v41, %v7596_v17  ;;  %v2400_v41 = vor.u32 %v2399_v10, %v7619_v63  ;;  %v2423_v21 = vrot.slane %v2421_v29, 4  ;;  %v2427_v47 = vshll.u32 %v7641_v59, 16  ;;  %v7661_v10 = vld [vmem:[%s9201_s1 + $0xc] ss:$0 sps:$4 sm:$0xcc]  }
  0xc2   : > { %6188 = vmatprep.mubr.msk.bf16.mxu0 %vm699_vm3, %v7500_v57  ;;  %v2367_v57 = vrot.slane %v2366_v58, 4  ;;  %v2435_v55 = vshll.u32 %v5409_v2, 16  ;;  %v2441_v54 = vshll.u32 %v7644_v36, 16  ;;  %v2434_v53 = vrot.slane %v2432_v19, 4 }
  0xc3   : > { %v2377_v39 = vrot.slane %v2376_v34, 4  ;;  %v2445_v61 = vshrl.u32 %v7644_v36, 16  ;;  %v2391_v29 = vrot.slane %v2390_v33, 4  ;;  %v2405_v58 = vrot.slane %v2403_v1, 5 }
  0xc4   : > { %6151 = vmatmul.mubr.msk.bf16.gmra.mxu1 %vm699_vm3, %v6446_v37  ;;  %v2414_v37 = vor.u32 %v2413_v3, %v2410_v60  ;;  %v2424_v59 = vor.u32 %v2423_v21, %v7646_v7  ;;  %v2437_v2 = vrot.slane %v2435_v55, 5  ;;  %v2401_v26 = vrot.slane %v2400_v41, 4  ;;  %v5444_v60 = vld [vmem:[%s6677_s6 + $0xc] sm:$0xe] }
  0xc5   : > { %6154 = vmatprep.mubr.msk.bf16.mxu1 %vm699_vm3, %v6447_v43  ;;  %v6448_v43 = vld [vmem:[%s6677_s6 + $0x60] sm:$0xff]   ;;  %v2443_v40 = vrot.slane %v2441_v54, 5  ;;  %v2447_v0 = vrot.slane %v2445_v61, 4  ;;  %v2451_v34 = vshll.u32 %v7654_v22, 16  ;;  %v6449_v3 = vld [vmem:[%s6677_s6 + $0x6c] sm:$0xff]   ;;  %v2358_v19 = vsel %vm6728_vm4, %v7636_v56, %v7612_v12 }
  0xc6   : > { %v2429_v33 = vrot.slane %v2427_v47, 5  ;;  %v2438_v1 = vor.u32 %v2437_v2, %v2434_v53  ;;  %v2814_v21 = vrot.slane %v7192_v16, 5  ;;  %v2415_v41 = vrot.slane %v2414_v37, 4 }
  0xc7   : > { %v2425_v55 = vrot.slane %v2424_v59, 4  ;;  %v2448_v54 = vor.u32 %v2447_v0, %v2443_v40  ;;  %v4063_v61 = vrot.slane %v7661_v10, 2  ;;  %v2382_v12 = vsel %vm6728_vm4, %v2377_v39, %v2381_v31  ;;  %v5447_v31 = vld [vmem:[%s6677_s6 + $0x30] sm:$0xe]  ;;  %v6461_v10 = vld [vmem:[%s6677_s6 + $0x3c] sm:$0xff]  }
  0xc8   : > { %v2396_v16 = vsel %vm6728_vm4, %v2391_v29, %v7619_v63  ;;  %v5460_v53 = vrot.slane %v5444_v60, 9  ;;  %v2406_v0 = vsel %vm6728_vm4, %v2401_v26, %v2405_v58  ;;  %v2453_v47 = vrot.slane %v2451_v34, 5 }
  0xc9   : > { %6189 = vmatmul.mubr.msk.bf16.gmra.mxu0 %vm699_vm3, %v7553_v42  ;;  %v2372_v42 = vsel %vm6728_vm4, %v2367_v57, %v7596_v17  ;;  %v2449_v59 = vrot.slane %v2448_v54, 4  ;;  %6354 = vmatprep.subr.msk.bf16.mxu1 %vm748_vm0, %v4063_v61  ;;  %v9280_v17 = vsel %vm6728_vm4, %v7575_v14, %v7555_v9  ;;  %v9281_v26 = vsel %vm6728_vm4, %v7542_v44, %v7515_v18 }
  0xca   : > { %6192 = vmatprep.mubr.msk.bf16.mxu0 %vm699_vm3, %v7569_v49  ;;  %v2439_v49 = vrot.slane %v2438_v1, 4  ;;  %v5421_v63 = vcombine.low %v9281_v26, %v9280_v17  ;;  %v2816_v56 = vrot.slane %v2814_v21, 4  ;;  %v2817_v57 = vrot.slane %v7236_v23, 5 }
  0xcb   : > { %v9282_v39 = vsel %vm6728_vm4, %v7583_v28, %v7585_v8  ;;  %v9283_v9 = vsel %vm6728_vm4, %v7581_v13, %v7520_v51  ;;  %v2420_v18 = vsel %vm6728_vm4, %v2415_v41, %v7646_v7  ;;  %v2430_v23 = vsel %vm6728_vm4, %v2425_v55, %v2429_v33  ;;  %v5448_v13 = vld [vmem:[%s6677_s6 + $0x3c] sm:$0xe] }
  0xcc   : > { %6155 = vmatmul.mubr.msk.bf16.gmra.mxu1 %vm699_vm3, %v6448_v43  ;;  %v5422_v14 = vcombine.low %v9283_v9, %v9282_v39  ;;  %v9284_v44 = vsel %vm6728_vm4, %v7593_v25, %v7560_v45  ;;  %v5424_v8 = vcombine.low %v2372_v42, %v2382_v12  ;;  %v7725_v37 = vcombine.low %v2396_v16, %v2406_v0  ;;  %v6450_v43 = vld [vmem:[%s6677_s6 + $0x78] sm:$0xff]   ;;  %v5449_v45 = vld [vmem:[%s6677_s6 + $0x48] sm:$0xe]  ;;  %v5450_v42 = vld [vmem:[%s6677_s6 + $0x54] sm:$0xe] }
  0xcd   : > { %6158 = vmatprep.mubr.msk.bf16.mxu1 %vm699_vm3, %v6449_v3  ;;  %v5423_v28 = vcombine.low %v9284_v44, %v2358_v19  ;;  %v7729_v51 = vsel %vm7015_vm7, %v5460_v53, %v2814_v21  ;;  %v2444_v7 = vsel %vm6728_vm4, %v2439_v49, %v2443_v40  ;;  %v2454_v29 = vsel %vm6728_vm4, %v2449_v59, %v2453_v47  ;;  %v6451_v25 = vld [vmem:[%s6677_s6 + $0x84] sm:$0xff]   ;;  %v5453_v39 = vld [vmem:[%s6677_s6 + $0x78] sm:$0xe]  ;;  %v6452_v9 = vld [vmem:[%s6677_s6 + $0x90] sm:$0xff]  }
  0xce   : > { %v5463_v58 = vrot.slane %v5447_v31, 9  ;;  %v2835_v2 = vrot.slane %v7285_v11, 5  ;;  %v7741_v34 = vcombine.low %v2420_v18, %v2430_v23  ;;  %v7745_v60 = vsel %vm7015_vm7, %v2816_v56, %v2817_v57  ;;  %v6453_v23 = vld [vmem:[%s6677_s6 + $0x9c] sm:$0xff]  }
  0xcf   : > { %v2821_v3 = vrot.slane %v7240_v20, 5  ;;  %v2838_v40 = vrot.slane %v7310_v15, 5  ;;  %v5464_v33 = vrot.slane %v5448_v13, 9  ;;  %v2842_v1 = vrot.slane %v7315_v62, 5 }
  0xd0   : > { %v7752_v11 = vsel %vm7015_vm7, %v5463_v58, %v2835_v2  ;;  %v2837_v19 = vrot.slane %v2835_v2, 4  ;;  %v7755_v21 = vcombine.low %v2444_v7, %v2454_v29  ;;  %v2845_v41 = vrot.slane %v7352_v48, 5  ;;  %v5451_v48 = vld [vmem:[%s6677_s6 + $0x60] sm:$0xe]  ;;  %v5454_v58 = vld [vmem:[%s6677_s6 + $0x84] sm:$0xe] }
  0xd1   : > { %6193 = vmatmul.mubr.msk.bf16.gmra.mxu0 %vm699_vm3, %v5421_v63  ;;  %v5465_v55 = vrot.slane %v5449_v45, 9  ;;  %v2849_v54 = vrot.slane %v7330_v4, 5  ;;  %v2828_v15 = vrot.slane %v7268_v50, 5  ;;  %v7768_v62 = vsel %vm7015_vm7, %v5464_v33, %v2842_v1  ;;  %v5452_v63 = vld [vmem:[%s6677_s6 + $0x6c] sm:$0xe] }
  0xd2   : > { %6196 = vmatprep.mubr.msk.bf16.mxu0 %vm699_vm3, %v5422_v14  ;;  %v7764_v12 = vsel %vm7015_vm7, %v2837_v19, %v2838_v40  ;;  %v2844_v16 = vrot.slane %v2842_v1, 4  ;;  %v2852_v49 = vrot.slane %v7375_v24, 5  ;;  %v5466_v47 = vrot.slane %v5450_v42, 9  ;;  %v9285_v19 = vld [vmem:[#allocation11_spill] sm:$0xff]  ;;  %v9287_v42 = vld [vmem:[#allocation14_spill] sm:$0xff] }
  0xd3   : > { %v5479_v4 = vcombine.low %v7752_v11, %v7764_v12  ;;  %v7776_v53 = vsel %vm7015_vm7, %v5465_v55, %v2849_v54  ;;  %v2851_v0 = vrot.slane %v2849_v54, 4  ;;  %v2856_v17 = vrot.slane %v7359_v27, 5  ;;  %v9286_v55 = vld [vmem:[#allocation9_spill] sm:$0xff] }
  0xd4   : > { %6159 = vmatmul.mubr.msk.bf16.gmra.mxu1 %vm699_vm3, %v6450_v43  ;;  %v7781_v59 = vsel %vm7015_vm7, %v2844_v16, %v2845_v41  ;;  %v2859_v26 = vrot.slane %v7387_v46, 5  ;;  %v5467_v31 = vrot.slane %v5451_v48, 9  ;;  %v2863_v24 = vrot.slane %v7413_v5, 5  ;;  %v5456_v48 = vld [vmem:[%s6677_s6 + $0x9c] sm:$0xe] }
  0xd5   : > { %6162 = vmatprep.mubr.msk.bf16.mxu1 %vm699_vm3, %v6451_v25  ;;  %v5480_v56 = vcombine.low %v7768_v62, %v7781_v59  ;;  %v7790_v57 = vsel %vm7015_vm7, %v2851_v0, %v2852_v49  ;;  %v7799_v27 = vsel %vm7015_vm7, %v5466_v47, %v2856_v17  ;;  %v2858_v46 = vrot.slane %v2856_v17, 4  ;;  %v5455_v25 = vld [vmem:[%s6677_s6 + $0x90] sm:$0xe]  ;;  %v9288_v17 = vld [vmem:[#allocation12_spill] sm:$0xff]  ;;  %v8027_v0 = vld [vmem:[%s6677_s6 + $0x38] sm:$0x1] }
  0xd6   : > { %v5481_v14 = vcombine.low %v7776_v53, %v7790_v57  ;;  %v2866_v18 = vrot.slane %v7442_v32, 5  ;;  %v7806_v5 = vsel %vm7015_vm7, %v5467_v31, %v2863_v24  ;;  %v2865_v44 = vrot.slane %v2863_v24, 4 }
  0xd7   : > { %v5468_v13 = vrot.slane %v5452_v63, 9  ;;  %v2870_v43 = vrot.slane %v7439_v6, 5  ;;  %v7812_v7 = vsel %vm7015_vm7, %v2858_v46, %v2859_v26  ;;  %v2873_v32 = vrot.slane %v7447_v52, 5  ;;  %v5457_v63 = vld [vmem:[%s6677_s6 + $0xa8] sm:$0xe] }
  0xd8   : > { %v5469_v29 = vrot.slane %v5453_v39, 9  ;;  %v7821_v45 = vsel %vm7015_vm7, %v2865_v44, %v2866_v18  ;;  %v2880_v33 = vrot.slane %v9285_v19, 5  ;;  %v5470_v41 = vrot.slane %v5454_v58, 9  ;;  %v6454_v18 = vld [vmem:[%s6677_s6 + $0xa8] sm:$0xff]  }
  0xd9   : > { %6197 = vmatmul.mubr.msk.bf16.gmra.mxu0 %vm699_vm3, %v5423_v28  ;;  %v2877_v28 = vrot.slane %v7467_v38, 5  ;;  %v7825_v6 = vsel %vm7015_vm7, %v5468_v13, %v2870_v43  ;;  %v2884_v54 = vrot.slane %v9286_v55, 5  ;;  %v2887_v16 = vrot.slane %v9287_v42, 5  ;;  %v9291_v58 = vld [vmem:[#allocation17_spill] sm:$0xff]  ;;  %v5459_v42 = vld [vmem:[%s6677_s6 + $0xc0] sm:$0xe] }
  0xda   : > { %6200 = vmatprep.mubr.msk.bf16.mxu0 %vm699_vm3, %v5424_v8  ;;  %v2872_v8 = vrot.slane %v2870_v43, 4  ;;  %v5471_v47 = vrot.slane %v5455_v25, 9  ;;  %v2891_v26 = vrot.slane %v9288_v17, 5  ;;  %v5472_v13 = vrot.slane %v5456_v48, 9  ;;  %v9290_v43 = vld [vmem:[#allocation15_spill] sm:$0xff] }
  0xdb   : > { %v7833_v38 = vsel %vm7015_vm7, %v5469_v29, %v2877_v28  ;;  %v2879_v40 = vrot.slane %v2877_v28, 4  ;;  %v7856_v24 = vsel %vm7015_vm7, %v5470_v41, %v2884_v54  ;;  %v2886_v39 = vrot.slane %v2884_v54, 4  ;;  %v6455_v29 = vld [vmem:[%s6677_s6 + $0xb4] sm:$0xff]  }
  0xdc   : > { %6163 = vmatmul.mubr.msk.bf16.gmra.mxu1 %vm699_vm3, %v6452_v9  ;;  %v7839_v1 = vsel %vm7015_vm7, %v2872_v8, %v2873_v32  ;;  %v9289_v9 = vld [vmem:[#allocation8_spill] sm:$0xff]  ;;  %v2893_v44 = vrot.slane %v2891_v26, 4  ;;  %v2898_v32 = vrot.slane %v9290_v43, 5  ;;  %v2901_v8 = vrot.slane %v9291_v58, 5 }
  0xdd   : > { %6166 = vmatprep.mubr.msk.bf16.mxu1 %vm699_vm3, %v6453_v23  ;;  %v7848_v49 = vsel %vm7015_vm7, %v2879_v40, %v2880_v33  ;;  %v2894_v46 = vrot.slane %v9289_v9, 5  ;;  %v7862_v23 = vsel %vm7015_vm7, %v5471_v47, %v2891_v26  ;;  %v7870_v28 = vsel %vm7015_vm7, %v2886_v39, %v2887_v16  ;;  %v9292_v40 = vld [vmem:[#allocation16_spill] sm:$0xff]  ;;  %v5458_v33 = vld [vmem:[%s6677_s6 + $0xb4] sm:$0xe]  ;;  %v9293_v47 = vld [vmem:[#allocation19_spill] sm:$0xff] }
  0xde   : > { %v5473_v25 = vrot.slane %v5457_v63, 9  ;;  %v2905_v19 = vrot.slane %v9292_v40, 5  ;;  %v7885_v55 = vsel %vm7015_vm7, %v5472_v13, %v2898_v32  ;;  %v2900_v54 = vrot.slane %v2898_v32, 4  ;;  %v9294_v39 = vld [vmem:[#allocation18_spill] sm:$0xff]  ;;  %v5655_v43 = vld [vmem:[%s6677_s6 + $0x24] sm:$0xe] }
  0xdf   : > { %v2908_v17 = vrot.slane %v9293_v47, 5  ;;  %v5474_v63 = vrot.slane %v5458_v33, 9  ;;  %v2912_v9 = vrot.slane %v9294_v39, 5  ;;  %v5445_v13 = vld [vmem:[%s6677_s6 + $0x18] sm:$0xe]  ;;  %v5475_v32 = vrot.slane %v5459_v42, 9 }
  0xe0   : > { %v2907_v48 = vrot.slane %v2905_v19, 4  ;;  %v7898_v26 = vsel %vm7015_vm7, %v2900_v54, %v2901_v8  ;;  %v2919_v58 = vrot.slane %v7644_v36, 5  ;;  %v6457_v8 = vld [vmem:[%s6677_s6 + $0x18] sm:$0xff]   ;;  %v5446_v33 = vld [vmem:[%s6677_s6 + $0x24] sm:$0xe]  ;;  %v5461_v47 = vrot.slane %v5445_v13, 9 }
  0xe1   : > { %6201 = vmatmul.mubr.msk.bf16.gmra.mxu0 %vm699_vm3, %v7725_v37  ;;  %v7881_v37 = vsel %vm7015_vm7, %v2893_v44, %v2894_v46  ;;  %v9295_v46 = vld [vmem:[#allocation20_spill] sm:$0xff]  ;;  %v7916_v40 = vsel %vm7015_vm7, %v5474_v63, %v2912_v9  ;;  %v6476_v36 = vld [vmem:[%s6677_s6 + $0x20] sm:$0x1]  ;;  %v2823_v63 = vrot.slane %v2821_v3, 4 }
  0xe2   : > { %6204 = vmatprep.mubr.msk.bf16.mxu0 %vm699_vm3, %v7741_v34  ;;  %v7892_v34 = vsel %vm7015_vm7, %v5473_v25, %v2905_v19  ;;  %v2915_v44 = vrot.slane %v9295_v46, 5  ;;  %v2922_v19 = vrot.slane %v7654_v22, 5  ;;  %v7922_v54 = vsel %vm7015_vm7, %v5475_v32, %v2919_v58  ;;  %v6456_v42 = vld [vmem:[%s6677_s6 + $0xc0] sm:$0xff]  }
  0xe3   : > { %v5476_v22 = vcombine.low %v7729_v51, %v7745_v60  ;;  %v2830_v51 = vrot.slane %v2828_v15, 4  ;;  %v9296_v60 = vld [vmem:[#allocation10_spill] sm:$0xff]  ;;  %v2822_v32 = vsel %vm7015_vm7, %v5461_v47, %v2821_v3  ;;  %v5576_v47 = vld [vmem:[%s6677_s6 + $0x24] sm:$0xf] }
  0xe4   : > { %6167 = vmatmul.mubr.msk.bf16.gmra.mxu1 %vm699_vm3, %v6454_v18  ;;  %v7908_v18 = vsel %vm7015_vm7, %v2907_v48, %v2908_v17  ;;  %v2921_v48 = vrot.slane %v2919_v58, 4  ;;  %v2824_v17 = vrot.slane %v6476_v36, 5  ;;  %v7968_v36 = vld [vmem:[%s6677_s6 + $0x1c] sm:$0xf] }
  0xe5   : > { %6170 = vmatprep.mubr.msk.bf16.mxu1 %vm699_vm3, %v6455_v29  ;;  %v2914_v29 = vrot.slane %v2912_v9, 4  ;;  %v5579_v9 = vld [vmem:[%s6677_s6 + $0x30] sm:$0xf] }
  0xe6   : > { %v7940_v46 = vsel %vm7015_vm7, %v2921_v48, %v2922_v19  ;;  %v2825_v58 = vsel %vm7015_vm7, %v2823_v63, %v2824_v17  ;;  %v5573_v48 = vld [vmem:[%s6677_s6 + $0x18] sm:$0xf]  ;;  %v4113_v63 = vsel %vm748_vm0, %v4063_v61, 0 }
  0xe7   : > { %v7928_v39 = vsel %vm7015_vm7, %v2914_v29, %v2915_v44  ;;  %v5462_v44 = vrot.slane %v5446_v33, 9  ;;  %v6460_v33 = vld [vmem:[%s6677_s6 + $0x30] sm:$0xff]   ;;  %v5477_v3 = vcombine.low %v2822_v32, %v2825_v58  ;;  %v3628_v17 = vshrl.u32 %v5573_v48, 16 }
  0xe9   : > { %6205 = vmatmul.mubr.msk.bf16.gmra.mxu0 %vm699_vm3, %v7755_v21  ;;  %v2831_v21 = vrot.slane %v9296_v60, 5  ;;  %v2829_v29 = vsel %vm7015_vm7, %v5462_v44, %v2828_v15  ;;  %v3631_v15 = vshll.u32 %v5573_v48, 16  ;;  %v3637_v44 = vshll.u32 %v7968_v36, 16 }
  0xea   : > { %6244 = vmatprep.mubr.msk.bf16.mxu0 %vm699_vm3, %v6457_v8  ;;  %v6459_v8 = vld [vmem:[%s6677_s6 + $0x24] sm:$0xff]   ;;  %v3652_v60 = vshrl.u32 %v5576_v47, 16  ;;  %v3630_v61 = vrot.slane %v3628_v17, 4 }
  0xeb   : > { %v2832_v19 = vsel %vm7015_vm7, %v2830_v51, %v2831_v21  ;;  %v3641_v51 = vshrl.u32 %v7968_v36, 16  ;;  %v3655_v21 = vshll.u32 %v5576_v47, 16 }
  0xec   : > { %6171 = vmatmul.mubr.msk.bf16.gmra.mxu1 %vm699_vm3, %v6456_v42  ;;  %v9297_v42 = vld [vmem:[#allocation13_spill] sm:$0xff]  ;;  %v5478_v50 = vcombine.low %v2829_v29, %v2832_v19  ;;  %v5575_v19 = vld [vmem:[%s6677_s6 + $0x20] sm:$0x1] }
  0xed   : > { %6210 = vmatprep.mubr.msk.bf16.mxu1 %vm699_vm3, %v5476_v22  ;;  %v4582_v20 = vsel %vm748_vm0, %v9297_v42, 0  ;;  %v7972_v22 = vld [vmem:[%s6677_s6 + $0x28] sm:$0xf]  ;;  %v3643_v48 = vrot.slane %v3641_v51, 4  ;;  %v3654_v42 = vrot.slane %v3652_v60, 4  ;;  %v4374_v60 = vrot.slane %v7968_v36, 5 }
  0xee   : > { %v3661_v32 = vshll.u32 %v7972_v22, 16  ;;  %v3665_v58 = vshrl.u32 %v7972_v22, 16  ;;  %v6462_v29 = vld [vmem:[%s6677_s6 + $0x48] sm:$0xff]   ;;  %v5654_v51 = vld [vmem:[%s6677_s6 + $0x18] sm:$0xe]  ;;  %v6464_v36 = vld [vmem:[%s6677_s6 + $0x60] sm:$0xff]  }
  0xef   : > { %v5670_v12 = vrot.slane %v5654_v51, 9  ;;  %v4376_v25 = vrot.slane %v4374_v60, 4  ;;  %v4381_v31 = vrot.slane %v7972_v22, 5  ;;  %v5582_v51 = vld [vmem:[%s6677_s6 + $0x3c] sm:$0xf] }
  0xf0   : > { %v7990_v47 = vrot.slane %v3661_v32, 5  ;;  %v3667_v13 = vrot.slane %v3665_v58, 4  ;;  %v3679_v32 = vshll.u32 %v5579_v9, 16 }
  0xf1   : > { %6245 = vmatmul.mubr.msk.bf16.vlgmr.msra.gmra.mxu0 %vm699_vm3, %v6459_v8  ;;  %v3633_v8 = vrot.slane %v3631_v15, 5  ;;  %v3647_v15 = vshll.u32 %v5575_v19, 16  ;;  %v8041_v22 = vsel %vm7015_vm7, %v5670_v12, %v4374_v60 }
  0xf2   : > { %6311 = vmatpush3.bf16.msra.mxu0 %v4582_v20  ;;  %6248 = vmatprep.mubr.msk.bf16.mxu0 %vm699_vm3, %v6460_v33  ;;  %v7988_v33 = vrot.slane %v3637_v44, 5  ;;  %v3657_v20 = vrot.slane %v3655_v21, 5  ;;  %v3676_v21 = vshrl.u32 %v5579_v9, 16  ;;  %v6463_v9 = vld [vmem:[%s6677_s6 + $0x54] sm:$0xff]   ;;  %v3681_v41 = vrot.slane %v3679_v32, 5 }
  0xf3   : > { %v3634_v17 = vor.u32 %v3633_v8, %v3630_v61  ;;  %v3649_v11 = vrot.slane %v3647_v15, 5 }
  0xf4   : > { %6211 = vmatmul.mubr.msk.bf16.vlgmr.msra.gmra.mxu1 %vm699_vm3, %v5477_v3  ;;  %v7994_v3 = vld [vmem:[%s6677_s6 + $0x2c] sm:$0x1]  ;;  %v3644_v44 = vor.u32 %v3643_v48, %v7988_v33  ;;  %v3658_v58 = vor.u32 %v3657_v20, %v3654_v42  ;;  %v3678_v16 = vrot.slane %v3676_v21, 4 }
  0xf5   : > { %6277 = vmatpush3.bf16.msra.mxu1 %v4113_v63  ;;  %6214 = vmatprep.mubr.msk.bf16.mxu1 %vm699_vm3, %v5478_v50  ;;  %v7997_v50 = vpop.f32.mrf.mxu0  ;;  %v8000_v63 = vld [vmem:[%s6677_s6 + $0x34] sm:$0xf]  ;;  %v3671_v61 = vshll.u32 %v7994_v3, 16  ;;  %v3635_v42 = vrot.slane %v3634_v17, 4 }
  0xf6   : > { %v3685_v8 = vshll.u32 %v8000_v63, 16  ;;  %v3645_v20 = vrot.slane %v3644_v44, 4  ;;  %v3659_v62 = vrot.slane %v3658_v58, 4  ;;  %v5671_v44 = vrot.slane %v5655_v43, 9 }
  0xf7   : > { %v8022_v48 = vpop.f32.mrf.mxu0  ;;  %v3640_v15 = vsel %vm6728_vm4, %v3635_v42, %v7988_v33  ;;  %v4384_v58 = vrot.slane %v7994_v3, 5  ;;  %v3682_v33 = vor.u32 %v3681_v41, %v3678_v16  ;;  %v4388_v16 = vrot.slane %v8000_v63, 5 }
  0xf8   : > { %v8029_v52 = vrot.slane %v3685_v8, 5  ;;  %v3650_v21 = vsel %vm6728_vm4, %v3645_v20, %v3649_v11  ;;  %v3664_v60 = vsel %vm6728_vm4, %v3659_v62, %v7990_v47  ;;  %v5656_v8 = vld [vmem:[%s6677_s6 + $0x30] sm:$0xe]  ;;  %v9300_v3 = vcombine.low %v7799_v27, %v7812_v7  ;;  %v5585_v27 = vld [vmem:[%s6677_s6 + $0x48] sm:$0xf] }
  0xf9   : > { %6249 = vmatmul.mubr.msk.bf16.gmra.mxu0 %vm699_vm3, %v6461_v10  ;;  %v3668_v10 = vor.u32 %v3667_v13, %v7990_v47  ;;  %v8020_v13 = vpop.f32.mrf.mxu1  ;;  %v8034_v17 = vpop.f32.mrf.mxu0  ;;  %v3703_v47 = vshll.u32 %v5582_v51, 16  ;;  %v8078_v57 = vcombine.low %v3640_v15, %v3650_v21  ;;  %v3683_v7 = vrot.slane %v3682_v33, 4  ;;  %v8101_v33 = vld [vmem:[%s6677_s6 + $0x58] sm:$0xf] }
  0xfa   : > { %6252 = vmatprep.mubr.msk.bf16.mxu0 %vm699_vm3, %v6462_v29  ;;  %v3689_v29 = vshrl.u32 %v8000_v63, 16  ;;  %9298 = vst [vmem:[#allocation11_spill] sm:$0xff] %v8020_v13  ;;  %v5672_v63 = vrot.slane %v5656_v8, 9 }
  0xfb   : > { %v3669_v59 = vrot.slane %v3668_v10, 4  ;;  %v4383_v10 = vrot.slane %v4381_v31, 4  ;;  %v8076_v53 = vpop.f32.mrf.mxu0  ;;  %v3705_v21 = vrot.slane %v3703_v47, 5 }
  0xfc   : > { %6215 = vmatmul.mubr.msk.bf16.gmra.mxu1 %vm699_vm3, %v5479_v4  ;;  %v4377_v4 = vrot.slane %v5575_v19, 5  ;;  %v3691_v2 = vrot.slane %v3689_v29, 4  ;;  %v8032_v19 = vpop.f32.mrf.mxu1  ;;  %v8060_v29 = vld [vmem:[%s6677_s6 + $0x40] sm:$0xf] }
  0xfd   : > { %6218 = vmatprep.mubr.msk.bf16.mxu1 %vm699_vm3, %v5480_v56  ;;  %v3673_v56 = vrot.slane %v3671_v61, 5  ;;  %9299 = vst [vmem:[#allocation9_spill] sm:$0xff] %v8032_v19  ;;  %v3695_v61 = vshll.u32 %v8027_v0, 16  ;;  %v3709_v11 = vshll.u32 %v8060_v29, 16  ;;  %v3713_v12 = vshrl.u32 %v8060_v29, 16 }
  0xfe   : > { %v8049_v32 = vsel %vm7015_vm7, %v4376_v25, %v4377_v4  ;;  %v3692_v41 = vor.u32 %v3691_v2, %v8029_v52  ;;  %v3700_v25 = vshrl.u32 %v5582_v51, 16  ;;  %v8074_v42 = vpop.f32.mrf.mxu1  ;;  %v8084_v2 = vsel %vm7015_vm7, %v5671_v44, %v4381_v31  ;;  %v8090_v4 = vld [vmem:[%s6677_s6 + $0x4c] sm:$0xf] }
  0xff   : > { %v3674_v43 = vsel %vm6728_vm4, %v3669_v59, %v3673_v56  ;;  %9301 = vst [vmem:[#allocation14_spill] sm:$0xff] %v8074_v42  ;;  %v8096_v62 = vsel %vm7015_vm7, %v4383_v10, %v4384_v58  ;;  %v3697_v59 = vrot.slane %v3695_v61, 5  ;;  %v4391_v31 = vrot.slane %v8027_v0, 5  ;;  %v5588_v56 = vld [vmem:[%s6677_s6 + $0x54] sm:$0xf] }
 0x100   : > { %v8092_v20 = vcombine.low %v3664_v60, %v3674_v43  ;;  %v3693_v15 = vrot.slane %v3692_v41, 4  ;;  %v4390_v44 = vrot.slane %v4388_v16, 4  ;;  %v3702_v51 = vrot.slane %v3700_v25, 4  ;;  %v8104_v8 = vpop.f32.mrf.mxu1  ;;  %v8109_v43 = vld [vmem:[%s6677_s6 + $0x44] sm:$0x1] }
 0x101   : > { %6253 = vmatmul.mubr.msk.bf16.gmra.mxu0 %vm699_vm3, %v6463_v9  ;;  %v6465_v9 = vld [vmem:[%s6677_s6 + $0x6c] sm:$0xff]   ;;  %9302 = vst [vmem:[#allocation12_spill] sm:$0xff] %v8104_v8  ;;  %v3724_v58 = vshrl.u32 %v5585_v27, 16  ;;  %v3727_v10 = vshll.u32 %v5585_v27, 16  ;;  %v3733_v0 = vshll.u32 %v8090_v4, 16  ;;  %v3737_v61 = vshrl.u32 %v8090_v4, 16 }
 0x102   : > { %6256 = vmatprep.mubr.msk.bf16.mxu0 %vm699_vm3, %v6464_v36  ;;  %v6466_v36 = vld [vmem:[%s6677_s6 + $0x78] sm:$0xff]   ;;  %v3688_v41 = vsel %vm6728_vm4, %v3683_v7, %v8029_v52  ;;  %v8119_v25 = vsel %vm7015_vm7, %v5672_v63, %v4388_v16  ;;  %v8121_v47 = vrot.slane %v3709_v11, 5  ;;  %v3748_v27 = vshrl.u32 %v5588_v56, 16  ;;  %v6467_v52 = vld [vmem:[%s6677_s6 + $0x84] sm:$0xff]  }
 0x103   : > { %v3757_v8 = vshll.u32 %v8101_v33, 16  ;;  %v9303_v42 = vcombine.low %v7806_v5, %v7821_v45  ;;  %v3698_v16 = vsel %vm6728_vm4, %v3693_v15, %v3697_v59  ;;  %v8135_v7 = vsel %vm7015_vm7, %v4390_v44, %v4391_v31  ;;  %v6468_v44 = vld [vmem:[%s6677_s6 + $0x90] sm:$0xff]  }
 0x104   : > { %6219 = vmatmul.mubr.msk.bf16.gmra.mxu1 %vm699_vm3, %v5481_v14  ;;  %v3751_v14 = vshll.u32 %v5588_v56, 16  ;;  %v3706_v63 = vor.u32 %v3705_v21, %v3702_v51  ;;  %v3719_v11 = vshll.u32 %v8109_v43, 16  ;;  %v3726_v59 = vrot.slane %v3724_v58, 4 }
 0x105   : > { %6222 = vmatprep.mubr.msk.bf16.mxu1 %vm699_vm3, %v9300_v3  ;;  %v3715_v3 = vrot.slane %v3713_v12, 4  ;;  %v9304_v12 = vcombine.low %v7825_v6, %v7839_v1  ;;  %v3729_v56 = vrot.slane %v3727_v10, 5  ;;  %v8149_v15 = vrot.slane %v3733_v0, 5  ;;  %v5659_v0 = vld [vmem:[%s6677_s6 + $0x54] sm:$0xe] }
 0x106   : > { %v3739_v31 = vrot.slane %v3737_v61, 4  ;;  %v4395_v1 = vrot.slane %v8060_v29, 5  ;;  %v3753_v19 = vrot.slane %v3751_v14, 5  ;;  %v8159_v13 = vrot.slane %v3757_v8, 5 }
 0x107   : > { %v8106_v60 = vpop.f32.mrf.mxu0  ;;  %v3716_v21 = vor.u32 %v3715_v3, %v8121_v47  ;;  %v8161_v10 = vcombine.low %v3688_v41, %v3698_v16  ;;  %v8165_v61 = vrot.slane %v3706_v63, 4  ;;  %v8173_v14 = vrot.slane %v3719_v11, 5 }
 0x108   : > { %v3730_v8 = vor.u32 %v3729_v56, %v3726_v59  ;;  %v3740_v41 = vor.u32 %v3739_v31, %v8149_v15  ;;  %v4398_v63 = vrot.slane %v8109_v43, 5  ;;  %v4397_v59 = vrot.slane %v4395_v1, 4 }
 0x109   : > { %6257 = vmatmul.mubr.msk.bf16.gmra.mxu0 %vm699_vm3, %v6465_v9  ;;  %v5657_v9 = vld [vmem:[%s6677_s6 + $0x3c] sm:$0xe]  ;;  %v8144_v45 = vpop.f32.mrf.mxu0  ;;  %v8179_v16 = vrot.slane %v3716_v21, 4  ;;  %v9308_v21 = vcombine.low %v7833_v38, %v7848_v49  ;;  %v3712_v43 = vsel %vm6728_vm4, %v8165_v61, %v8121_v47  ;;  %v8210_v47 = vld [vmem:[%s6677_s6 + $0x64] sm:$0xf]  ;;  %v6470_v61 = vld [vmem:[%s6677_s6 + $0xa8] sm:$0xff]  }
 0x10a   : > { %6260 = vmatprep.mubr.msk.bf16.mxu0 %vm699_vm3, %v6466_v36  ;;  %v3761_v36 = vshrl.u32 %v8101_v33, 16  ;;  %v8142_v5 = vpop.f32.mrf.mxu1  ;;  %v5673_v6 = vrot.slane %v5657_v9, 9  ;;  %v3731_v49 = vrot.slane %v3730_v8, 4 }
 0x10b   : > { %9305 = vst [vmem:[#allocation8_spill] sm:$0xff] %v8142_v5  ;;  %v3750_v5 = vrot.slane %v3748_v27, 4  ;;  %v8171_v9 = vpop.f32.mrf.mxu0  ;;  %v5658_v27 = vld [vmem:[%s6677_s6 + $0x48] sm:$0xe] }
 0x10c   : > { %6223 = vmatmul.mubr.msk.bf16.gmra.mxu1 %vm699_vm3, %v9303_v42  ;;  %v8147_v42 = vld [vmem:[%s6677_s6 + $0x50] sm:$0x1]  ;;  %v3763_v58 = vrot.slane %v3761_v36, 4  ;;  %v8169_v29 = vpop.f32.mrf.mxu1  ;;  %9307 = vst [vmem:[#allocation17_spill] sm:$0xff] %v8171_v9  ;;  %v4402_v36 = vrot.slane %v8090_v4, 5  ;;  %v4409_v4 = vrot.slane %v8101_v33, 5  ;;  %v9309_v33 = vcombine.low %v7856_v24, %v7870_v28 }
 0x10d   : > { %6226 = vmatprep.mubr.msk.bf16.mxu1 %vm699_vm3, %v9304_v12  ;;  %v8157_v12 = vld [vmem:[%s6677_s6 + $0x5c] sm:$0x1]  ;;  %v3743_v3 = vshll.u32 %v8147_v42, 16  ;;  %9306 = vst [vmem:[#allocation15_spill] sm:$0xff] %v8169_v29  ;;  %v3754_v56 = vor.u32 %v3753_v19, %v3750_v5  ;;  %v5674_v19 = vrot.slane %v5658_v27, 9  ;;  %v4405_v5 = vrot.slane %v8147_v42, 5  ;;  %v8207_v38 = vpop.f32.mrf.mxu0 }
 0x10e   : > { %v3767_v11 = vshll.u32 %v8157_v12, 16  ;;  %v3764_v31 = vor.u32 %v3763_v58, %v8159_v13  ;;  %v8205_v58 = vpop.f32.mrf.mxu1  ;;  %9311 = vst [vmem:[#allocation19_spill] sm:$0xff] %v8207_v38  ;;  %v4404_v51 = vrot.slane %v4402_v36, 4  ;;  %v5675_v29 = vrot.slane %v5659_v0, 9  ;;  %v8228_v9 = vld [vmem:[%s6677_s6 + $0x68] sm:$0x1] }
 0x10f   : > { %9310 = vst [vmem:[#allocation16_spill] sm:$0xff] %v8205_v58  ;;  %v3722_v24 = vsel %vm6728_vm4, %v8179_v16, %v8173_v14  ;;  %v3755_v27 = vrot.slane %v3754_v56, 4  ;;  %v4411_v58 = vrot.slane %v4409_v4, 4  ;;  %v4412_v8 = vrot.slane %v8157_v12, 5 }
 0x110   : > { %v3769_v28 = vrot.slane %v3767_v11, 5  ;;  %v8221_v0 = vsel %vm7015_vm7, %v4397_v59, %v4398_v63  ;;  %v8225_v38 = vsel %vm7015_vm7, %v5674_v19, %v4402_v36  ;;  %v3781_v14 = vshll.u32 %v8210_v47, 16  ;;  %v8233_v11 = vpop.f32.mrf.mxu1 }
 0x111   : > { %6261 = vmatmul.mubr.msk.bf16.gmra.mxu0 %vm699_vm3, %v6467_v52  ;;  %v8183_v52 = vsel %vm7015_vm7, %v5673_v6, %v4395_v1  ;;  %v6469_v6 = vld [vmem:[%s6677_s6 + $0x9c] sm:$0xff]   ;;  %v3745_v1 = vrot.slane %v3743_v3, 5  ;;  %v3785_v16 = vshrl.u32 %v8210_v47, 16  ;;  %9312 = vst [vmem:[#allocation18_spill] sm:$0xff] %v8233_v11  ;;  %v3736_v63 = vsel %vm6728_vm4, %v3731_v49, %v8149_v15 }
 0x112   : > { %6264 = vmatprep.mubr.msk.bf16.mxu0 %vm699_vm3, %v6468_v44  ;;  %v5591_v44 = vld [vmem:[%s6677_s6 + $0x60] sm:$0xf]  ;;  %v8244_v59 = vsel %vm7015_vm7, %v4404_v51, %v4405_v5  ;;  %v8248_v56 = vsel %vm7015_vm7, %v5675_v29, %v4409_v4  ;;  %v8261_v29 = vsel %vm7015_vm7, %v4411_v58, %v4412_v8  ;;  %v3791_v4 = vshll.u32 %v8228_v9, 16  ;;  %v5600_v8 = vld [vmem:[%s6677_s6 + $0x84] sm:$0xf] }
 0x113   : > { %v3772_v42 = vshrl.u32 %v5591_v44, 16  ;;  %v3775_v3 = vshll.u32 %v5591_v44, 16  ;;  %9314 = vst [vmem:[#allocation10_spill] sm:$0xff] %v8248_v56  ;;  %9315 = vst [vmem:[#allocation13_spill] sm:$0xff] %v8261_v29  ;;  %v9316_v5 = vcombine.low %v7862_v23, %v7881_v37  ;;  %v8268_v49 = vrot.slane %v3781_v14, 5  ;;  %v6471_v23 = vld [vmem:[%s6677_s6 + $0xb4] sm:$0xff]  }
 0x114   : > { %6227 = vmatmul.mubr.msk.bf16.gmra.mxu1 %vm699_vm3, %v9308_v21  ;;  %v3741_v21 = vrot.slane %v3740_v41, 4  ;;  %v5594_v41 = vld [vmem:[%s6677_s6 + $0x6c] sm:$0xf]  ;;  %v9317_v58 = vcombine.low %v7885_v55, %v7898_v26  ;;  %v5597_v55 = vld [vmem:[%s6677_s6 + $0x78] sm:$0xf]  ;;  %v6472_v26 = vld [vmem:[%s6677_s6 + $0xc0] sm:$0xff]  }
 0x115   : > { %6230 = vmatprep.mubr.msk.bf16.mxu1 %vm699_vm3, %v9309_v33  ;;  %v3765_v33 = vrot.slane %v3764_v31, 4  ;;  %v8251_v31 = vld [vmem:[%s6677_s6 + $0x70] sm:$0xf]  ;;  %v3774_v44 = vrot.slane %v3772_v42, 4  ;;  %v3796_v15 = vshrl.u32 %v5594_v41, 16  ;;  %v3799_v19 = vshll.u32 %v5594_v41, 16 }
 0x116   : > { %v3746_v36 = vsel %vm6728_vm4, %v3741_v21, %v3745_v1  ;;  %v3760_v1 = vsel %vm6728_vm4, %v3755_v27, %v8159_v13  ;;  %v3787_v21 = vrot.slane %v3785_v16, 4  ;;  %v5660_v13 = vld [vmem:[%s6677_s6 + $0x60] sm:$0xe]  ;;  %v4416_v14 = vrot.slane %v8210_v47, 5  ;;  %v8303_v27 = vld [vmem:[%s6677_s6 + $0x74] sm:$0x1] }
 0x117   : > { %v3770_v51 = vsel %vm6728_vm4, %v3765_v33, %v3769_v28  ;;  %v3809_v28 = vshrl.u32 %v8251_v31, 16  ;;  %v8286_v33 = vcombine.low %v3736_v63, %v3746_v36  ;;  %v3798_v16 = vrot.slane %v3796_v15, 4 }
 0x118   : > { %v8235_v12 = vpop.f32.mrf.mxu0  ;;  %v8300_v63 = vrot.slane %v3791_v4, 5  ;;  %v5676_v36 = vrot.slane %v5660_v13, 9  ;;  %v4419_v47 = vrot.slane %v8228_v9, 5  ;;  %v3823_v4 = vshll.u32 %v5597_v55, 16 }
 0x119   : > { %6265 = vmatmul.mubr.msk.bf16.gmra.mxu0 %vm699_vm3, %v6469_v6  ;;  %9313 = vst [vmem:[#allocation20_spill] sm:$0xff] %v8235_v12  ;;  %v3777_v6 = vrot.slane %v3775_v3, 5  ;;  %v8282_v3 = vcombine.low %v3712_v43, %v3722_v24  ;;  %v8296_v43 = vcombine.low %v3760_v1, %v3770_v51  ;;  %v3811_v15 = vrot.slane %v3809_v28, 4 }
 0x11a   : > { %6268 = vmatprep.mubr.msk.bf16.mxu0 %vm699_vm3, %v6470_v61  ;;  %v3805_v61 = vshll.u32 %v8251_v31, 16  ;;  %v8280_v37 = vpop.f32.mrf.mxu0  ;;  %v3820_v51 = vshrl.u32 %v5597_v55, 16  ;;  %v4418_v9 = vrot.slane %v4416_v14, 4  ;;  %v3815_v28 = vshll.u32 %v8303_v27, 16 }
 0x11b   : > { %9319 = vst [vmem:[#allocation22_spill] sm:$0xff] %v8280_v37  ;;  %v3778_v41 = vor.u32 %v3777_v6, %v3774_v44  ;;  %9320 = vst [vmem:[#allocation23_spill] sm:$0xff] %v8296_v43  ;;  %v3788_v44 = vor.u32 %v3787_v21, %v8268_v49  ;;  %v3847_v11 = vshll.u32 %v5600_v8, 16  ;;  %v9323_v37 = vcombine.low %v7892_v34, %v7908_v18  ;;  %v8349_v18 = vld [vmem:[%s6677_s6 + $0x80] sm:$0x1] }
 0x11c   : > { %6231 = vmatmul.mubr.msk.bf16.gmra.mxu1 %vm699_vm3, %v9316_v5  ;;  %v8277_v42 = vpop.f32.mrf.mxu1  ;;  %v3801_v5 = vrot.slane %v3799_v19, 5  ;;  %v8310_v6 = vrot.slane %v3805_v61, 5  ;;  %v8313_v19 = vld [vmem:[%s6677_s6 + $0x88] sm:$0xf]  ;;  %v8316_v1 = vpop.f32.mrf.mxu0  ;;  %v4423_v12 = vrot.slane %v8251_v31, 5  ;;  %v9326_v34 = vcombine.low %v7916_v40, %v7928_v39 }
 0x11d   : > { %6234 = vmatprep.mubr.msk.bf16.mxu1 %vm699_vm3, %v9317_v58  ;;  %9318 = vst [vmem:[#allocation21_spill] sm:$0xff] %v8277_v42  ;;  %v8294_v58 = vld [vmem:[%s6677_s6 + $0x7c] sm:$0xf]  ;;  %9322 = vst [vmem:[#allocation25_spill] sm:$0xff] %v8316_v1  ;;  %v8321_v21 = vrot.slane %v3778_v41, 4  ;;  %v3853_v1 = vshll.u32 %v8313_v19, 16 }
 0x11e   : > { %v8306_v42 = vpop.f32.mrf.mxu1  ;;  %v3829_v13 = vshll.u32 %v8294_v58, 16  ;;  %v3833_v24 = vshrl.u32 %v8294_v58, 16  ;;  %v3802_v61 = vor.u32 %v3801_v5, %v3798_v16  ;;  %v3857_v55 = vshrl.u32 %v8313_v19, 16  ;;  %v6473_v41 = vld [vmem:[%s6677_s6 + $0xcc] sm:$0xff]   ;;  %v8342_v43 = vpop.f32.mrf.mxu0 }
 0x11f   : > { %9321 = vst [vmem:[#allocation24_spill] sm:$0xff] %v8306_v42  ;;  %v5661_v42 = vld [vmem:[%s6677_s6 + $0x6c] sm:$0xe]  ;;  %v8334_v16 = vrot.slane %v3788_v44, 4  ;;  %v8338_v5 = vsel %vm7015_vm7, %v5676_v36, %v4416_v14  ;;  %9325 = vst [vmem:[#allocation27_spill] sm:$0xff] %v8342_v43  ;;  %v3825_v44 = vrot.slane %v3823_v4, 5  ;;  %v8355_v14 = vsel %vm7015_vm7, %v4418_v9, %v4419_v47 }
 0x120   : > { %v3835_v29 = vrot.slane %v3833_v24, 4  ;;  %v3803_v36 = vrot.slane %v3802_v61, 4  ;;  %v3817_v31 = vrot.slane %v3815_v28, 5  ;;  %v8358_v43 = vld [vmem:[%s6677_s6 + $0x8c] sm:$0x1]  ;;  %v3849_v39 = vrot.slane %v3847_v11, 5 }
 0x121   : > { %6269 = vmatmul.mubr.msk.bf16.gmra.mxu0 %vm699_vm3, %v6471_v23  ;;  %v3844_v23 = vshrl.u32 %v5600_v8, 16  ;;  %v3812_v8 = vor.u32 %v3811_v15, %v8310_v6  ;;  %v5677_v15 = vrot.slane %v5661_v42, 9  ;;  %v3859_v56 = vrot.slane %v3857_v55, 4  ;;  %v5662_v61 = vld [vmem:[%s6677_s6 + $0x78] sm:$0xe] }
 0x122   : > { %6272 = vmatprep.mubr.msk.bf16.mxu0 %vm699_vm3, %v6472_v26  ;;  %v8331_v26 = vpop.f32.mrf.mxu1  ;;  %v4426_v24 = vrot.slane %v8303_v27, 5  ;;  %v3839_v47 = vshll.u32 %v8349_v18, 16  ;;  %v3784_v11 = vsel %vm6728_vm4, %v8321_v21, %v8268_v49  ;;  %v4430_v28 = vrot.slane %v8294_v58, 5 }
 0x123   : > { %9324 = vst [vmem:[#allocation26_spill] sm:$0xff] %v8331_v26  ;;  %v8351_v26 = vrot.slane %v3829_v13, 5  ;;  %v3846_v40 = vrot.slane %v3844_v23, 4  ;;  %v3813_v4 = vrot.slane %v3812_v8, 4  ;;  %v4425_v13 = vrot.slane %v4423_v12, 4 }
 0x124   : > { %6235 = vmatmul.mubr.msk.bf16.gmra.mxu1 %vm699_vm3, %v9323_v37  ;;  %v3822_v37 = vrot.slane %v3820_v51, 4  ;;  %v8362_v51 = vpop.f32.mrf.mxu1  ;;  %v9327_v27 = vcombine.low %v8041_v22, %v8049_v32  ;;  %v3794_v23 = vsel %vm6728_vm4, %v8334_v16, %v8300_v63  ;;  %v8388_v21 = vsel %vm7015_vm7, %v5677_v15, %v4423_v12  ;;  %v5603_v16 = vld [vmem:[%s6677_s6 + $0x90] sm:$0xf] }
 0x125   : > { %6238 = vmatprep.mubr.msk.bf16.mxu1 %vm699_vm3, %v9326_v34  ;;  %v8360_v34 = vrot.slane %v3853_v1, 5  ;;  %v3836_v1 = vor.u32 %v3835_v29, %v8351_v26  ;;  %v3863_v29 = vshll.u32 %v8358_v43, 16  ;;  %v3808_v22 = vsel %vm6728_vm4, %v3803_v36, %v8310_v6 }
 0x126   : > { %v3826_v42 = vor.u32 %v3825_v44, %v3822_v37  ;;  %v3850_v32 = vor.u32 %v3849_v39, %v3846_v40  ;;  %v4437_v63 = vrot.slane %v8313_v19, 5  ;;  %v9328_v12 = vcombine.low %v7922_v54, %v7940_v46 }
 0x127   : > { %v3860_v55 = vor.u32 %v3859_v56, %v8360_v34  ;;  %v3818_v37 = vsel %vm6728_vm4, %v3813_v4, %v3817_v31  ;;  %v8410_v6 = vsel %vm7015_vm7, %v4425_v13, %v4426_v24  ;;  %v3841_v56 = vrot.slane %v3839_v47, 5  ;;  %v8420_v4 = vld [vmem:[%s6677_s6 + $0x94] sm:$0xf] }
 0x128   : > { %v5678_v44 = vrot.slane %v5662_v61, 9  ;;  %v3827_v19 = vrot.slane %v3826_v42, 4  ;;  %v3837_v15 = vrot.slane %v3836_v1, 4  ;;  %v4432_v40 = vrot.slane %v4430_v28, 4 }
 0x129   : > { %v8366_v9 = vpop.f32.mrf.mxu0  ;;  %6273 = vmatmul.mubr.msk.bf16.gmra.mxu0 %vm699_vm3, %v6473_v41  ;;  %v5663_v41 = vld [vmem:[%s6677_s6 + $0x84] sm:$0xe]  ;;  %v4433_v54 = vrot.slane %v8349_v18, 5  ;;  %v3865_v31 = vrot.slane %v3863_v29, 5  ;;  %v3868_v13 = vshrl.u32 %v5603_v16, 16  ;;  %v3871_v24 = vshll.u32 %v5603_v16, 16 }
 0x12a   : > { %6312 = vmatprep.mubr.msk.bf16.mxu0 %vm699_vm3, %v9327_v27  ;;  %v5679_v39 = vrot.slane %v5663_v41, 9  ;;  %v3851_v61 = vrot.slane %v3850_v32, 4  ;;  %v3861_v27 = vrot.slane %v3860_v55, 4  ;;  %v4440_v42 = vrot.slane %v8358_v43, 5  ;;  %v8438_v32 = vld [vmem:[%s6677_s6 + $0x98] sm:$0x1] }
 0x12b   : > { %v8391_v58 = vpop.f32.mrf.mxu0  ;;  %v8427_v18 = vcombine.low %v3784_v11, %v3794_v23  ;;  %v8435_v41 = vsel %vm7015_vm7, %v5678_v44, %v4430_v28  ;;  %v9330_v16 = vcombine.low %v8084_v2, %v8096_v62  ;;  %v3832_v43 = vsel %vm6728_vm4, %v3827_v19, %v8351_v26 }
 0x12c   : > { %v8400_v8 = vpop.f32.mrf.mxu1  ;;  %6239 = vmatmul.mubr.msk.bf16.gmra.mxu1 %vm699_vm3, %v9328_v12  ;;  %v8429_v12 = vcombine.low %v3808_v22, %v3818_v37  ;;  %v8449_v11 = vsel %vm7015_vm7, %v4432_v40, %v4433_v54  ;;  %v3877_v23 = vshll.u32 %v8420_v4, 16  ;;  %v3881_v28 = vshrl.u32 %v8420_v4, 16  ;;  %v5606_v22 = vld [vmem:[%s6677_s6 + $0x9c] sm:$0xf]  ;;  %v8455_v37 = vld [vmem:[%s6677_s6 + $0xa0] sm:$0xf] }
 0x12d   : > { %v8412_v36 = vpop.f32.mrf.mxu0  ;;  %6278 = vmatprep.mubr.msk.bf16.mxu1 %vm699_vm3, %v8078_v57  ;;  %v4439_v57 = vrot.slane %v4437_v63, 4  ;;  %v9332_v2 = vcombine.low %v8119_v25, %v8135_v7  ;;  %v3842_v62 = vsel %vm6728_vm4, %v3837_v15, %v3841_v56  ;;  %v8467_v26 = vsel %vm7015_vm7, %v5679_v39, %v4437_v63  ;;  %v8482_v63 = vld [vmem:[%s6677_s6 + $0x90] sm:$0xe] }
 0x12e   : > { %v8417_v46 = vpop.f32.mrf.mxu1  ;;  %v3870_v19 = vrot.slane %v3868_v13, 4  ;;  %v3873_v40 = vrot.slane %v3871_v24, 5  ;;  %v3866_v29 = vsel %vm6728_vm4, %v3861_v27, %v3865_v31  ;;  %v3887_v7 = vshll.u32 %v8438_v32, 16 }
 0x12f   : > { %v8422_v47 = vpop.f32.mrf.mxu0  ;;  %v8476_v25 = vsel %vm7015_vm7, %v4439_v57, %v4440_v42  ;;  %v3892_v15 = vshrl.u32 %v5606_v22, 16  ;;  %v3895_v39 = vshll.u32 %v5606_v22, 16  ;;  %v3901_v13 = vshll.u32 %v8455_v37, 16 }
 0x130   : > { %v8425_v1 = vpop.f32.mrf.mxu1  ;;  %v3883_v27 = vrot.slane %v3881_v28, 4  ;;  %v8493_v42 = vcombine.low %v3832_v43, %v3842_v62  ;;  %v8506_v28 = vld [vmem:[%s6677_s6 + $0xa4] sm:$0x1]  ;;  %v5609_v43 = vld [vmem:[%s6677_s6 + $0xa8] sm:$0xf] }
 0x131   : > { %9329 = vst [vmem:[#allocation28_spill] sm:$0xff] %v8425_v1  ;;  %v6110_v55 = vpop.f32.mrf.mxu0  ;;  %6313 = vmatmul.mubr.msk.bf16.vlgmr.msra.gmra.mxu0 %vm699_vm3, %v9330_v16  ;;  %v3856_v16 = vsel %vm6728_vm4, %v3851_v61, %v8360_v34  ;;  %v3905_v34 = vshrl.u32 %v8455_v37, 16  ;;  %v3894_v61 = vrot.slane %v3892_v15, 4 }
 0x132   : > { %v8457_v44 = vpop.f32.mrf.mxu1  ;;  %6316 = vmatprep.mubr.msk.bf16.mxu0 %vm699_vm3, %v9332_v2  ;;  %v8495_v22 = vcombine.low %v3856_v16, %v3866_v29  ;;  %v3874_v2 = vor.u32 %v3873_v40, %v3870_v19  ;;  %v3897_v29 = vrot.slane %v3895_v39, 5  ;;  %v8509_v16 = vrot.slane %v3901_v13, 5 }
 0x133   : > { %9331 = vst [vmem:[#allocation29_spill] sm:$0xff] %v8457_v44  ;;  %v1502_v54 = vpop.f32.mrf.mxu0  ;;  %v8502_v44 = vrot.slane %v3887_v7, 5  ;;  %v3907_v1 = vrot.slane %v3905_v34, 4  ;;  %v9333_v40 = vcombine.low %v8183_v52, %v8221_v0  ;;  %v9334_v39 = vcombine.low %v8225_v38, %v8244_v59 }
 0x134   : > { %v6076_v56 = vpop.f32.mrf.mxu1  ;;  %6279 = vmatmul.mubr.msk.bf16.vlgmr.msra.gmra.mxu1 %vm699_vm3, %v8092_v20  ;;  %v8491_v20 = vrot.slane %v3877_v23, 5  ;;  %v5680_v23 = vrot.slane %v8482_v63, 9  ;;  %v4444_v63 = vrot.slane %v8420_v4, 5  ;;  %v3916_v13 = vshrl.u32 %v5609_v43, 16 }
 0x135   : > { %v1087_v31 = vadd.f32 %v6076_v56, %v7997_v50  ;;  %v6111_v24 = vpop.f32.mrf.mxu0  ;;  %6282 = vmatprep.mubr.msk.bf16.mxu1 %vm699_vm3, %v8161_v10  ;;  %v8512_v50 = vld [vmem:[%s6677_s6 + $0xac] sm:$0xf]  ;;  %v3919_v34 = vshll.u32 %v5609_v43, 16  ;;  %v8537_v38 = vrot.slane %v3874_v2, 4  ;;  %v3898_v59 = vor.u32 %v3897_v29, %v3894_v61 }
 0x136   : > { %v1078_v57 = vpop.f32.mrf.mxu1  ;;  %v3884_v7 = vor.u32 %v3883_v27, %v8491_v20  ;;  %v5665_v27 = vld [vmem:[%s6677_s6 + $0x9c] sm:$0xe]  ;;  %v3925_v4 = vshll.u32 %v8512_v50, 16 }
 0x137   : > { %v8499_v56 = vadd.f32 %v6110_v55, %v1087_v31  ;;  %v1079_v10 = vadd.f32 %v1078_v57, %v8022_v48  ;;  %v1505_v49 = vpop.f32.mrf.mxu0  ;;  %v3929_v57 = vshrl.u32 %v8512_v50, 16  ;;  %v5681_v2 = vrot.slane %v5665_v27, 9 }
 0x138   : > { %v6077_v62 = vpop.f32.mrf.mxu1  ;;  %v3921_v61 = vrot.slane %v3919_v34, 5 }
 0x139   : > { %v8514_v55 = vadd.f32 %v1502_v54, %v1079_v10  ;;  %v1090_v48 = vadd.f32 %v6077_v62, %v8034_v17  ;;  %v6114_v19 = vpop.f32.mrf.mxu0  ;;  %6317 = vmatmul.mubr.msk.bf16.gmra.mxu0 %vm699_vm3, %v9333_v40  ;;  %v4447_v54 = vrot.slane %v8438_v32, 5  ;;  %v3911_v17 = vshll.u32 %v8506_v28, 16 }
 0x13a   : > { %v1081_v15 = vpop.f32.mrf.mxu1  ;;  %6320 = vmatprep.mubr.msk.bf16.mxu0 %vm699_vm3, %v9334_v39  ;;  %v3908_v32 = vor.u32 %v3907_v1, %v8509_v16  ;;  %v4446_v40 = vrot.slane %v4444_v63, 4  ;;  %v3918_v39 = vrot.slane %v3916_v13, 4  ;;  %v9336_v13 = vld [vmem:[#allocation17_spill] sm:$0xff] }
 0x13b   : > { %v8529_v31 = vadd.f32 %v6111_v24, %v1090_v48  ;;  %v1082_v52 = vadd.f32 %v1081_v15, %v8076_v53  ;;  %v1518_v0 = vpop.f32.mrf.mxu0  ;;  %v4451_v24 = vrot.slane %v8455_v37, 5  ;;  %v3885_v48 = vrot.slane %v3884_v7, 4 }
 0x13c   : > { %v6080_v10 = vpop.f32.mrf.mxu1  ;;  %6283 = vmatmul.mubr.msk.bf16.gmra.mxu1 %vm699_vm3, %v8282_v3  ;;  %v3913_v3 = vrot.slane %v3911_v17, 5  ;;  %v4454_v17 = vrot.slane %v8506_v28, 5 }
 0x13d   : > { %v8541_v43 = vadd.f32 %v1505_v49, %v1082_v52  ;;  %v1103_v53 = vadd.f32 %v6080_v10, %v8106_v60  ;;  %v6115_v62 = vpop.f32.mrf.mxu0  ;;  %6286 = vmatprep.mubr.msk.bf16.mxu1 %vm699_vm3, %v8286_v33  ;;  %v8550_v49 = vld [vmem:[%s6677_s6 + $0xb0] sm:$0x1]  ;;  %v8552_v52 = vrot.slane %v3925_v4, 5  ;;  %v3931_v60 = vrot.slane %v3929_v57, 4 }
 0x13e   : > { %v1094_v15 = vpop.f32.mrf.mxu1  ;;  %v3909_v33 = vrot.slane %v3908_v32, 4  ;;  %v4453_v7 = vrot.slane %v4451_v24, 4  ;;  %v3880_v4 = vsel %vm6728_vm4, %v8537_v38, %v8491_v20  ;;  %v8568_v57 = vsel %vm7015_vm7, %v5680_v23, %v4444_v63  ;;  %v5612_v38 = vld [vmem:[%s6677_s6 + $0xb4] sm:$0xf]  ;;  %v9341_v63 = vld [vmem:[#allocation19_spill] sm:$0xff] }
 0x13f   : > { %9335 = vst [vmem:[#allocation30_spill] sm:$0xff] %v8541_v43  ;;  %v8546_v29 = vadd.f32 %v6114_v19, %v1103_v53  ;;  %v1095_v1 = vadd.f32 %v1094_v15, %v8144_v45  ;;  %v1521_v37 = vpop.f32.mrf.mxu0  ;;  %v3899_v43 = vrot.slane %v3898_v59, 4  ;;  %v9337_v45 = vld [vmem:[#allocation10_spill] sm:$0xff]  ;;  %v9338_v53 = vld [vmem:[#allocation13_spill] sm:$0xff]  ;;  %v3890_v59 = vsel %vm6728_vm4, %v3885_v48, %v8502_v44  ;;  %v9342_v44 = vld [vmem:[#allocation23_spill] sm:$0xff] }
 0x140   : > { %v6081_v10 = vpop.f32.mrf.mxu1  ;;  %v9339_v15 = vcombine.low %v9337_v45, %v9338_v53  ;;  %v8579_v32 = vsel %vm7015_vm7, %v4446_v40, %v4447_v54  ;;  %v3935_v20 = vshll.u32 %v8550_v49, 16  ;;  %v4458_v45 = vrot.slane %v8512_v50, 5 }
 0x141   : > { %v8555_v27 = vadd.f32 %v1518_v0, %v1095_v1  ;;  %v1106_v19 = vadd.f32 %v6081_v10, %v9336_v13  ;;  %v6118_v34 = vpop.f32.mrf.mxu0  ;;  %v9340_v0 = vcombine.low %v8338_v5, %v8355_v14  ;;  %v3922_v1 = vor.u32 %v3921_v61, %v3918_v39  ;;  %v5666_v14 = vld [vmem:[%s6677_s6 + $0xa8] sm:$0xe] }
 0x142   : > { %6321 = vmatmul.mubr.msk.bf16.gmra.mxu0 %vm699_vm3, %v9339_v15  ;;  %v1097_v28 = vpop.f32.mrf.mxu1  ;;  %v3932_v5 = vor.u32 %v3931_v60, %v8552_v52  ;;  %v3904_v54 = vsel %vm6728_vm4, %v3899_v43, %v8509_v16  ;;  %v8598_v48 = vsel %vm7015_vm7, %v5681_v2, %v4451_v24  ;;  %v8602_v40 = vsel %vm7015_vm7, %v4453_v7, %v4454_v17  ;;  %v9343_v39 = vld [vmem:[#allocation20_spill] sm:$0xff]  ;;  %v9344_v7 = vld [vmem:[#allocation22_spill] sm:$0xff] }
 0x143   : > { %6324 = vmatprep.mubr.msk.bf16.mxu0 %vm699_vm3, %v9340_v0  ;;  %v8583_v23 = vadd.f32 %v6115_v62, %v1106_v19  ;;  %v1098_v10 = vadd.f32 %v1097_v28, %v9341_v63  ;;  %v1534_v13 = vpop.f32.mrf.mxu0  ;;  %v3914_v62 = vsel %vm6728_vm4, %v3909_v33, %v3913_v3  ;;  %v3940_v16 = vshrl.u32 %v5612_v38, 16  ;;  %v8614_v63 = vld [vmem:[%s6677_s6 + $0xb8] sm:$0xf] }
 0x144   : > { %v6084_v53 = vpop.f32.mrf.mxu1  ;;  %6287 = vmatmul.mubr.msk.bf16.gmra.mxu1 %vm699_vm3, %v9342_v44  ;;  %v3943_v43 = vshll.u32 %v5612_v38, 16  ;;  %v3923_v33 = vrot.slane %v3922_v1, 4  ;;  %v3937_v19 = vrot.slane %v3935_v20, 5  ;;  %v5682_v24 = vrot.slane %v5666_v14, 9  ;;  %v9345_v38 = vld [vmem:[#allocation25_spill] sm:$0xff] }
 0x145   : > { %v8604_v50 = vadd.f32 %v1521_v37, %v1098_v10  ;;  %v1119_v61 = vadd.f32 %v6084_v53, %v9343_v39  ;;  %v6119_v60 = vpop.f32.mrf.mxu0  ;;  %6290 = vmatprep.mubr.msk.bf16.mxu1 %vm699_vm3, %v8427_v18  ;;  %v4461_v2 = vrot.slane %v8550_v49, 5  ;;  %v3933_v28 = vrot.slane %v3932_v5, 4  ;;  %v5615_v44 = vld [vmem:[%s6677_s6 + $0xc0] sm:$0xf] }
 0x146   : > { %v1110_v3 = vpop.f32.mrf.mxu1  ;;  %v4460_v0 = vrot.slane %v4458_v45, 4  ;;  %v8616_v10 = vcombine.low %v3880_v4, %v3890_v59  ;;  %v5696_v1 = vcombine.low %v8568_v57, %v8579_v32  ;;  %v8620_v20 = vcombine.low %v3904_v54, %v3914_v62  ;;  %v8633_v57 = vld [vmem:[%s6677_s6 + $0xc4] sm:$0xf] }
 0x147   : > { %v8610_v15 = vadd.f32 %v6118_v34, %v1119_v61  ;;  %v1111_v37 = vadd.f32 %v1110_v3, %v9344_v7  ;;  %v1537_v17 = vpop.f32.mrf.mxu0  ;;  %v9346_v53 = vcombine.low %v8388_v21, %v8410_v6  ;;  %v3942_v4 = vrot.slane %v3940_v16, 4  ;;  %v8647_v6 = vld [vmem:[%s6677_s6 + $0xbc] sm:$0x1]  ;;  %v5667_v3 = vld [vmem:[%s6677_s6 + $0xb4] sm:$0xe] }
 0x148   : > { %v6085_v18 = vpop.f32.mrf.mxu1  ;;  %v3945_v59 = vrot.slane %v3943_v43, 5  ;;  %v9347_v54 = vcombine.low %v8435_v41, %v8449_v11  ;;  %v8644_v21 = vsel %vm7015_vm7, %v5682_v24, %v4458_v45  ;;  %v3949_v62 = vshll.u32 %v8614_v63, 16  ;;  %v9348_v16 = vld [vmem:[#allocation27_spill] sm:$0xff] }
 0x149   : > { %v8624_v34 = vadd.f32 %v1534_v13, %v1111_v37  ;;  %v1122_v14 = vadd.f32 %v6085_v18, %v9345_v38  ;;  %v6122_v5 = vpop.f32.mrf.mxu0  ;;  %v3928_v13 = vsel %vm6728_vm4, %v3923_v33, %v8552_v52  ;;  %v3953_v39 = vshrl.u32 %v8614_v63, 16 }
 0x14a   : > { %6325 = vmatmul.mubr.msk.bf16.gmra.mxu0 %vm699_vm3, %v9346_v53  ;;  %v1113_v32 = vpop.f32.mrf.mxu1  ;;  %v3938_v43 = vsel %vm6728_vm4, %v3933_v28, %v3937_v19  ;;  %v8658_v52 = vsel %vm7015_vm7, %v4460_v0, %v4461_v2  ;;  %v3964_v33 = vshrl.u32 %v5615_v44, 16  ;;  %v3967_v24 = vshll.u32 %v5615_v44, 16 }
 0x14b   : > { %6328 = vmatprep.mubr.msk.bf16.mxu0 %vm699_vm3, %v9347_v54  ;;  %v8651_v61 = vadd.f32 %v6119_v60, %v1122_v14  ;;  %v1114_v41 = vadd.f32 %v1113_v32, %v9348_v16  ;;  %v1550_v11 = vpop.f32.mrf.mxu0  ;;  %v3973_v60 = vshll.u32 %v8633_v57, 16  ;;  %v3977_v7 = vshrl.u32 %v8633_v57, 16 }
 0x14c   : > { %v6088_v45 = vpop.f32.mrf.mxu1  ;;  %6291 = vmatmul.mubr.msk.bf16.gmra.mxu1 %vm699_vm3, %v8429_v12  ;;  %v3946_v2 = vor.u32 %v3945_v59, %v3942_v4  ;;  %v3959_v0 = vshll.u32 %v8647_v6, 16  ;;  %v8673_v38 = vrot.slane %v3949_v62, 5  ;;  %v3955_v14 = vrot.slane %v3953_v39, 4  ;;  %v8682_v4 = vld [vmem:[%s6677_s6 + $0xc8] sm:$0x1] }
 0x14d   : > { %v8665_v37 = vadd.f32 %v1537_v17, %v1114_v41  ;;  %v1135_v19 = vadd.f32 %v6088_v45, %v8366_v9  ;;  %v6123_v28 = vpop.f32.mrf.mxu0  ;;  %6294 = vmatprep.mubr.msk.bf16.mxu1 %vm699_vm3, %v8493_v42  ;;  %v4465_v17 = vrot.slane %v8614_v63, 5  ;;  %v8679_v32 = vcombine.low %v3928_v13, %v3938_v43  ;;  %v5618_v45 = vld [vmem:[%s6677_s6 + $0xcc] sm:$0xf] }
 0x14e   : > { %v1126_v12 = vpop.f32.mrf.mxu1  ;;  %v5683_v42 = vrot.slane %v5667_v3, 9  ;;  %v3966_v54 = vrot.slane %v3964_v33, 4  ;;  %v3969_v16 = vrot.slane %v3967_v24, 5  ;;  %v8684_v62 = vrot.slane %v3973_v60, 5  ;;  %v8703_v60 = vld [vmem:[%s6677_s6 + $0xd0] sm:$0xf] }
 0x14f   : > { %v8676_v53 = vadd.f32 %v6122_v5, %v1135_v19  ;;  %v1127_v9 = vadd.f32 %v1126_v12, %v8391_v58  ;;  %v1553_v44 = vpop.f32.mrf.mxu0  ;;  %v3979_v39 = vrot.slane %v3977_v7, 4  ;;  %v9349_v58 = vcombine.low %v8467_v26, %v8476_v25 }
 0x150   : > { %v6089_v59 = vpop.f32.mrf.mxu1  ;;  %v8693_v13 = vrot.slane %v3946_v2, 4  ;;  %v8695_v43 = vrot.slane %v3959_v0, 5  ;;  %v4467_v33 = vrot.slane %v4465_v17, 4  ;;  %v3983_v24 = vshll.u32 %v8682_v4, 16  ;;  %v5668_v2 = vld [vmem:[%s6677_s6 + $0xc0] sm:$0xe] }
 0x151   : > { %v8686_v41 = vadd.f32 %v1550_v11, %v1127_v9  ;;  %v1138_v63 = vadd.f32 %v6089_v59, %v8412_v36  ;;  %v6126_v5 = vpop.f32.mrf.mxu0  ;;  %v3956_v11 = vor.u32 %v3955_v14, %v8673_v38  ;;  %v4468_v36 = vrot.slane %v8647_v6, 5 }
 0x152   : > { %6329 = vmatmul.mubr.msk.bf16.gmra.mxu0 %vm699_vm3, %v9349_v58  ;;  %v1129_v3 = vpop.f32.mrf.mxu1  ;;  %v8710_v19 = vsel %vm7015_vm7, %v5683_v42, %v4465_v17  ;;  %v3970_v6 = vor.u32 %v3969_v16, %v3966_v54  ;;  %v3980_v12 = vor.u32 %v3979_v39, %v8684_v62  ;;  %v3988_v14 = vshrl.u32 %v5618_v45, 16 }
 0x153   : > { %6332 = vmatprep.mubr.msk.bf16.mxu0 %vm699_vm3, %v5696_v1  ;;  %v8705_v26 = vadd.f32 %v6123_v28, %v1138_v63  ;;  %v1130_v25 = vadd.f32 %v1129_v3, %v8422_v47  ;;  %v1566_v7 = vpop.f32.mrf.mxu0  ;;  %v4472_v1 = vrot.slane %v8633_v57, 5  ;;  %v3991_v28 = vshll.u32 %v5618_v45, 16  ;;  %v9352_v47 = vld [vmem:[#allocation11_spill] sm:$0xff] }
 0x154   : > { %v6092_v0 = vpop.f32.mrf.mxu1  ;;  %6295 = vmatmul.mubr.msk.bf16.gmra.mxu1 %vm699_vm3, %v8495_v22  ;;  %v3997_v17 = vshll.u32 %v8703_v60, 16  ;;  %v4001_v57 = vshrl.u32 %v8703_v60, 16  ;;  %v3957_v58 = vrot.slane %v3956_v11, 4  ;;  %v4469_v22 = vsel %vm7015_vm7, %v4467_v33, %v4468_v36 }
 0x155   : > { %9350 = vst [vmem:[#allocation17_spill] sm:$0xff] %v8705_v26  ;;  %v8717_v9 = vadd.f32 %v1553_v44, %v1130_v25  ;;  %v1151_v59 = vadd.f32 %v6092_v0, %v9352_v47  ;;  %v6127_v63 = vpop.f32.mrf.mxu0  ;;  %6298 = vmatprep.mubr.msk.bf16.mxu1 %vm699_vm3, %v8616_v10  ;;  %v3985_v54 = vrot.slane %v3983_v24, 5  ;;  %v5684_v16 = vrot.slane %v5668_v2, 9  ;;  %v9353_v44 = vld [vmem:[#allocation9_spill] sm:$0xff]  ;;  %v9354_v26 = vld [vmem:[#allocation14_spill] sm:$0xff] }
 0x156   : > { %v1142_v42 = vpop.f32.mrf.mxu1  ;;  %v4474_v25 = vrot.slane %v4472_v1, 4  ;;  %v4475_v0 = vrot.slane %v8682_v4, 5  ;;  %v3971_v47 = vrot.slane %v3970_v6, 4  ;;  %v3981_v18 = vrot.slane %v3980_v12, 4  ;;  %v5620_v12 = vld [vmem:[%s6677_s6 + $0xd4] sm:$0x1] }
 0x157   : > { %9351 = vst [vmem:[#allocation10_spill] sm:$0xff] %v8717_v9  ;;  %v8726_v39 = vadd.f32 %v6126_v5, %v1151_v59  ;;  %v1143_v45 = vadd.f32 %v1142_v42, %v9353_v44  ;;  %v1569_v3 = vpop.f32.mrf.mxu0  ;;  %v3990_v49 = vrot.slane %v3988_v14, 4  ;;  %v3993_v9 = vrot.slane %v3991_v28, 5  ;;  %v9357_v14 = vld [vmem:[#allocation12_spill] sm:$0xff] }
 0x158   : > { %v6093_v10 = vpop.f32.mrf.mxu1  ;;  %v9355_v5 = vcombine.low %v8598_v48, %v8602_v40  ;;  %v8737_v24 = vrot.slane %v3997_v17, 5  ;;  %v4003_v4 = vrot.slane %v4001_v57, 4  ;;  %v9356_v6 = vcombine.low %v8644_v21, %v8658_v52  ;;  %v5669_v17 = vld [vmem:[%s6677_s6 + $0xcc] sm:$0xe]  ;;  %s5789_s6 = sshll.u32 %s6573_s15, 11  ;;  %s9144_s15 = scalar_lea.sflag [#allocation3], %s190_s27 }
 0x159   : > { %v8730_v11 = vadd.f32 %v1566_v7, %v1143_v45  ;;  %v1154_v33 = vadd.f32 %v6093_v10, %v9354_v26  ;;  %v6130_v36 = vpop.f32.mrf.mxu0  ;;  %v3952_v26 = vsel %vm6728_vm4, %v8693_v13, %v8673_v38  ;;  %v5699_v7 = vcombine.low %v8710_v19, %v4469_v22  ;;  %s9136_s28 = scalar_lea.hbm %s9202_s2, %s5789_s6 }
 0x15a   : > { %6333 = vmatmul.mubr.msk.bf16.gmra.mxu0 %vm699_vm3, %v9355_v5  ;;  %v1145_v2 = vpop.f32.mrf.mxu1  ;;  %v4479_v48 = vrot.slane %v8703_v60, 5  ;;  %v4473_v21 = vsel %vm7015_vm7, %v5684_v16, %v4472_v1  ;;  %v4476_v52 = vsel %vm7015_vm7, %v4474_v25, %v4475_v0  ;;  %v3962_v38 = vsel %vm6728_vm4, %v3957_v58, %v8695_v43 }
 0x15b   : > { %6336 = vmatprep.mubr.msk.bf16.mxu0 %vm699_vm3, %v9356_v6  ;;  %v8750_v40 = vadd.f32 %v6127_v63, %v1154_v33  ;;  %v1146_v28 = vadd.f32 %v1145_v2, %v9357_v14  ;;  %v1582_v59 = vpop.f32.mrf.mxu0  ;;  %v3976_v13 = vsel %vm6728_vm4, %v3971_v47, %v8684_v62  ;;  %v3986_v60 = vsel %vm6728_vm4, %v3981_v18, %v3985_v54  ;;  %v9358_v63 = vld [vmem:[#allocation8_spill] sm:$0xff]  ;;  %v9359_v18 = vld [vmem:[#allocation15_spill] sm:$0xff]  ;;  %v9361_v14 = vld [vmem:[#allocation18_spill] sm:$0xff] }
 0x15c   : > { %v6096_v57 = vpop.f32.mrf.mxu1  ;;  %6299 = vmatmul.mubr.msk.bf16.gmra.mxu1 %vm699_vm3, %v8620_v20  ;;  %v3994_v19 = vor.u32 %v3993_v9, %v3990_v49  ;;  %v4004_v20 = vor.u32 %v4003_v4, %v8737_v24  ;;  %v4007_v16 = vshll.u32 %v5620_v12, 16  ;;  %v5700_v58 = vcombine.low %v4473_v21, %v4476_v52 }
 0x15d   : > { %v8768_v1 = vadd.f32 %v1569_v3, %v1146_v28  ;;  %v1167_v42 = vadd.f32 %v6096_v57, %v9358_v63  ;;  %v6131_v22 = vpop.f32.mrf.mxu0  ;;  %6302 = vmatprep.mubr.msk.bf16.mxu1 %vm699_vm3, %v8679_v32  ;;  %v5685_v44 = vrot.slane %v5669_v17, 9  ;;  %v4481_v45 = vrot.slane %v4479_v48, 4  ;;  %v9360_v32 = vld [vmem:[#allocation16_spill] sm:$0xff]  ;;  %v9362_v17 = vld [vmem:[#allocation21_spill] sm:$0xff] }
 0x15e   : > { %v1158_v43 = vpop.f32.mrf.mxu1  ;;  %v4482_v62 = vrot.slane %v5620_v12, 5  ;;  %v5634_v3 = vcombine.low %v3952_v26, %v3962_v38  ;;  %v5635_v0 = vcombine.low %v3976_v13, %v3986_v60  ;;  %v3995_v10 = vrot.slane %v3994_v19, 4  ;;  %v9363_v19 = vld [vmem:[#allocation24_spill] sm:$0xff] }
 0x15f   : > { %v8774_v25 = vadd.f32 %v6130_v36, %v1167_v42  ;;  %v1159_v49 = vadd.f32 %v1158_v43, %v9359_v18  ;;  %v1585_v9 = vpop.f32.mrf.mxu0  ;;  %v4005_v4 = vrot.slane %v4004_v20, 4  ;;  %v4009_v2 = vrot.slane %v4007_v16, 5  ;;  %v9364_v16 = vld [vmem:[#allocation26_spill] sm:$0xff] }
 0x160   : > { %v6097_v54 = vpop.f32.mrf.mxu1  ;;  %v4480_v36 = vsel %vm7015_vm7, %v5685_v44, %v4479_v48  ;;  %v4483_v26 = vsel %vm7015_vm7, %v4481_v45, %v4482_v62 }
 0x161   : > { %v8777_v47 = vadd.f32 %v1582_v59, %v1159_v49  ;;  %v1170_v33 = vadd.f32 %v6097_v54, %v9360_v32  ;;  %v6134_v5 = vpop.f32.mrf.mxu0  ;;  %v4010_v35 = vsel %vm6728_vm4, %v4005_v4, %v4009_v2  ;;  %v5701_v38 = vcombine.low %v4480_v36, %v4483_v26  ;;  %v9365_v4 = vld [vmem:[#allocation28_spill] sm:$0xff]  ;;  %v9366_v26 = vld [vmem:[#allocation29_spill] sm:$0xff] }
 0x162   : > { %6337 = vmatmul.mubr.msk.bf16.gmra.mxu0 %vm699_vm3, %v5699_v7  ;;  %v1161_v6 = vpop.f32.mrf.mxu1  ;;  %v4000_v7 = vsel %vm6728_vm4, %v3995_v10, %v8737_v24 }
 0x163   : > { %6340 = vmatprep.mubr.msk.bf16.mxu0 %vm699_vm3, %v5700_v58  ;;  %v8786_v12 = vadd.f32 %v6131_v22, %v1170_v33  ;;  %v1162_v28 = vadd.f32 %v1161_v6, %v9361_v14  ;;  %v1598_v59 = vpop.f32.mrf.mxu0  ;;  %v5636_v20 = vcombine.low %v4000_v7, %v4010_v35 }
 0x164   : > { %v6100_v21 = vpop.f32.mrf.mxu1  ;;  %6303 = vmatmul.mubr.msk.bf16.gmra.mxu1 %vm699_vm3, %v5634_v3 }
 0x165   : > { %v8793_v52 = vadd.f32 %v1585_v9, %v1162_v28  ;;  %v1183_v57 = vadd.f32 %v6100_v21, %v9362_v17  ;;  %v6135_v48 = vpop.f32.mrf.mxu0  ;;  %6306 = vmatprep.mubr.msk.bf16.mxu1 %vm699_vm3, %v5635_v0 }
 0x166   : > { %v1174_v13 = vpop.f32.mrf.mxu1 }
 0x167   : > { %v8799_v60 = vadd.f32 %v6134_v5, %v1183_v57  ;;  %v1175_v63 = vadd.f32 %v1174_v13, %v9363_v19  ;;  %v1601_v42 = vpop.f32.mrf.mxu0 }
 0x168   : > { %v6101_v22 = vpop.f32.mrf.mxu1 }
 0x169   : > { %v8802_v24 = vadd.f32 %v1598_v59, %v1175_v63  ;;  %v1186_v43 = vadd.f32 %v6101_v22, %v9364_v16  ;;  %v6138_v58 = vpop.f32.mrf.mxu0  ;;  %v9367_v22 = vld [vmem:[#allocation30_spill] sm:$0xff] }
 0x16a   : > { %6341 = vmatmul.mubr.msk.bf16.gmra.mxu0 %vm699_vm3, %v5701_v38  ;;  %v1177_v44 = vpop.f32.mrf.mxu1 }
 0x16b   : > { %v8806_v45 = vadd.f32 %v6135_v48, %v1186_v43  ;;  %v1178_v30 = vadd.f32 %v1177_v44, %v8362_v51  ;;  %v1614_v62 = vpop.f32.mrf.mxu0 }
 0x16c   : > { %v6104_v18 = vpop.f32.mrf.mxu1  ;;  %6307 = vmatmul.mubr.msk.bf16.gmra.mxu1 %vm699_vm3, %v5636_v20 }
 0x16d   : > { %v8810_v49 = vadd.f32 %v1601_v42, %v1178_v30  ;;  %v1199_v9 = vadd.f32 %v6104_v18, %v8400_v8  ;;  %v6139_v54 = vpop.f32.mrf.mxu0 }
 0x16e   : > { %v1190_v3 = vpop.f32.mrf.mxu1 }
 0x16f   : > { %v8813_v0 = vadd.f32 %v6138_v58, %v1199_v9  ;;  %v1191_v10 = vadd.f32 %v1190_v3, %v8417_v46  ;;  %v1617_v32 = vpop.f32.mrf.mxu0 }
 0x170   : > { %v6105_v33 = vpop.f32.mrf.mxu1 }
 0x171   : > { %v8816_v5 = vadd.f32 %v1614_v62, %v1191_v10  ;;  %v1202_v51 = vadd.f32 %v6105_v33, %v9365_v4  ;;  %v6178_v2 = vpop.f32.mrf.mxu0 }
 0x172   : > { %v1193_v6 = vpop.f32.mrf.mxu1 }
 0x173   : > { %v8819_v36 = vadd.f32 %v6139_v54, %v1202_v51  ;;  %v1194_v14 = vadd.f32 %v1193_v6, %v9366_v26  ;;  %v2589_v28 = vpop.f32.mrf.mxu0 }
 0x174   : > { %v6144_v8 = vpop.f32.mrf.mxu1 }
 0x175   : > { %v8822_v59 = vadd.f32 %v1617_v32, %v1194_v14  ;;  %v1993_v21 = vadd.f32 %v6144_v8, %v8499_v56  ;;  %v6179_v7 = vpop.f32.mrf.mxu0 }
 0x176   : > { %v1864_v46 = vpop.f32.mrf.mxu1 }
 0x177   : > { %v8825_v17 = vadd.f32 %v6178_v2, %v1993_v21  ;;  %v1991_v57 = vadd.f32 %v1864_v46, %v8514_v55  ;;  %v2592_v48 = vpop.f32.mrf.mxu0 }
 0x178   : > { %v6145_v35 = vpop.f32.mrf.mxu1 }
 0x179   : > { %v8828_v38 = vadd.f32 %v2589_v28, %v1991_v57  ;;  %v1994_v13 = vadd.f32 %v6145_v35, %v8529_v31  ;;  %v6182_v19 = vpop.f32.mrf.mxu0 }
 0x17a   : > { %v1867_v63 = vpop.f32.mrf.mxu1 }
 0x17b   : > { %v8831_v42 = vadd.f32 %v6179_v7, %v1994_v13  ;;  %v1992_v20 = vadd.f32 %v1867_v63, %v9367_v22  ;;  %v2605_v16 = vpop.f32.mrf.mxu0 }
 0x17c   : > { %v6148_v56 = vpop.f32.mrf.mxu1 }
 0x17d   : > { %v8834_v43 = vadd.f32 %v2592_v48, %v1992_v20  ;;  %v1997_v58 = vadd.f32 %v6148_v56, %v8546_v29  ;;  %v6183_v44 = vpop.f32.mrf.mxu0  ;;  %v9368_v56 = vld [vmem:[#allocation17_spill] sm:$0xff] }
 0x17e   : > { %v1880_v55 = vpop.f32.mrf.mxu1 }
 0x17f   : > { %v8837_v30 = vadd.f32 %v6182_v19, %v1997_v58  ;;  %v1995_v62 = vadd.f32 %v1880_v55, %v8555_v27  ;;  %v2608_v18 = vpop.f32.mrf.mxu0 }
 0x180   : > { %v6149_v31 = vpop.f32.mrf.mxu1 }
 0x181   : > { %v8840_v9 = vadd.f32 %v2605_v16, %v1995_v62  ;;  %v1998_v54 = vadd.f32 %v6149_v31, %v8583_v23  ;;  %v6186_v3 = vpop.f32.mrf.mxu0  ;;  %v9369_v62 = vld [vmem:[#allocation10_spill] sm:$0xff] }
 0x182   : > { %v1883_v10 = vpop.f32.mrf.mxu1 }
 0x183   : > { %v8843_v32 = vadd.f32 %v6183_v44, %v1998_v54  ;;  %v1996_v33 = vadd.f32 %v1883_v10, %v8604_v50  ;;  %v2621_v4 = vpop.f32.mrf.mxu0 }
 0x184   : > { %v6152_v29 = vpop.f32.mrf.mxu1 }
 0x185   : > { %v8846_v51 = vadd.f32 %v2608_v18, %v1996_v33  ;;  %v2001_v2 = vadd.f32 %v6152_v29, %v8610_v15  ;;  %v6187_v6 = vpop.f32.mrf.mxu0 }
 0x186   : > { %v1896_v27 = vpop.f32.mrf.mxu1 }
 0x187   : > { %v8849_v26 = vadd.f32 %v6186_v3, %v2001_v2  ;;  %v1999_v14 = vadd.f32 %v1896_v27, %v8624_v34  ;;  %v2624_v28 = vpop.f32.mrf.mxu0 }
 0x188   : > { %v6153_v23 = vpop.f32.mrf.mxu1 }
 0x189   : > { %v8852_v8 = vadd.f32 %v2621_v4, %v1999_v14  ;;  %v2002_v21 = vadd.f32 %v6153_v23, %v8651_v61  ;;  %v6190_v7 = vpop.f32.mrf.mxu0 }
 0x18a   : > { %v1899_v50 = vpop.f32.mrf.mxu1 }
 0x18b   : > { %v8855_v46 = vadd.f32 %v6187_v6, %v2002_v21  ;;  %v2000_v57 = vadd.f32 %v1899_v50, %v8665_v37  ;;  %v2637_v48 = vpop.f32.mrf.mxu0 }
 0x18c   : > { %v6156_v15 = vpop.f32.mrf.mxu1 }
 0x18d   : > { %v8858_v35 = vadd.f32 %v2624_v28, %v2000_v57  ;;  %v2005_v13 = vadd.f32 %v6156_v15, %v8676_v53  ;;  %v6191_v19 = vpop.f32.mrf.mxu0 }
 0x18e   : > { %v1912_v34 = vpop.f32.mrf.mxu1 }
 0x18f   : > { %v8861_v63 = vadd.f32 %v6190_v7, %v2005_v13  ;;  %v2003_v22 = vadd.f32 %v1912_v34, %v8686_v41  ;;  %v2640_v20 = vpop.f32.mrf.mxu0 }
 0x190   : > { %v6157_v61 = vpop.f32.mrf.mxu1 }
 0x191   : > { %v8864_v16 = vadd.f32 %v2637_v48, %v2003_v22  ;;  %v2006_v58 = vadd.f32 %v6157_v61, %v9368_v56  ;;  %v6194_v44 = vpop.f32.mrf.mxu0 }
 0x192   : > { %v1915_v37 = vpop.f32.mrf.mxu1 }
 0x193   : > { %v8867_v55 = vadd.f32 %v6191_v19, %v2006_v58  ;;  %v2004_v18 = vadd.f32 %v1915_v37, %v9369_v62  ;;  %v2653_v31 = vpop.f32.mrf.mxu0 }
 0x194   : > { %v6160_v53 = vpop.f32.mrf.mxu1 }
 0x195   : > { %v8870_v54 = vadd.f32 %v2640_v20, %v2004_v18  ;;  %v2009_v3 = vadd.f32 %v6160_v53, %v8726_v39  ;;  %v6195_v10 = vpop.f32.mrf.mxu0 }
 0x196   : > { %v1928_v41 = vpop.f32.mrf.mxu1 }
 0x197   : > { %v8873_v33 = vadd.f32 %v6194_v44, %v2009_v3  ;;  %v2007_v4 = vadd.f32 %v1928_v41, %v8730_v11  ;;  %v2656_v29 = vpop.f32.mrf.mxu0 }
 0x198   : > { %v6161_v2 = vpop.f32.mrf.mxu1 }
 0x199   : > { %v8876_v6 = vadd.f32 %v2653_v31, %v2007_v4  ;;  %v2010_v27 = vadd.f32 %v6161_v2, %v8750_v40  ;;  %v6198_v14 = vpop.f32.mrf.mxu0 }
 0x19a   : > { %v1931_v28 = vpop.f32.mrf.mxu1 }
 0x19b   : > { %v8879_v23 = vadd.f32 %v6195_v10, %v2010_v27  ;;  %v2008_v21 = vadd.f32 %v1931_v28, %v8768_v1  ;;  %v2669_v7 = vpop.f32.mrf.mxu0 }
 0x19c   : > { %v6164_v39 = vpop.f32.mrf.mxu1 }
 0x19d   : > { %v8882_v50 = vadd.f32 %v2656_v29, %v2008_v21  ;;  %v2013_v57 = vadd.f32 %v6164_v39, %v8774_v25  ;;  %v6199_v48 = vpop.f32.mrf.mxu0 }
 0x19e   : > { %v1944_v11 = vpop.f32.mrf.mxu1 }
 0x19f   : > { %v8885_v15 = vadd.f32 %v6198_v14, %v2013_v57  ;;  %v2011_v13 = vadd.f32 %v1944_v11, %v8777_v47  ;;  %v2672_v19 = vpop.f32.mrf.mxu0 }
 0x1a0   : > { %v6165_v40 = vpop.f32.mrf.mxu1 }
 0x1a1   : > { %v8888_v34 = vadd.f32 %v2669_v7, %v2011_v13  ;;  %v2014_v22 = vadd.f32 %v6165_v40, %v8786_v12  ;;  %v6202_v20 = vpop.f32.mrf.mxu0 }
 0x1a2   : > { %v1947_v1 = vpop.f32.mrf.mxu1 }
 0x1a3   : > { %9370 = vst [vmem:[#allocation13_spill] sm:$0xff] %v8888_v34  ;;  %v8891_v61 = vadd.f32 %v6199_v48, %v2014_v22  ;;  %v2012_v56 = vadd.f32 %v1947_v1, %v8793_v52  ;;  %v2685_v58 = vpop.f32.mrf.mxu0 }
 0x1a4   : > { %v6168_v25 = vpop.f32.mrf.mxu1 }
 0x1a5   : > { %9371 = vst [vmem:[#allocation19_spill] sm:$0xff] %v8891_v61  ;;  %v8894_v44 = vadd.f32 %v2672_v19, %v2012_v56  ;;  %v2017_v37 = vadd.f32 %v6168_v25, %v8799_v60  ;;  %v6203_v62 = vpop.f32.mrf.mxu0 }
 0x1a6   : > { %v1960_v47 = vpop.f32.mrf.mxu1 }
 0x1a7   : > { %9372 = vst [vmem:[#allocation23_spill] sm:$0xff] %v8894_v44  ;;  %v8897_v18 = vadd.f32 %v6202_v20, %v2017_v37  ;;  %v2015_v31 = vadd.f32 %v1960_v47, %v8802_v24  ;;  %v2688_v53 = vpop.f32.mrf.mxu0 }
 0x1a8   : > { %v6169_v12 = vpop.f32.mrf.mxu1 }
 0x1a9   : > { %v8900_v3 = vadd.f32 %v2685_v58, %v2015_v31  ;;  %v2018_v10 = vadd.f32 %v6169_v12, %v8806_v45  ;;  %v6206_v41 = vpop.f32.mrf.mxu0 }
 0x1aa   : > { %v1963_v52 = vpop.f32.mrf.mxu1 }
 0x1ab   : > { %9373 = vst [vmem:[#allocation20_spill] sm:$0xff] %v8900_v3  ;;  %v8903_v4 = vadd.f32 %v6203_v62, %v2018_v10  ;;  %v2016_v29 = vadd.f32 %v1963_v52, %v8810_v49  ;;  %v2701_v2 = vpop.f32.mrf.mxu0 }
 0x1ac   : > { %v6172_v60 = vpop.f32.mrf.mxu1 }
 0x1ad   : > { %9374 = vst [vmem:[#allocation22_spill] sm:$0xff] %v8903_v4  ;;  %v8906_v27 = vadd.f32 %v2688_v53, %v2016_v29  ;;  %v2021_v14 = vadd.f32 %v6172_v60, %v8813_v0  ;;  %v6207_v28 = vpop.f32.mrf.mxu0 }
 0x1ae   : > { %v1976_v24 = vpop.f32.mrf.mxu1 }
 0x1af   : > { %9375 = vst [vmem:[#allocation25_spill] sm:$0xff] %v8906_v27  ;;  %v8909_v21 = vadd.f32 %v6206_v41, %v2021_v14  ;;  %v2019_v7 = vadd.f32 %v1976_v24, %v8816_v5  ;;  %v2704_v39 = vpop.f32.mrf.mxu0 }
 0x1b0   : > { %v6173_v45 = vpop.f32.mrf.mxu1 }
 0x1b1   : > { %v8912_v57 = vadd.f32 %v2701_v2, %v2019_v7  ;;  %v2022_v48 = vadd.f32 %v6173_v45, %v8819_v36  ;;  %v6246_v11 = vpop.f32.mrf.mxu0 }
 0x1b2   : > { %v1979_v49 = vpop.f32.mrf.mxu1 }
 0x1b3   : > { %9376 = vst [vmem:[#allocation27_spill] sm:$0xff] %v8912_v57  ;;  %v8915_v13 = vadd.f32 %v6207_v28, %v2022_v48  ;;  %v2020_v19 = vadd.f32 %v1979_v49, %v8822_v59  ;;  %v3420_v40 = vpop.f32.mrf.mxu0 }
 0x1b4   : > { %v6212_v0 = vpop.f32.mrf.mxu1 }
 0x1b5   : > { %9377 = vst [vmem:[#allocation11_spill] sm:$0xff] %v8915_v13  ;;  %v8918_v22 = vadd.f32 %v2704_v39, %v2020_v19  ;;  %v3191_v20 = vadd.f32 %v6212_v0, %v8825_v17  ;;  %v8921_v1 = vpop.f32.mrf.mxu0 }
 0x1b6   : > { %v3062_v5 = vpop.f32.mrf.mxu1 }
 0x1b7   : > { %9378 = vst [vmem:[#allocation9_spill] sm:$0xff] %v8918_v22  ;;  %v8923_v56 = vadd.f32 %v6246_v11, %v3191_v20  ;;  %v3189_v58 = vadd.f32 %v3062_v5, %v8828_v38  ;;  %v8926_v36 = vpop.f32.mrf.mxu0 }
 0x1b8   : > { %v8928_v25 = vpop.f32.mrf.mxu1 }
 0x1b9   : > { %v8930_v37 = vadd.f32 %v3420_v40, %v3189_v58  ;;  %v6250_v59 = vpop.f32.mrf.mxu0 }
 0x1ba   : > { %v8932_v62 = vpop.f32.mrf.mxu1 }
 0x1bb   : > { %v8934_v47 = vpop.f32.mrf.mxu0 }
 0x1bc   : > { %v6216_v31 = vpop.f32.mrf.mxu1 }
 0x1bd   : > { %v3195_v17 = vadd.f32 %v6216_v31, %v8837_v30  ;;  %v8937_v53 = vpop.f32.mrf.mxu0 }
 0x1be   : > { %v8939_v12 = vpop.f32.mrf.mxu1 }
 0x1bf   : > { %v8941_v10 = vadd.f32 %v6250_v59, %v3195_v17  ;;  %v8943_v38 = vpop.f32.mrf.mxu0 }
 0x1c0   : > { %v8945_v41 = vpop.f32.mrf.mxu1 }
 0x1c1   : > { %v6254_v52 = vpop.f32.mrf.mxu0 }
 0x1c2   : > { %v8947_v29 = vpop.f32.mrf.mxu1 }
 0x1c3   : > { %v8949_v2 = vpop.f32.mrf.mxu0 }
 0x1c4   : > { %v6220_v60 = vpop.f32.mrf.mxu1 }
 0x1c5   : > { %v3199_v14 = vadd.f32 %v6220_v60, %v8849_v26  ;;  %v8952_v28 = vpop.f32.mrf.mxu0 }
 0x1c6   : > { %v8954_v30 = vpop.f32.mrf.mxu1 }
 0x1c7   : > { %v8956_v24 = vadd.f32 %v6254_v52, %v3199_v14  ;;  %v8958_v7 = vpop.f32.mrf.mxu0 }
 0x1c8   : > { %v8960_v39 = vpop.f32.mrf.mxu1 }
 0x1c9   : > { %v6258_v45 = vpop.f32.mrf.mxu0 }
 0x1ca   : > { %v8962_v48 = vpop.f32.mrf.mxu1 }
 0x1cb   : > { %v8964_v11 = vpop.f32.mrf.mxu0 }
 0x1cc   : > { %v6224_v49 = vpop.f32.mrf.mxu1 }
 0x1cd   : > { %v3203_v19 = vadd.f32 %v6224_v49, %v8861_v63  ;;  %v8967_v40 = vpop.f32.mrf.mxu0 }
 0x1ce   : > { %v8969_v26 = vpop.f32.mrf.mxu1 }
 0x1cf   : > { %v8971_v0 = vadd.f32 %v6258_v45, %v3203_v19  ;;  %v8973_v20 = vpop.f32.mrf.mxu0 }
 0x1d0   : > { %v8975_v5 = vpop.f32.mrf.mxu1 }
 0x1d1   : > { %v6262_v58 = vpop.f32.mrf.mxu0 }
 0x1d2   : > { %v8977_v59 = vpop.f32.mrf.mxu1 }
 0x1d3   : > { %v8979_v31 = vpop.f32.mrf.mxu0 }
 0x1d4   : > { %v6228_v17 = vpop.f32.mrf.mxu1 }
 0x1d5   : > { %v3207_v52 = vadd.f32 %v6228_v17, %v8873_v33  ;;  %v8982_v60 = vpop.f32.mrf.mxu0 }
 0x1d6   : > { %v8984_v63 = vpop.f32.mrf.mxu1 }
 0x1d7   : > { %v8986_v14 = vadd.f32 %v6262_v58, %v3207_v52  ;;  %v8988_v45 = vpop.f32.mrf.mxu0 }
 0x1d8   : > { %9379 = vst [vmem:[#allocation14_spill] sm:$0xff] %v8988_v45  ;;  %v8990_v49 = vpop.f32.mrf.mxu1 }
 0x1d9   : > { %v6266_v19 = vpop.f32.mrf.mxu0 }
 0x1da   : > { %v8992_v22 = vpop.f32.mrf.mxu1 }
 0x1db   : > { %v8994_v13 = vpop.f32.mrf.mxu0 }
 0x1dc   : > { %9380 = vst [vmem:[#allocation12_spill] sm:$0xff] %v8994_v13  ;;  %v6232_v57 = vpop.f32.mrf.mxu1 }
 0x1dd   : > { %v3211_v27 = vadd.f32 %v6232_v57, %v8885_v15  ;;  %v8997_v4 = vpop.f32.mrf.mxu0 }
 0x1de   : > { %9381 = vst [vmem:[#allocation8_spill] sm:$0xff] %v8997_v4  ;;  %v8999_v33 = vpop.f32.mrf.mxu1 }
 0x1df   : > { %v9001_v17 = vadd.f32 %v6266_v19, %v3211_v27  ;;  %v9003_v58 = vpop.f32.mrf.mxu0 }
 0x1e0   : > { %9383 = vst [vmem:[#allocation16_spill] sm:$0xff] %v9003_v58  ;;  %v9005_v52 = vpop.f32.mrf.mxu1 }
 0x1e1   : > { %9382 = vst [vmem:[#allocation15_spill] sm:$0xff] %v9001_v17  ;;  %9384 = vst [vmem:[#allocation18_spill] sm:$0xff] %v9005_v52  ;;  %v6270_v3 = vpop.f32.mrf.mxu0 }
 0x1e2   : > { %v9007_v44 = vpop.f32.mrf.mxu1 }
 0x1e3   : > { %9385 = vst [vmem:[#allocation21_spill] sm:$0xff] %v9007_v44  ;;  %v9009_v61 = vpop.f32.mrf.mxu0 }
 0x1e4   : > { %9386 = vst [vmem:[#allocation24_spill] sm:$0xff] %v9009_v61  ;;  %v6236_v34 = vpop.f32.mrf.mxu1 }
 0x1e5   : > { %v3215_v13 = vadd.f32 %v6236_v34, %v8897_v18  ;;  %v9012_v45 = vpop.f32.mrf.mxu0 }
 0x1e6   : > { %9387 = vst [vmem:[#allocation26_spill] sm:$0xff] %v9012_v45  ;;  %v9014_v15 = vpop.f32.mrf.mxu1  ;;  %v3192_v45 = vadd.f32 %v8928_v25, %v8831_v42  ;;  %v3193_v42 = vadd.f32 %v8939_v12, %v8840_v9 }
 0x1e7   : > { %v9016_v57 = vadd.f32 %v6270_v3, %v3215_v13  ;;  %v9018_v27 = vpop.f32.mrf.mxu0 }
 0x1e8   : > { %9389 = vst [vmem:[#allocation29_spill] sm:$0xff] %v9018_v27  ;;  %v9020_v19 = vpop.f32.mrf.mxu1  ;;  %v3551_v9 = vadd.f32 %v8934_v47, %v3193_v42  ;;  %v3200_v42 = vadd.f32 %v8960_v39, %v8855_v46 }
 0x1e9   : > { %9388 = vst [vmem:[#allocation28_spill] sm:$0xff] %v9016_v57  ;;  %9390 = vst [vmem:[#allocation30_spill] sm:$0xff] %v9020_v19  ;;  %v6274_v58 = vpop.f32.mrf.mxu0 }
 0x1ea   : > { %v9022_v17 = vpop.f32.mrf.mxu1 }
 0x1eb   : > { %9391 = vst [vmem:[#allocation17_spill] sm:$0xff] %v9022_v17  ;;  %v9024_v4 = vpop.f32.mrf.mxu0 }
 0x1ec   : > { %9392 = vst [vmem:[#allocation10_spill] sm:$0xff] %v9024_v4  ;;  %v6240_v44 = vpop.f32.mrf.mxu1 }
 0x1ed   : > { %v3219_v61 = vadd.f32 %v6240_v44, %v8909_v21  ;;  %v9027_v52 = vpop.f32.mrf.mxu0  ;;  %v3190_v44 = vadd.f32 %v8932_v62, %v8834_v43  ;;  %v3196_v43 = vadd.f32 %v8945_v41, %v8843_v32 }
 0x1ee   : > { %9393 = vst [vmem:[#allocation31_spill] sm:$0xff] %v9027_v52  ;;  %v9029_v34 = vpop.f32.mrf.mxu1 }
 0x1ef   : > { %9394 = vst [vmem:[#allocation32_spill] sm:$0xff] %v9029_v34  ;;  %v9031_v18 = vadd.f32 %v6274_v58, %v3219_v61  ;;  %v9033_v3 = vpop.f32.mrf.mxu0  ;;  %v3550_v61 = vadd.f32 %v8921_v1, %v3192_v45  ;;  %v3554_v12 = vadd.f32 %v8937_v53, %v3196_v43 }
 0x1f0   : > { %9396 = vst [vmem:[#allocation34_spill] sm:$0xff] %v9033_v3  ;;  %v9035_v13 = vpop.f32.mrf.mxu1 }
 0x1f1   : > { %9395 = vst [vmem:[#allocation33_spill] sm:$0xff] %v9031_v18  ;;  %9397 = vst [vmem:[#allocation35_spill] sm:$0xff] %v9035_v13  ;;  %v6314_v27 = vpop.f32.mrf.mxu0 }
 0x1f2   : > { %v9037_v57 = vpop.f32.mrf.mxu1 }
 0x1f3   : > { %9398 = vst [vmem:[#allocation36_spill] sm:$0xff] %v9037_v57  ;;  %v4618_v4 = vpop.f32.mrf.mxu0  ;;  %v3548_v57 = vadd.f32 %v8926_v36, %v3190_v44 }
 0x1f4   : > { %v6280_v17 = vpop.f32.mrf.mxu1 }
 0x1f5   : > { %v6315_v21 = vpop.f32.mrf.mxu0  ;;  %v4278_v58 = vadd.f32 %v6280_v17, %v8923_v56 }
 0x1f6   : > { %v4149_v52 = vpop.f32.mrf.mxu1 }
 0x1f7   : > { %v4276_v3 = vadd.f32 %v4149_v52, %v8930_v37  ;;  %v4621_v18 = vpop.f32.mrf.mxu0  ;;  %v4747_v62 = vadd.f32 %v6314_v27, %v4278_v58  ;;  %v3194_v37 = vadd.f32 %v8947_v29, %v8846_v51  ;;  %v3197_v29 = vadd.f32 %v8954_v30, %v8852_v8 }
 0x1f8   : > { %v6281_v13 = vpop.f32.mrf.mxu1 }
 0x1f9   : > { %v4279_v34 = vadd.f32 %v6281_v13, %v3550_v61  ;;  %v6318_v19 = vpop.f32.mrf.mxu0  ;;  %v4745_v1 = vadd.f32 %v4618_v4, %v4276_v3  ;;  %v3552_v51 = vadd.f32 %v8943_v38, %v3194_v37  ;;  %v4980_v61 = vmul.f32 %v4747_v62, %v4747_v62 }
 0x1fa   : > { %v4152_v25 = vpop.f32.mrf.mxu1 }
 0x1fb   : > { %v4748_v45 = vadd.f32 %v6315_v21, %v4279_v34  ;;  %v4277_v56 = vadd.f32 %v4152_v25, %v3548_v57  ;;  %v4634_v17 = vpop.f32.mrf.mxu0  ;;  %v4978_v27 = vmul.f32 %v4745_v1, %v4745_v1 }
 0x1fc   : > { %v6284_v52 = vpop.f32.mrf.mxu1 }
 0x1fd   : > { %v5798_v36 = vpack.c.bf16 %v4748_v45, %v4747_v62  ;;  %v4746_v13 = vadd.f32 %v4621_v18, %v4277_v56  ;;  %v6319_v44 = vpop.f32.mrf.mxu0  ;;  %v4282_v32 = vadd.f32 %v6284_v52, %v8941_v10  ;;  %v4981_v43 = vmul.f32 %v4748_v45, %v4748_v45 }
 0x1fe   : > { %v4165_v41 = vpop.f32.mrf.mxu1 }
 0x1ff   : > { %5870 = vst [vmem:[%s6679_s7 + $0x8] sm:$0xff] %v5798_v36   ;;  %v5793_v4 = vpack.c.bf16 %v4746_v13, %v4745_v1  ;;  %v4938_v57 = vadd.f32 %v4746_v13, %v4745_v1  ;;  %v4979_v34 = vmul.f32 %v4746_v13, %v4746_v13  ;;  %v4637_v3 = vpop.f32.mrf.mxu0  ;;  %v4280_v18 = vadd.f32 %v4165_v41, %v3551_v9 }
 0x200   : > { %v6285_v21 = vpop.f32.mrf.mxu1  ;;  %v4751_v25 = vadd.f32 %v6318_v19, %v4282_v32  ;;  %v3555_v36 = vadd.f32 %v8949_v2, %v3197_v29  ;;  %v3558_v32 = vadd.f32 %v8952_v28, %v3200_v42 }
 0x201   : > { %5794 = vst [vmem:[%s6679_s7] sm:$0xff] %v5793_v4   ;;  %v4939_v47 = vadd.f32 %v4938_v57, %v4747_v62  ;;  %v5010_v53 = vadd.f32 %v4979_v34, %v4978_v27  ;;  %v4283_v58 = vadd.f32 %v6285_v21, %v3554_v12  ;;  %v4749_v1 = vadd.f32 %v4634_v17, %v4280_v18 }
 0x202   : > { %v6322_v10 = vpop.f32.mrf.mxu0  ;;  %v4168_v56 = vpop.f32.mrf.mxu1  ;;  %v3198_v62 = vadd.f32 %v8962_v48, %v8858_v35  ;;  %v4984_v18 = vmul.f32 %v4751_v25, %v4751_v25 }
 0x203   : > { %v5011_v52 = vadd.f32 %v5010_v53, %v4980_v61  ;;  %v4940_v38 = vadd.f32 %v4939_v47, %v4748_v45  ;;  %v4752_v37 = vadd.f32 %v6319_v44, %v4283_v58  ;;  %v4281_v8 = vadd.f32 %v4168_v56, %v3552_v51 }
 0x204   : > { %v4650_v30 = vpop.f32.mrf.mxu0  ;;  %v6288_v13 = vpop.f32.mrf.mxu1  ;;  %v4982_v12 = vmul.f32 %v4749_v1, %v4749_v1  ;;  %v3556_v34 = vadd.f32 %v8958_v7, %v3198_v62  ;;  %v3201_v51 = vadd.f32 %v8969_v26, %v8864_v16 }
 0x205   : > { %v4941_v9 = vadd.f32 %v4940_v38, %v4749_v1  ;;  %v5012_v41 = vadd.f32 %v5011_v52, %v4981_v43  ;;  %v5808_v46 = vpack.c.bf16 %v4752_v37, %v4751_v25  ;;  %v4750_v19 = vadd.f32 %v4637_v3, %v4281_v8 }
 0x206   : > { %v6323_v39 = vpop.f32.mrf.mxu0  ;;  %v4181_v17 = vpop.f32.mrf.mxu1  ;;  %v4286_v44 = vadd.f32 %v6288_v13, %v8956_v24  ;;  %v3204_v3 = vadd.f32 %v8975_v5, %v8867_v55  ;;  %v4985_v7 = vmul.f32 %v4752_v37, %v4752_v37  ;;  %v3559_v26 = vadd.f32 %v8964_v11, %v3201_v51 }
 0x207   : > { %v5013_v45 = vadd.f32 %v5012_v41, %v4982_v12  ;;  %5872 = vst [vmem:[%s6679_s7 + $0x18] sm:$0xff] %v5808_v46   ;;  %v4284_v27 = vadd.f32 %v4181_v17, %v3555_v36  ;;  %v5803_v4 = vpack.c.bf16 %v4750_v19, %v4749_v1  ;;  %v4942_v57 = vadd.f32 %v4941_v9, %v4750_v19 }
 0x208   : > { %v4653_v2 = vpop.f32.mrf.mxu0  ;;  %v4983_v35 = vmul.f32 %v4750_v19, %v4750_v19  ;;  %v6289_v48 = vpop.f32.mrf.mxu1  ;;  %v4755_v53 = vadd.f32 %v6322_v10, %v4286_v44  ;;  %v3202_v55 = vadd.f32 %v8977_v59, %v8870_v54  ;;  %v3562_v38 = vadd.f32 %v8967_v40, %v3204_v3 }
 0x209   : > { %v4287_v28 = vadd.f32 %v6289_v48, %v3558_v32  ;;  %5871 = vst [vmem:[%s6679_s7 + $0x10] sm:$0xff] %v5803_v4   ;;  %v4943_v21 = vadd.f32 %v4942_v57, %v4751_v25  ;;  %v4753_v61 = vadd.f32 %v4650_v30, %v4284_v27  ;;  %v3205_v40 = vadd.f32 %v8984_v63, %v8876_v6 }
 0x20a   : > { %v6326_v29 = vpop.f32.mrf.mxu0  ;;  %v5014_v24 = vadd.f32 %v5013_v45, %v4983_v35  ;;  %v4184_v47 = vpop.f32.mrf.mxu1  ;;  %v3560_v59 = vadd.f32 %v8973_v20, %v3202_v55  ;;  %v3208_v46 = vadd.f32 %v8990_v49, %v8879_v23  ;;  %v4988_v17 = vmul.f32 %v4755_v53, %v4755_v53 }
 0x20b   : > { %v4756_v58 = vadd.f32 %v6323_v39, %v4287_v28  ;;  %v4285_v42 = vadd.f32 %v4184_v47, %v3556_v34  ;;  %v4944_v56 = vadd.f32 %v4943_v21, %v4752_v37  ;;  %v4986_v10 = vmul.f32 %v4753_v61, %v4753_v61 }
 0x20c   : > { %v4666_v43 = vpop.f32.mrf.mxu0  ;;  %v5015_v1 = vadd.f32 %v5014_v24, %v4984_v18  ;;  %v6292_v16 = vpop.f32.mrf.mxu1  ;;  %v3563_v63 = vadd.f32 %v8979_v31, %v3205_v40  ;;  %v3206_v23 = vadd.f32 %v8992_v22, %v8882_v50  ;;  %v3566_v3 = vadd.f32 %v8982_v60, %v3208_v46  ;;  %v9399_v22 = vld [vmem:[#allocation14_spill] sm:$0xff] }
 0x20d   : > { %v5818_v5 = vpack.c.bf16 %v4756_v58, %v4755_v53  ;;  %v4754_v52 = vadd.f32 %v4653_v2, %v4285_v42  ;;  %v4945_v8 = vadd.f32 %v4944_v56, %v4753_v61  ;;  %v4290_v37 = vadd.f32 %v6292_v16, %v8971_v0  ;;  %v9402_v56 = vld [vmem:[#allocation18_spill] sm:$0xff] }
 0x20e   : > { %v6327_v25 = vpop.f32.mrf.mxu0  ;;  %v5016_v30 = vadd.f32 %v5015_v1, %v4985_v7  ;;  %v4197_v36 = vpop.f32.mrf.mxu1  ;;  %v4989_v20 = vmul.f32 %v4756_v58, %v4756_v58  ;;  %v9400_v7 = vld [vmem:[#allocation13_spill] sm:$0xff]  ;;  %v9401_v1 = vld [vmem:[#allocation19_spill] sm:$0xff] }
 0x20f   : > { %5874 = vst [vmem:[%s6679_s7 + $0x28] sm:$0xff] %v5818_v5   ;;  %v5813_v62 = vpack.c.bf16 %v4754_v52, %v4753_v61  ;;  %v4987_v13 = vmul.f32 %v4754_v52, %v4754_v52  ;;  %v4288_v9 = vadd.f32 %v4197_v36, %v3559_v26  ;;  %v4946_v41 = vadd.f32 %v4945_v8, %v4754_v52 }
 0x210   : > { %v4669_v11 = vpop.f32.mrf.mxu0  ;;  %v5017_v12 = vadd.f32 %v5016_v30, %v4986_v10  ;;  %v6293_v54 = vpop.f32.mrf.mxu1  ;;  %v4759_v27 = vadd.f32 %v6326_v29, %v4290_v37  ;;  %v3209_v60 = vadd.f32 %v8999_v33, %v9400_v7  ;;  %v3212_v16 = vadd.f32 %v9402_v56, %v9401_v1  ;;  %v9413_v56 = vld [vmem:[#allocation25_spill] sm:$0xff] }
 0x211   : > { %5873 = vst [vmem:[%s6679_s7 + $0x20] sm:$0xff] %v5813_v62   ;;  %v4291_v39 = vadd.f32 %v6293_v54, %v3562_v38  ;;  %v4947_v32 = vadd.f32 %v4946_v41, %v4755_v53  ;;  %v4757_v0 = vadd.f32 %v4666_v43, %v4288_v9  ;;  %v3564_v43 = vadd.f32 %v9399_v22, %v3206_v23  ;;  %v9403_v9 = vld [vmem:[#allocation12_spill] sm:$0xff]  ;;  %v9405_v41 = vld [vmem:[#allocation21_spill] sm:$0xff] }
 0x212   : > { %v6330_v19 = vpop.f32.mrf.mxu0  ;;  %v5018_v45 = vadd.f32 %v5017_v12, %v4987_v13  ;;  %v4200_v44 = vpop.f32.mrf.mxu1  ;;  %v4992_v5 = vmul.f32 %v4759_v27, %v4759_v27  ;;  %v9404_v12 = vld [vmem:[#allocation23_spill] sm:$0xff] }
 0x213   : > { %v4760_v2 = vadd.f32 %v6327_v25, %v4291_v39  ;;  %v4289_v4 = vadd.f32 %v4200_v44, %v3560_v59  ;;  %v4948_v48 = vadd.f32 %v4947_v32, %v4756_v58  ;;  %v4990_v29 = vmul.f32 %v4757_v0, %v4757_v0  ;;  %v9406_v39 = vld [vmem:[#allocation8_spill] sm:$0xff] }
 0x214   : > { %v4682_v57 = vpop.f32.mrf.mxu0  ;;  %v5019_v35 = vadd.f32 %v5018_v45, %v4988_v17  ;;  %v6296_v6 = vpop.f32.mrf.mxu1  ;;  %v3210_v54 = vadd.f32 %v9405_v41, %v9404_v12  ;;  %v3570_v17 = vadd.f32 %v9406_v39, %v3212_v16  ;;  %v9414_v16 = vld [vmem:[#allocation17_spill] sm:$0xff] }
 0x215   : > { %v5828_v49 = vpack.c.bf16 %v4760_v2, %v4759_v27  ;;  %v4758_v34 = vadd.f32 %v4669_v11, %v4289_v4  ;;  %v4949_v28 = vadd.f32 %v4948_v48, %v4757_v0  ;;  %v4294_v47 = vadd.f32 %v6296_v6, %v8986_v14 }
 0x216   : > { %v6331_v51 = vpop.f32.mrf.mxu0  ;;  %v5020_v18 = vadd.f32 %v5019_v35, %v4989_v20  ;;  %v4213_v21 = vpop.f32.mrf.mxu1  ;;  %v4993_v62 = vmul.f32 %v4760_v2, %v4760_v2  ;;  %v3567_v11 = vadd.f32 %v9403_v9, %v3209_v60  ;;  %v9412_v60 = vld [vmem:[#allocation24_spill] sm:$0xff] }
 0x217   : > { %5876 = vst [vmem:[%s6679_s7 + $0x38] sm:$0xff] %v5828_v49   ;;  %v5823_v24 = vpack.c.bf16 %v4758_v34, %v4757_v0  ;;  %v4991_v61 = vmul.f32 %v4758_v34, %v4758_v34  ;;  %v4292_v53 = vadd.f32 %v4213_v21, %v3563_v63  ;;  %v4950_v42 = vadd.f32 %v4949_v28, %v4758_v34  ;;  %v9408_v63 = vld [vmem:[#allocation16_spill] sm:$0xff] }
 0x218   : > { %v4685_v31 = vpop.f32.mrf.mxu0  ;;  %v5021_v58 = vadd.f32 %v5020_v18, %v4990_v29  ;;  %v6297_v50 = vpop.f32.mrf.mxu1  ;;  %v4763_v8 = vadd.f32 %v6330_v19, %v4294_v47  ;;  %v3568_v23 = vadd.f32 %v9408_v63, %v3210_v54  ;;  %v9409_v49 = vld [vmem:[#allocation20_spill] sm:$0xff]  ;;  %v9417_v54 = vld [vmem:[#allocation29_spill] sm:$0xff] }
 0x219   : > { %5875 = vst [vmem:[%s6679_s7 + $0x30] sm:$0xff] %v5823_v24   ;;  %v4295_v26 = vadd.f32 %v6297_v50, %v3566_v3  ;;  %v4951_v52 = vadd.f32 %v4950_v42, %v4759_v27  ;;  %v4761_v14 = vadd.f32 %v4682_v57, %v4292_v53  ;;  %v3213_v34 = vadd.f32 %v9014_v15, %v9409_v49  ;;  %v9411_v3 = vld [vmem:[#allocation30_spill] sm:$0xff] }
 0x21a   : > { %v6334_v55 = vpop.f32.mrf.mxu0  ;;  %v5022_v25 = vadd.f32 %v5021_v58, %v4991_v61  ;;  %v4216_v38 = vpop.f32.mrf.mxu1  ;;  %v4996_v21 = vmul.f32 %v4763_v8, %v4763_v8 }
 0x21b   : > { %v4764_v10 = vadd.f32 %v6331_v51, %v4295_v26  ;;  %v4293_v30 = vadd.f32 %v4216_v38, %v3564_v43  ;;  %v4952_v37 = vadd.f32 %v4951_v52, %v4760_v2  ;;  %v4994_v19 = vmul.f32 %v4761_v14, %v4761_v14  ;;  %v9407_v2 = vld [vmem:[#allocation15_spill] sm:$0xff]  ;;  %v9410_v51 = vld [vmem:[#allocation22_spill] sm:$0xff] }
 0x21c   : > { %v4698_v36 = vpop.f32.mrf.mxu0  ;;  %v5023_v13 = vadd.f32 %v5022_v25, %v4992_v5  ;;  %v6300_v33 = vpop.f32.mrf.mxu1  ;;  %v3216_v28 = vadd.f32 %v9411_v3, %v9410_v51  ;;  %v3571_v1 = vadd.f32 %v9412_v60, %v3213_v34  ;;  %v3214_v26 = vadd.f32 %v9414_v16, %v9413_v56  ;;  %v9422_v51 = vld [vmem:[#allocation10_spill] sm:$0xff] }
 0x21d   : > { %v5838_v59 = vpack.c.bf16 %v4764_v10, %v4763_v8  ;;  %v4762_v40 = vadd.f32 %v4685_v31, %v4293_v30  ;;  %v4953_v32 = vadd.f32 %v4952_v37, %v4761_v14  ;;  %v4298_v4 = vadd.f32 %v6300_v33, %v9407_v2 }
 0x21e   : > { %v6335_v46 = vpop.f32.mrf.mxu0  ;;  %v5024_v45 = vadd.f32 %v5023_v13, %v4993_v62  ;;  %v4229_v0 = vpop.f32.mrf.mxu1  ;;  %v4997_v22 = vmul.f32 %v4764_v10, %v4764_v10 }
 0x21f   : > { %5878 = vst [vmem:[%s6679_s7 + $0x48] sm:$0xff] %v5838_v59   ;;  %v5833_v44 = vpack.c.bf16 %v4762_v40, %v4761_v14  ;;  %v4995_v27 = vmul.f32 %v4762_v40, %v4762_v40  ;;  %v4296_v57 = vadd.f32 %v4229_v0, %v3567_v11  ;;  %v4954_v48 = vadd.f32 %v4953_v32, %v4762_v40  ;;  %v9415_v14 = vld [vmem:[#allocation26_spill] sm:$0xff]  ;;  %v9418_v40 = vld [vmem:[#allocation27_spill] sm:$0xff] }
 0x220   : > { %v4701_v20 = vpop.f32.mrf.mxu0  ;;  %v5025_v35 = vadd.f32 %v5024_v45, %v4994_v19  ;;  %v6301_v6 = vpop.f32.mrf.mxu1  ;;  %v4767_v31 = vadd.f32 %v6334_v55, %v4298_v4  ;;  %v3574_v38 = vadd.f32 %v9415_v14, %v3216_v28  ;;  %v3572_v59 = vadd.f32 %v9417_v54, %v3214_v26  ;;  %v9421_v32 = vld [vmem:[#allocation35_spill] sm:$0xff]  ;;  %v9423_v28 = vld [vmem:[#allocation9_spill] sm:$0xff]  ;;  %v9427_v26 = vld [vmem:[#allocation34_spill] sm:$0xff] }
 0x221   : > { %5877 = vst [vmem:[%s6679_s7 + $0x40] sm:$0xff] %v5833_v44   ;;  %v4299_v29 = vadd.f32 %v6301_v6, %v3570_v17  ;;  %v4955_v24 = vadd.f32 %v4954_v48, %v4763_v8  ;;  %v4765_v47 = vadd.f32 %v4698_v36, %v4296_v57  ;;  %v9420_v17 = vld [vmem:[#allocation11_spill] sm:$0xff] }
 0x222   : > { %v6338_v18 = vpop.f32.mrf.mxu0  ;;  %v5026_v61 = vadd.f32 %v5025_v35, %v4995_v27  ;;  %v4232_v53 = vpop.f32.mrf.mxu1  ;;  %v3220_v19 = vadd.f32 %v9421_v32, %v9420_v17  ;;  %v5000_v44 = vmul.f32 %v4767_v31, %v4767_v31 }
 0x223   : > { %v4768_v58 = vadd.f32 %v6335_v46, %v4299_v29  ;;  %v4297_v42 = vadd.f32 %v4232_v53, %v3568_v23  ;;  %v4956_v7 = vadd.f32 %v4955_v24, %v4764_v10  ;;  %v4998_v55 = vmul.f32 %v4765_v47, %v4765_v47  ;;  %v9416_v10 = vld [vmem:[#allocation28_spill] sm:$0xff] }
 0x224   : > { %v4714_v50 = vpop.f32.mrf.mxu0  ;;  %v5027_v43 = vadd.f32 %v5026_v61, %v4996_v21  ;;  %v6304_v15 = vpop.f32.mrf.mxu1  ;;  %v9419_v46 = vld [vmem:[#allocation32_spill] sm:$0xff] }
 0x225   : > { %v5848_v5 = vpack.c.bf16 %v4768_v58, %v4767_v31  ;;  %v4766_v52 = vadd.f32 %v4701_v20, %v4297_v42  ;;  %v4957_v8 = vadd.f32 %v4956_v7, %v4765_v47  ;;  %v4302_v37 = vadd.f32 %v6304_v15, %v9416_v10  ;;  %v9424_v29 = vld [vmem:[#allocation36_spill] sm:$0xff] }
 0x226   : > { %v6339_v25 = vpop.f32.mrf.mxu0  ;;  %v5028_v30 = vadd.f32 %v5027_v43, %v4997_v22  ;;  %v4245_v36 = vpop.f32.mrf.mxu1  ;;  %v3217_v39 = vadd.f32 %v9419_v46, %v9418_v40  ;;  %v5001_v6 = vmul.f32 %v4768_v58, %v4768_v58  ;;  %v3218_v21 = vadd.f32 %v9424_v29, %v9423_v28 }
 0x227   : > { %5880 = vst [vmem:[%s6679_s7 + $0x58] sm:$0xff] %v5848_v5   ;;  %v5843_v62 = vpack.c.bf16 %v4766_v52, %v4765_v47  ;;  %v4999_v13 = vmul.f32 %v4766_v52, %v4766_v52  ;;  %v4300_v33 = vadd.f32 %v4245_v36, %v3571_v1  ;;  %v4958_v12 = vadd.f32 %v4957_v8, %v4766_v52  ;;  %v9425_v47 = vld [vmem:[#allocation31_spill] sm:$0xff] }
 0x228   : > { %v4717_v9 = vpop.f32.mrf.mxu0  ;;  %v5029_v11 = vadd.f32 %v5028_v30, %v4998_v55  ;;  %v6305_v41 = vpop.f32.mrf.mxu1  ;;  %v4771_v20 = vadd.f32 %v6338_v18, %v4302_v37  ;;  %v3575_v3 = vadd.f32 %v9422_v51, %v3217_v39  ;;  %v3578_v53 = vadd.f32 %v9425_v47, %v3220_v19 }
 0x229   : > { %5879 = vst [vmem:[%s6679_s7 + $0x50] sm:$0xff] %v5843_v62   ;;  %v4303_v45 = vadd.f32 %v6305_v41, %v3574_v38  ;;  %v4959_v27 = vadd.f32 %v4958_v12, %v4767_v31  ;;  %v4769_v4 = vadd.f32 %v4714_v50, %v4300_v33  ;;  %v3576_v5 = vadd.f32 %v9427_v26, %v3218_v21 }
 0x22a   : > { %v6342_v0 = vpop.f32.mrf.mxu0  ;;  %v5030_v2 = vadd.f32 %v5029_v11, %v4999_v13  ;;  %v4248_v57 = vpop.f32.mrf.mxu1 }
 0x22b   : > { %v4772_v35 = vadd.f32 %v6339_v25, %v4303_v45  ;;  %v4301_v48 = vadd.f32 %v4248_v57, %v3572_v59  ;;  %v4960_v23 = vadd.f32 %v4959_v27, %v4768_v58  ;;  %v5002_v18 = vmul.f32 %v4769_v4, %v4769_v4  ;;  %v9426_v58 = vld [vmem:[#allocation33_spill] sm:$0xff] }
 0x22c   : > { %v5031_v63 = vadd.f32 %v5030_v2, %v5000_v44  ;;  %v6308_v49 = vpop.f32.mrf.mxu1  ;;  %v4730_v34 = vpop.f32.mrf.mxu0  ;;  %v5004_v25 = vmul.f32 %v4771_v20, %v4771_v20 }
 0x22d   : > { %v5858_v24 = vpack.c.bf16 %v4772_v35, %v4771_v20  ;;  %v4770_v61 = vadd.f32 %v4717_v9, %v4301_v48  ;;  %v4961_v31 = vadd.f32 %v4960_v23, %v4769_v4  ;;  %v4306_v7 = vadd.f32 %v6308_v49, %v9426_v58 }
 0x22e   : > { %v5032_v42 = vadd.f32 %v5031_v63, %v5001_v6  ;;  %v4261_v50 = vpop.f32.mrf.mxu1  ;;  %v6343_v16 = vpop.f32.mrf.mxu0  ;;  %v5005_v13 = vmul.f32 %v4772_v35, %v4772_v35 }
 0x22f   : > { %5882 = vst [vmem:[%s6679_s7 + $0x68] sm:$0xff] %v5858_v24   ;;  %v5853_v22 = vpack.c.bf16 %v4770_v61, %v4769_v4  ;;  %v5003_v43 = vmul.f32 %v4770_v61, %v4770_v61  ;;  %v4304_v15 = vadd.f32 %v4261_v50, %v3575_v3  ;;  %v4962_v1 = vadd.f32 %v4961_v31, %v4770_v61 }
 0x230   : > { %v5033_v60 = vadd.f32 %v5032_v42, %v5002_v18  ;;  %v6309_v56 = vpop.f32.mrf.mxu1  ;;  %v4775_v30 = vadd.f32 %v6342_v0, %v4306_v7  ;;  %v4733_v33 = vpop.f32.mrf.mxu0 }
 0x231   : > { %5881 = vst [vmem:[%s6679_s7 + $0x60] sm:$0xff] %v5853_v22   ;;  %v4307_v52 = vadd.f32 %v6309_v56, %v3578_v53  ;;  %v4963_v14 = vadd.f32 %v4962_v1, %v4771_v20  ;;  %v4773_v8 = vadd.f32 %v4730_v34, %v4304_v15 }
 0x232   : > { %v5034_v38 = vadd.f32 %v5033_v60, %v5003_v43  ;;  %v4264_v55 = vpop.f32.mrf.mxu1  ;;  %v5008_v17 = vmul.f32 %v4775_v30, %v4775_v30 }
 0x233   : > { %v4776_v36 = vadd.f32 %v6343_v16, %v4307_v52  ;;  %v4305_v62 = vadd.f32 %v4264_v55, %v3576_v5  ;;  %v4964_v37 = vadd.f32 %v4963_v14, %v4772_v35  ;;  %v5006_v41 = vmul.f32 %v4773_v8, %v4773_v8 }
 0x234   : > { %v5035_v10 = vadd.f32 %v5034_v38, %v5004_v25 }
 0x235   : > { %v5868_v9 = vpack.c.bf16 %v4776_v36, %v4775_v30  ;;  %v4774_v11 = vadd.f32 %v4733_v33, %v4305_v62  ;;  %v4965_v12 = vadd.f32 %v4964_v37, %v4773_v8 }
 0x236   : > { %v5036_v54 = vadd.f32 %v5035_v10, %v5005_v13 }
 0x237   : > { %5884 = vst [vmem:[%s6679_s7 + $0x78] sm:$0xff] %v5868_v9   ;;  %v5863_v59 = vpack.c.bf16 %v4774_v11, %v4773_v8  ;;  %v5007_v40 = vmul.f32 %v4774_v11, %v4774_v11  ;;  %v4966_v39 = vadd.f32 %v4965_v12, %v4774_v11 }
 0x238   : > { %v5037_v46 = vadd.f32 %v5036_v54, %v5006_v41 }
 0x239   : > { %5883 = vst [vmem:[%s6679_s7 + $0x70] sm:$0xff] %v5863_v59   ;;  %v4967_v32 = vadd.f32 %v4966_v39, %v4775_v30 }
 0x23a   : > { %v5038_v19 = vadd.f32 %v5037_v46, %v5007_v40 }
 0x23b   : > { %6490 = shalt.err (!%p6487_p7)
}
 0x23c   : > { %s6491_s27 = scalar_lea.hbm %s9136_s28, 2048  ;;  %s6495_s9 = scalar_lea.hbm %s9202_s2, 4096 }
 0x23d   : > { %p6492_p9 = scmp.ne.s32.totalorder %s9136_s28, %s6491_s27  ;;  %p6496_p12 = scmp.lt.s32.totalorder %s9136_s28, %s9202_s2 }
 0x23e   : > { %p6497_p13 = scmp.lt.s32.totalorder %s6495_s9, %s6491_s27 }
 0x23f   : > { %p6493_p10 = pnand %p6492_p9, %p6654_p4 }
 0x240   : > { %p6498_p0 = por %p6497_p13, %p6496_p12 }
 0x241   : > { %p6494_p11 = pneg %p6493_p10 }
 0x243   : > { %p6499_p1 = pnand %p6498_p0, %p6494_p11 }
 0x245   : > { %6502 = shalt.err (!%p6499_p1)
}
 0x246   : > { %s6585_s18 = smov 64   ;;  %s6586_s6 = smov 4   ;;  %v5009_v45 = vmul.f32 %v4776_v36, %v4776_v36  ;;  %v4968_v0 = vadd.f32 %v4967_v32, %v4776_v36  ;;  %v5039_v44 = vadd.f32 %v5038_v19, %v5008_v17  ;;  %v4937_v49 = vld [vmem:[#allocation4] sm:$0x1]  ;;  %v4977_v3 = vld [vmem:[#allocation4 + $0x1] sm:$0x1] }
 0x247   : > { %6357 = dma.vmem_to_hbm [thread:$0]  (%p6654_p4), %s9138_s19, 2048, %s9136_s28, %s9144_s15, %s6585_s18, %s6585_s18, %s6586_s6  }
 0x248   : > { %v4969_v27 = vrot.slane %v4968_v0, 4  ;;  %v5040_v2 = vadd.f32 %v5039_v44, %v5009_v45  ;;  %s6587_s23 = smov [#allocation4]  }
 0x249   : > { %s5080_s19 = sshll.u32 %s6587_s23, 4  ;;  %s5081_s19 = int_to_ptr.vmem [resolvable:$true] %s5080_s19 }
 0x24a   : > { %v4970_v4 = vadd.f32 %v4969_v27, %v4968_v0  ;;  %v5041_v57 = vrot.slane %v5040_v2, 4  ;;  %s6503_s21 = scalar_lea.vmem %s5081_s19, 32  ;;  %p6510_p6 = scmp.lt.s32.totalorder %s5081_s19, %s5081_s19 }
 0x24b   : > { %p6504_p4 = scmp.ne.s32.totalorder %s5081_s19, %s6503_s21  ;;  %p6511_p7 = scmp.lt.s32.totalorder %s6503_s21, %s6503_s21 }
 0x24c   : > { %v4971_v20 = vrot.slane %v4970_v4, 2  ;;  %v5042_v35 = vadd.f32 %v5041_v57, %v5040_v2 }
 0x24d   : > { %p6505_p3 = pnand %p6504_p4, %p6644_p2  ;;  %p6512_p9 = por %p6511_p7, %p6510_p6 }
 0x24e   : > { %v4972_v48 = vadd.f32 %v4971_v20, %v4970_v4  ;;  %v5043_v6 = vrot.slane %v5042_v35, 2 }
 0x24f   : > { %p6506_p5 = pneg %p6505_p3 }
 0x250   : > { %v4973_v63 = vrot.slane %v4972_v48, 1  ;;  %v5044_v23 = vadd.f32 %v5043_v6, %v5042_v35 }
 0x251   : > { %p6513_p10 = pnand %p6512_p9, %p6506_p5 }
 0x252   : > { %v4974_v34 = vadd.f32 %v4973_v63, %v4972_v48  ;;  %v5045_v51 = vrot.slane %v5044_v23, 1 }
 0x254   : > { %v4975_v28 = vadd.f32 %v4974_v34, %v4937_v49  ;;  %v5046_v29 = vadd.f32 %v5045_v51, %v5044_v23 }
 0x256   : > { %4976 = vst [vmem:[#allocation4] sm:$0x1] %v4975_v28  ;;  %v5047_v21 = vadd.f32 %v5046_v29, %v4977_v3 }
 0x258   : > { %5048 = vst [vmem:[#allocation4 + $0x1] sm:$0x1] %v5047_v21 }
 0x259   : > { %6516 = shalt.err (!%p6513_p10)
}
 0x25a   : > { %6359 = dma.vmem_to_hbm [thread:$0]  (%p6644_p2), %s5081_s19, 32, %s9203_s3, [#allocation5]  }
 0x25b   : > { %6552 = dma.done.wait (%p6644_p2), [#allocation5], 32  }
 0x25c   : > { %6554 = vsyncadd (%p6644_p2), [#allocation5], 4294967264 }
 0x25d PF: > { %p6369_p11 = scmp.ge.s32.totalorder %s6581_s17, 2  ;;  %s5096_s15 = sand.u32 1, %s6561_s12  }
 0x25e   : > { %s5097_s29 = scalar_lea.sflag [#allocation3], %s5096_s15 }
 0x25f   : > { %p6364_p12 = pnand %p6369_p11, %p6661_p8 }
 0x261   : > { %p6365_p13 = pneg %p6364_p12 }
 0x263   : > { %6556 = dma.done.wait (%p6365_p13), %s5097_s29, 2048  }
 0x264   : > { %6558 = vsyncadd (%p6365_p13), %s5097_s29, 4294965248  ;;  %s18_s17 = sadd.s32 1, %s6581_s17   ;;  %s9428_s12 = smov %s6565_s13 }
 0x265   : > { %p15_p0 = scmp.ge.s32.totalorder %s18_s17, 4   ;;  %s9429_s13 = smov %s6569_s14 }
 0x266   : > { %s9430_s14 = smov %s6667_s26  ;;  %s9431_s15 = smov %s6577_s16 }
 0x267   : > { %s9432_s16 = smov %s9434_s20  ;;  %17 = sbr.rel (!%p15_p0) target bundleno = 5 (0x5), region = 81 }
 0x26c   :  { %5102 = vsyncpa [#allocation3], 1 }
 0x26d   :  { %5104 = vsyncpa [#allocation3 + $0x1], 1 }
 0x26e   :  { %5105 = vsyncpa [#allocation5], 1 }

</bundles_post_ra>
